<compile_context>
chip_gen: v7x
topology: tpu7x:2x2x1
jax: 0.10.0
libtpu: 0.0.40
codegen_flags: <defaults>
</compile_context>

<pallas_src>
import functools

import jax
import jax.numpy as jnp
from jax.experimental import pallas as pl
from jax.experimental.pallas import tpu as pltpu

INPUT_DIM = 784
TRANS2_DIM = INPUT_DIM // 2   # 392
TRANS3_DIM = TRANS2_DIM // 2  # 196
TRANS4_DIM = TRANS3_DIM // 2  # 98
LATENT_DIM = 128
LR_FACTOR = 0.5

# layer sizes in forward order (encoder then decoder)
LAYER_DIMS = [
    (INPUT_DIM, TRANS2_DIM),
    (TRANS2_DIM, TRANS3_DIM),
    (TRANS3_DIM, TRANS4_DIM),
    (TRANS4_DIM, LATENT_DIM),
    (LATENT_DIM, TRANS4_DIM),
    (TRANS4_DIM, TRANS3_DIM),
    (TRANS3_DIM, TRANS2_DIM),
    (TRANS2_DIM, INPUT_DIM),
]
NUM_LAYERS = len(LAYER_DIMS)


def _round_up(x, m):
    return (x + m - 1) // m * m


# lane-dense (128-multiple) padded layer widths
PADDED_LAYER_DIMS = [(_round_up(i, 128), _round_up(o, 128)) for i, o in LAYER_DIMS]
INPUT_PAD = PADDED_LAYER_DIMS[0][0]   # 896
DEFAULT_TM = 512                      # per review: bigger tiles amortize per-step overhead


def autoencoder_kernel(x_ref, *refs):
    """Fused forward: 8 x (bf16 matmul w/ f32 accumulate + f32 bias + LeakyReLU(0.5))."""
    out_ref = refs[-1]
    param_refs = refs[:-1]  # w0, b0, w1, b1, ..., w7, b7 (VMEM-resident across grid steps)

    h = x_ref[...]  # bf16 (tm, 896)
    for i in range(NUM_LAYERS):
        w = param_refs[2 * i][...]        # bf16 (in_pad, out_pad)
        b = param_refs[2 * i + 1][...]    # f32  (1, out_pad)
        acc = jnp.dot(h, w, preferred_element_type=jnp.float32) + b
        # LeakyReLU(0.5) == max(acc, 0.5*acc) since 0 < 0.5 < 1; cast straight to bf16
        # so the next layer's MXU input (and the VMEM temporary) is already narrow.
        h = jnp.maximum(acc, LR_FACTOR * acc).astype(jnp.bfloat16)
    out_ref[...] = h  # bf16 out tile


def _select_tm(batch):
    # bf16 packs 16 rows per sublane group -> keep tm a multiple of 16.
    tm = _round_up(max(batch, 16), 16)
    tm = min(tm, DEFAULT_TM)
    # Guarantee >= 2 grid steps once the batch allows it, so dimension_semantics
    # ("parallel",) can shard the batch axis across both v7x TensorCores.
    two_step_cap = max(128, _round_up(pl.cdiv(batch, 2), 16))
    tm = min(tm, two_step_cap)
    return tm


@functools.partial(jax.jit, static_argnames=("tm", "out_dtype"))
def autoencoder_forward(x, padded_params, *, tm=None, out_dtype=jnp.float32):
    """x: (batch, 784) float32 (or bf16).
    padded_params: flat list [w0, b0, ..., w7, b7] with w_i bf16 (in_pad_i, out_pad_i)
    and b_i f32 (1, out_pad_i) — produced by pad_and_cast_params().
    Returns (batch, 784) in out_dtype (float32 by default, matching the PyTorch module)."""
    batch = x.shape[0]
    if tm is None:
        tm = _select_tm(batch)
    batch_p = _round_up(batch, tm)

    # pad batch to a TM multiple and features to the lane-dense width; cast to bf16 for I/O.
    # zeros stay exactly zero through zero-padded weights/biases + LeakyReLU(0)=0.
    xp = jnp.zeros((batch_p, INPUT_PAD), jnp.bfloat16).at[:batch, :INPUT_DIM].set(
        x.astype(jnp.bfloat16))

    in_specs = [pl.BlockSpec((tm, INPUT_PAD), lambda i: (i, 0))]
    for (ip, op) in PADDED_LAYER_DIMS:
        # constant (0,0) index_map -> parameters stay VMEM-resident (fetched once).
        in_specs.append(pl.BlockSpec((ip, op), lambda i: (0, 0)))   # full weight, resident
        in_specs.append(pl.BlockSpec((1, op), lambda i: (0, 0)))    # full bias, resident
    out_spec = pl.BlockSpec((tm, INPUT_PAD), lambda i: (i, 0))

    flops = 2 * batch_p * sum(ip * op for ip, op in PADDED_LAYER_DIMS)
    bytes_accessed = (
        xp.size * xp.dtype.itemsize                      # bf16 activations in
        + batch_p * INPUT_PAD * 2                        # bf16 activations out
        + sum(int(p.size) * p.dtype.itemsize for p in padded_params)
    )

    out = pl.pallas_call(
        autoencoder_kernel,
        out_shape=jax.ShapeDtypeStruct((batch_p, INPUT_PAD), jnp.bfloat16),
        grid=(batch_p // tm,),
        in_specs=in_specs,
        out_specs=out_spec,
        compiler_params=pltpu.CompilerParams(
            dimension_semantics=("parallel",),
            vmem_limit_bytes=48 << 20,
        ),
        cost_estimate=pl.CostEstimate(
            flops=flops, transcendentals=0, bytes_accessed=bytes_accessed),
    )(xp, *padded_params)

    # Slice away padding; cast back to the module's output dtype (cheap (batch,784) op
    # outside the hot kernel; callers running a bf16 pipeline can pass out_dtype=bfloat16).
    return out[:batch, :INPUT_DIM].astype(out_dtype)


def init_params(key):
    """Deterministic init mimicking torch.nn.Linear default (U(-1/sqrt(fan_in), +)).
    Weights stored transposed as (in, out); biases as (1, out)."""
    params = []
    for (fan_in, fan_out) in LAYER_DIMS:
        key, kw, kb = jax.random.split(key, 3)
        bound = 1.0 / (fan_in ** 0.5)
        w = jax.random.uniform(kw, (fan_in, fan_out), jnp.float32, -bound, bound)
        b = jax.random.uniform(kb, (1, fan_out), jnp.float32, -bound, bound)
        params += [w, b]
    return params


def pad_and_cast_params(params):
    """Zero-pad to 128-multiple widths and cast weights to bf16 (done once, kept hot)."""
    padded = []
    for i, (ip, op) in enumerate(PADDED_LAYER_DIMS):
        w = params[2 * i]
        b = params[2 * i + 1]
        wp = jnp.zeros((ip, op), jnp.bfloat16).at[:w.shape[0], :w.shape[1]].set(
            w.astype(jnp.bfloat16))
        bp = jnp.zeros((1, op), jnp.float32).at[:, :b.shape[1]].set(b)
        padded += [wp, bp]
    return padded


def reference_forward_bf16(x, params):
    """Pure-JAX reference emulating the kernel's numerics
    (bf16 input, bf16 matmuls with f32 accumulate, bf16 inter-layer activations)."""
    h = x.astype(jnp.bfloat16)
    for i in range(NUM_LAYERS):
        w = params[2 * i].astype(jnp.bfloat16)
        b = params[2 * i + 1]
        acc = jnp.dot(h, w, preferred_element_type=jnp.float32) + b
        h = jnp.maximum(acc, LR_FACTOR * acc).astype(jnp.bfloat16)
    return h.astype(jnp.float32)


if __name__ == "__main__":
    key = jax.random.PRNGKey(0)
    key, kx = jax.random.split(key)
    batch = 8
    x = jax.random.normal(kx, (batch, INPUT_DIM), jnp.float32)

    params = init_params(key)
    padded_params = jax.block_until_ready(pad_and_cast_params(params))  # persistent bf16 copies

    recon = autoencoder_forward(x, padded_params)
    recon = jax.block_until_ready(recon)

    ref = reference_forward_bf16(x, params)
    assert recon.shape == (batch, INPUT_DIM)
    assert recon.dtype == jnp.float32
    assert jnp.allclose(recon, ref, atol=3e-2, rtol=3e-2), "mismatch vs JAX reference"

    print("KERNEL_OK")
</pallas_src>

<mosaic_0001>
module attributes {stable_mosaic.version = 11 : i64} {
  func.func @autoencoder_kernel(%arg0: i32, %arg1: memref<16x896xbf16, #tpu.memory_space<vmem>>, %arg2: memref<896x512xbf16, #tpu.memory_space<vmem>>, %arg3: memref<1x512xf32, #tpu.memory_space<vmem>>, %arg4: memref<512x256xbf16, #tpu.memory_space<vmem>>, %arg5: memref<1x256xf32, #tpu.memory_space<vmem>>, %arg6: memref<256x128xbf16, #tpu.memory_space<vmem>>, %arg7: memref<1x128xf32, #tpu.memory_space<vmem>>, %arg8: memref<128x128xbf16, #tpu.memory_space<vmem>>, %arg9: memref<1x128xf32, #tpu.memory_space<vmem>>, %arg10: memref<128x128xbf16, #tpu.memory_space<vmem>>, %arg11: memref<1x128xf32, #tpu.memory_space<vmem>>, %arg12: memref<128x256xbf16, #tpu.memory_space<vmem>>, %arg13: memref<1x256xf32, #tpu.memory_space<vmem>>, %arg14: memref<256x512xbf16, #tpu.memory_space<vmem>>, %arg15: memref<1x512xf32, #tpu.memory_space<vmem>>, %arg16: memref<512x896xbf16, #tpu.memory_space<vmem>>, %arg17: memref<1x896xf32, #tpu.memory_space<vmem>>, %arg18: memref<16x896xbf16, #tpu.memory_space<vmem>>) attributes {dimension_semantics = [#tpu.dimension_semantics<parallel>], iteration_bounds = array<i64: 1>, scalar_prefetch = 0 : i64, scratch_operands = 0 : i64, tpu.core_type = #tpu.core_type<tc>, window_params = [{transform_indices = @transform_0, window_bounds = array<i64: 16, 896>}, {pipeline_mode = #tpu.pipeline_mode<synchronous>, transform_indices = @transform_1, window_bounds = array<i64: 896, 512>}, {pipeline_mode = #tpu.pipeline_mode<synchronous>, transform_indices = @transform_2, window_bounds = array<i64: 1, 512>}, {pipeline_mode = #tpu.pipeline_mode<synchronous>, transform_indices = @transform_3, window_bounds = array<i64: 512, 256>}, {pipeline_mode = #tpu.pipeline_mode<synchronous>, transform_indices = @transform_4, window_bounds = array<i64: 1, 256>}, {pipeline_mode = #tpu.pipeline_mode<synchronous>, transform_indices = @transform_5, window_bounds = array<i64: 256, 128>}, {pipeline_mode = #tpu.pipeline_mode<synchronous>, transform_indices = @transform_6, window_bounds = array<i64: 1, 128>}, {pipeline_mode = #tpu.pipeline_mode<synchronous>, transform_indices = @transform_7, window_bounds = array<i64: 128, 128>}, {pipeline_mode = #tpu.pipeline_mode<synchronous>, transform_indices = @transform_8, window_bounds = array<i64: 1, 128>}, {pipeline_mode = #tpu.pipeline_mode<synchronous>, transform_indices = @transform_9, window_bounds = array<i64: 128, 128>}, {pipeline_mode = #tpu.pipeline_mode<synchronous>, transform_indices = @transform_10, window_bounds = array<i64: 1, 128>}, {pipeline_mode = #tpu.pipeline_mode<synchronous>, transform_indices = @transform_11, window_bounds = array<i64: 128, 256>}, {pipeline_mode = #tpu.pipeline_mode<synchronous>, transform_indices = @transform_12, window_bounds = array<i64: 1, 256>}, {pipeline_mode = #tpu.pipeline_mode<synchronous>, transform_indices = @transform_13, window_bounds = array<i64: 256, 512>}, {pipeline_mode = #tpu.pipeline_mode<synchronous>, transform_indices = @transform_14, window_bounds = array<i64: 1, 512>}, {pipeline_mode = #tpu.pipeline_mode<synchronous>, transform_indices = @transform_15, window_bounds = array<i64: 512, 896>}, {pipeline_mode = #tpu.pipeline_mode<synchronous>, transform_indices = @transform_16, window_bounds = array<i64: 1, 896>}, {transform_indices = @transform_17, window_bounds = array<i64: 16, 896>}]} {
    %c0 = arith.constant 0 : index
    %c0_0 = arith.constant 0 : index
    %0 = vector.load %arg1[%c0, %c0_0] : memref<16x896xbf16, #tpu.memory_space<vmem>>, vector<16x896xbf16>
    %c0_1 = arith.constant 0 : index
    %c0_2 = arith.constant 0 : index
    %1 = vector.load %arg2[%c0_1, %c0_2] : memref<896x512xbf16, #tpu.memory_space<vmem>>, vector<896x512xbf16>
    %c0_3 = arith.constant 0 : index
    %c0_4 = arith.constant 0 : index
    %2 = vector.load %arg3[%c0_3, %c0_4] : memref<1x512xf32, #tpu.memory_space<vmem>>, vector<1x512xf32>
    %cst = arith.constant dense<0.000000e+00> : vector<16x512xf32>
    %3 = tpu.matmul %0, %1, %cst {dimension_numbers = #tpu.dot_dimension_numbers<[1], [0], [0], [1], [0, 0, 1, 1], [], []>} : vector<16x896xbf16>, vector<896x512xbf16>, vector<16x512xf32> -> vector<16x512xf32>
    %4 = vector.broadcast %2 : vector<1x512xf32> to vector<16x512xf32>
    %5 = arith.addf %3, %4 : vector<16x512xf32>
    %cst_5 = arith.constant 5.000000e-01 : f32
    %6 = vector.broadcast %cst_5 : f32 to vector<16x512xf32>
    %7 = arith.mulf %6, %5 : vector<16x512xf32>
    %8 = arith.maximumf %5, %7 : vector<16x512xf32>
    %9 = arith.truncf %8 : vector<16x512xf32> to vector<16x512xbf16>
    %c0_6 = arith.constant 0 : index
    %c0_7 = arith.constant 0 : index
    %10 = vector.load %arg4[%c0_6, %c0_7] : memref<512x256xbf16, #tpu.memory_space<vmem>>, vector<512x256xbf16>
    %c0_8 = arith.constant 0 : index
    %c0_9 = arith.constant 0 : index
    %11 = vector.load %arg5[%c0_8, %c0_9] : memref<1x256xf32, #tpu.memory_space<vmem>>, vector<1x256xf32>
    %cst_10 = arith.constant dense<0.000000e+00> : vector<16x256xf32>
    %12 = tpu.matmul %9, %10, %cst_10 {dimension_numbers = #tpu.dot_dimension_numbers<[1], [0], [0], [1], [0, 0, 1, 1], [], []>} : vector<16x512xbf16>, vector<512x256xbf16>, vector<16x256xf32> -> vector<16x256xf32>
    %13 = vector.broadcast %11 : vector<1x256xf32> to vector<16x256xf32>
    %14 = arith.addf %12, %13 : vector<16x256xf32>
    %cst_11 = arith.constant 5.000000e-01 : f32
    %15 = vector.broadcast %cst_11 : f32 to vector<16x256xf32>
    %16 = arith.mulf %15, %14 : vector<16x256xf32>
    %17 = arith.maximumf %14, %16 : vector<16x256xf32>
    %18 = arith.truncf %17 : vector<16x256xf32> to vector<16x256xbf16>
    %c0_12 = arith.constant 0 : index
    %c0_13 = arith.constant 0 : index
    %19 = vector.load %arg6[%c0_12, %c0_13] : memref<256x128xbf16, #tpu.memory_space<vmem>>, vector<256x128xbf16>
    %c0_14 = arith.constant 0 : index
    %c0_15 = arith.constant 0 : index
    %20 = vector.load %arg7[%c0_14, %c0_15] : memref<1x128xf32, #tpu.memory_space<vmem>>, vector<1x128xf32>
    %cst_16 = arith.constant dense<0.000000e+00> : vector<16x128xf32>
    %21 = tpu.matmul %18, %19, %cst_16 {dimension_numbers = #tpu.dot_dimension_numbers<[1], [0], [0], [1], [0, 0, 1, 1], [], []>} : vector<16x256xbf16>, vector<256x128xbf16>, vector<16x128xf32> -> vector<16x128xf32>
    %22 = vector.broadcast %20 : vector<1x128xf32> to vector<16x128xf32>
    %23 = arith.addf %21, %22 : vector<16x128xf32>
    %cst_17 = arith.constant 5.000000e-01 : f32
    %24 = vector.broadcast %cst_17 : f32 to vector<16x128xf32>
    %25 = arith.mulf %24, %23 : vector<16x128xf32>
    %26 = arith.maximumf %23, %25 : vector<16x128xf32>
    %27 = arith.truncf %26 : vector<16x128xf32> to vector<16x128xbf16>
    %c0_18 = arith.constant 0 : index
    %c0_19 = arith.constant 0 : index
    %28 = vector.load %arg8[%c0_18, %c0_19] : memref<128x128xbf16, #tpu.memory_space<vmem>>, vector<128x128xbf16>
    %c0_20 = arith.constant 0 : index
    %c0_21 = arith.constant 0 : index
    %29 = vector.load %arg9[%c0_20, %c0_21] : memref<1x128xf32, #tpu.memory_space<vmem>>, vector<1x128xf32>
    %cst_22 = arith.constant dense<0.000000e+00> : vector<16x128xf32>
    %30 = tpu.matmul %27, %28, %cst_22 {dimension_numbers = #tpu.dot_dimension_numbers<[1], [0], [0], [1], [0, 0, 1, 1], [], []>} : vector<16x128xbf16>, vector<128x128xbf16>, vector<16x128xf32> -> vector<16x128xf32>
    %31 = vector.broadcast %29 : vector<1x128xf32> to vector<16x128xf32>
    %32 = arith.addf %30, %31 : vector<16x128xf32>
    %cst_23 = arith.constant 5.000000e-01 : f32
    %33 = vector.broadcast %cst_23 : f32 to vector<16x128xf32>
    %34 = arith.mulf %33, %32 : vector<16x128xf32>
    %35 = arith.maximumf %32, %34 : vector<16x128xf32>
    %36 = arith.truncf %35 : vector<16x128xf32> to vector<16x128xbf16>
    %c0_24 = arith.constant 0 : index
    %c0_25 = arith.constant 0 : index
    %37 = vector.load %arg10[%c0_24, %c0_25] : memref<128x128xbf16, #tpu.memory_space<vmem>>, vector<128x128xbf16>
    %c0_26 = arith.constant 0 : index
    %c0_27 = arith.constant 0 : index
    %38 = vector.load %arg11[%c0_26, %c0_27] : memref<1x128xf32, #tpu.memory_space<vmem>>, vector<1x128xf32>
    %cst_28 = arith.constant dense<0.000000e+00> : vector<16x128xf32>
    %39 = tpu.matmul %36, %37, %cst_28 {dimension_numbers = #tpu.dot_dimension_numbers<[1], [0], [0], [1], [0, 0, 1, 1], [], []>} : vector<16x128xbf16>, vector<128x128xbf16>, vector<16x128xf32> -> vector<16x128xf32>
    %40 = vector.broadcast %38 : vector<1x128xf32> to vector<16x128xf32>
    %41 = arith.addf %39, %40 : vector<16x128xf32>
    %cst_29 = arith.constant 5.000000e-01 : f32
    %42 = vector.broadcast %cst_29 : f32 to vector<16x128xf32>
    %43 = arith.mulf %42, %41 : vector<16x128xf32>
    %44 = arith.maximumf %41, %43 : vector<16x128xf32>
    %45 = arith.truncf %44 : vector<16x128xf32> to vector<16x128xbf16>
    %c0_30 = arith.constant 0 : index
    %c0_31 = arith.constant 0 : index
    %46 = vector.load %arg12[%c0_30, %c0_31] : memref<128x256xbf16, #tpu.memory_space<vmem>>, vector<128x256xbf16>
    %c0_32 = arith.constant 0 : index
    %c0_33 = arith.constant 0 : index
    %47 = vector.load %arg13[%c0_32, %c0_33] : memref<1x256xf32, #tpu.memory_space<vmem>>, vector<1x256xf32>
    %cst_34 = arith.constant dense<0.000000e+00> : vector<16x256xf32>
    %48 = tpu.matmul %45, %46, %cst_34 {dimension_numbers = #tpu.dot_dimension_numbers<[1], [0], [0], [1], [0, 0, 1, 1], [], []>} : vector<16x128xbf16>, vector<128x256xbf16>, vector<16x256xf32> -> vector<16x256xf32>
    %49 = vector.broadcast %47 : vector<1x256xf32> to vector<16x256xf32>
    %50 = arith.addf %48, %49 : vector<16x256xf32>
    %cst_35 = arith.constant 5.000000e-01 : f32
    %51 = vector.broadcast %cst_35 : f32 to vector<16x256xf32>
    %52 = arith.mulf %51, %50 : vector<16x256xf32>
    %53 = arith.maximumf %50, %52 : vector<16x256xf32>
    %54 = arith.truncf %53 : vector<16x256xf32> to vector<16x256xbf16>
    %c0_36 = arith.constant 0 : index
    %c0_37 = arith.constant 0 : index
    %55 = vector.load %arg14[%c0_36, %c0_37] : memref<256x512xbf16, #tpu.memory_space<vmem>>, vector<256x512xbf16>
    %c0_38 = arith.constant 0 : index
    %c0_39 = arith.constant 0 : index
    %56 = vector.load %arg15[%c0_38, %c0_39] : memref<1x512xf32, #tpu.memory_space<vmem>>, vector<1x512xf32>
    %cst_40 = arith.constant dense<0.000000e+00> : vector<16x512xf32>
    %57 = tpu.matmul %54, %55, %cst_40 {dimension_numbers = #tpu.dot_dimension_numbers<[1], [0], [0], [1], [0, 0, 1, 1], [], []>} : vector<16x256xbf16>, vector<256x512xbf16>, vector<16x512xf32> -> vector<16x512xf32>
    %58 = vector.broadcast %56 : vector<1x512xf32> to vector<16x512xf32>
    %59 = arith.addf %57, %58 : vector<16x512xf32>
    %cst_41 = arith.constant 5.000000e-01 : f32
    %60 = vector.broadcast %cst_41 : f32 to vector<16x512xf32>
    %61 = arith.mulf %60, %59 : vector<16x512xf32>
    %62 = arith.maximumf %59, %61 : vector<16x512xf32>
    %63 = arith.truncf %62 : vector<16x512xf32> to vector<16x512xbf16>
    %c0_42 = arith.constant 0 : index
    %c0_43 = arith.constant 0 : index
    %64 = vector.load %arg16[%c0_42, %c0_43] : memref<512x896xbf16, #tpu.memory_space<vmem>>, vector<512x896xbf16>
    %c0_44 = arith.constant 0 : index
    %c0_45 = arith.constant 0 : index
    %65 = vector.load %arg17[%c0_44, %c0_45] : memref<1x896xf32, #tpu.memory_space<vmem>>, vector<1x896xf32>
    %cst_46 = arith.constant dense<0.000000e+00> : vector<16x896xf32>
    %66 = tpu.matmul %63, %64, %cst_46 {dimension_numbers = #tpu.dot_dimension_numbers<[1], [0], [0], [1], [0, 0, 1, 1], [], []>} : vector<16x512xbf16>, vector<512x896xbf16>, vector<16x896xf32> -> vector<16x896xf32>
    %67 = vector.broadcast %65 : vector<1x896xf32> to vector<16x896xf32>
    %68 = arith.addf %66, %67 : vector<16x896xf32>
    %cst_47 = arith.constant 5.000000e-01 : f32
    %69 = vector.broadcast %cst_47 : f32 to vector<16x896xf32>
    %70 = arith.mulf %69, %68 : vector<16x896xf32>
    %71 = arith.maximumf %68, %70 : vector<16x896xf32>
    %72 = arith.truncf %71 : vector<16x896xf32> to vector<16x896xbf16>
    %c0_48 = arith.constant 0 : index
    %c0_49 = arith.constant 0 : index
    %73 = vector.load %arg18[%c0_48, %c0_49] : memref<16x896xbf16, #tpu.memory_space<vmem>>, vector<16x896xbf16>
    tpu.vector_store %arg18[%c0_48, %c0_49], %72 {strides = array<i32>} : memref<16x896xbf16, #tpu.memory_space<vmem>>, vector<16x896xbf16>,
    return
  }
  func.func @transform_0(%arg0: i32) -> (i32, i32) {
    %c0_i32 = arith.constant 0 : i32
    %c0_i32_0 = arith.constant 0 : i32
    return %arg0, %c0_i32 : i32, i32
  }
  func.func @transform_1(%arg0: i32) -> (i32, i32) {
    %c0_i32 = arith.constant 0 : i32
    %c0_i32_0 = arith.constant 0 : i32
    %c0_i32_1 = arith.constant 0 : i32
    return %c0_i32, %c0_i32_0 : i32, i32
  }
  func.func @transform_2(%arg0: i32) -> (i32, i32) {
    %c0_i32 = arith.constant 0 : i32
    %c0_i32_0 = arith.constant 0 : i32
    %c0_i32_1 = arith.constant 0 : i32
    return %c0_i32, %c0_i32_0 : i32, i32
  }
  func.func @transform_3(%arg0: i32) -> (i32, i32) {
    %c0_i32 = arith.constant 0 : i32
    %c0_i32_0 = arith.constant 0 : i32
    %c0_i32_1 = arith.constant 0 : i32
    return %c0_i32, %c0_i32_0 : i32, i32
  }
  func.func @transform_4(%arg0: i32) -> (i32, i32) {
    %c0_i32 = arith.constant 0 : i32
    %c0_i32_0 = arith.constant 0 : i32
    %c0_i32_1 = arith.constant 0 : i32
    return %c0_i32, %c0_i32_0 : i32, i32
  }
  func.func @transform_5(%arg0: i32) -> (i32, i32) {
    %c0_i32 = arith.constant 0 : i32
    %c0_i32_0 = arith.constant 0 : i32
    %c0_i32_1 = arith.constant 0 : i32
    return %c0_i32, %c0_i32_0 : i32, i32
  }
  func.func @transform_6(%arg0: i32) -> (i32, i32) {
    %c0_i32 = arith.constant 0 : i32
    %c0_i32_0 = arith.constant 0 : i32
    %c0_i32_1 = arith.constant 0 : i32
    return %c0_i32, %c0_i32_0 : i32, i32
  }
  func.func @transform_7(%arg0: i32) -> (i32, i32) {
    %c0_i32 = arith.constant 0 : i32
    %c0_i32_0 = arith.constant 0 : i32
    %c0_i32_1 = arith.constant 0 : i32
    return %c0_i32, %c0_i32_0 : i32, i32
  }
  func.func @transform_8(%arg0: i32) -> (i32, i32) {
    %c0_i32 = arith.constant 0 : i32
    %c0_i32_0 = arith.constant 0 : i32
    %c0_i32_1 = arith.constant 0 : i32
    return %c0_i32, %c0_i32_0 : i32, i32
  }
  func.func @transform_9(%arg0: i32) -> (i32, i32) {
    %c0_i32 = arith.constant 0 : i32
    %c0_i32_0 = arith.constant 0 : i32
    %c0_i32_1 = arith.constant 0 : i32
    return %c0_i32, %c0_i32_0 : i32, i32
  }
  func.func @transform_10(%arg0: i32) -> (i32, i32) {
    %c0_i32 = arith.constant 0 : i32
    %c0_i32_0 = arith.constant 0 : i32
    %c0_i32_1 = arith.constant 0 : i32
    return %c0_i32, %c0_i32_0 : i32, i32
  }
  func.func @transform_11(%arg0: i32) -> (i32, i32) {
    %c0_i32 = arith.constant 0 : i32
    %c0_i32_0 = arith.constant 0 : i32
    %c0_i32_1 = arith.constant 0 : i32
    return %c0_i32, %c0_i32_0 : i32, i32
  }
  func.func @transform_12(%arg0: i32) -> (i32, i32) {
    %c0_i32 = arith.constant 0 : i32
    %c0_i32_0 = arith.constant 0 : i32
    %c0_i32_1 = arith.constant 0 : i32
    return %c0_i32, %c0_i32_0 : i32, i32
  }
  func.func @transform_13(%arg0: i32) -> (i32, i32) {
    %c0_i32 = arith.constant 0 : i32
    %c0_i32_0 = arith.constant 0 : i32
    %c0_i32_1 = arith.constant 0 : i32
    return %c0_i32, %c0_i32_0 : i32, i32
  }
  func.func @transform_14(%arg0: i32) -> (i32, i32) {
    %c0_i32 = arith.constant 0 : i32
    %c0_i32_0 = arith.constant 0 : i32
    %c0_i32_1 = arith.constant 0 : i32
    return %c0_i32, %c0_i32_0 : i32, i32
  }
  func.func @transform_15(%arg0: i32) -> (i32, i32) {
    %c0_i32 = arith.constant 0 : i32
    %c0_i32_0 = arith.constant 0 : i32
    %c0_i32_1 = arith.constant 0 : i32
    return %c0_i32, %c0_i32_0 : i32, i32
  }
  func.func @transform_16(%arg0: i32) -> (i32, i32) {
    %c0_i32 = arith.constant 0 : i32
    %c0_i32_0 = arith.constant 0 : i32
    %c0_i32_1 = arith.constant 0 : i32
    return %c0_i32, %c0_i32_0 : i32, i32
  }
  func.func @transform_17(%arg0: i32) -> (i32, i32) {
    %c0_i32 = arith.constant 0 : i32
    %c0_i32_0 = arith.constant 0 : i32
    return %arg0, %c0_i32 : i32, i32
  }
}

</mosaic_0001>

<bundles_post_ra>
// kernel: autoencoder_forward.1
= control target key start
LH: loop header
LB: loop body
LE: loop exit
PB: predicated region body
PF: predicated region fallthrough
CT: control target
= control target key end

     0   :  { %s7913_s0 = inlined_call_operand.vmem [shape: bf16[16,896], index: 0, kind: input, shape index: {}]   ;;  %s7914_s1 = inlined_call_operand.hbm [shape: bf16[896,512], index: 1, kind: input, shape index: {}]   ;;  %s7915_s2 = inlined_call_operand.hbm [shape: f32[1,512], index: 2, kind: input, shape index: {}]   ;;  %s7916_s3 = inlined_call_operand.hbm [shape: bf16[512,256], index: 3, kind: input, shape index: {}]   ;;  %s7917_s4 = inlined_call_operand.hbm [shape: f32[1,256], index: 4, kind: input, shape index: {}]   ;;  %s7918_s5 = inlined_call_operand.vmem [shape: bf16[256,128], index: 5, kind: input, shape index: {}]   ;;  %s7919_s6 = inlined_call_operand.hbm [shape: f32[1,128], index: 6, kind: input, shape index: {}]   ;;  %s7920_s7 = inlined_call_operand.vmem [shape: bf16[128,128], index: 7, kind: input, shape index: {}]   ;;  %s7921_s8 = inlined_call_operand.hbm [shape: f32[1,128], index: 8, kind: input, shape index: {}]   ;;  %s7922_s9 = inlined_call_operand.hbm [shape: bf16[128,128], index: 9, kind: input, shape index: {}]   ;;  %s7923_s10 = inlined_call_operand.vmem [shape: f32[1,128], index: 10, kind: input, shape index: {}]   ;;  %s7924_s11 = inlined_call_operand.hbm [shape: bf16[128,256], index: 11, kind: input, shape index: {}]   ;;  %s7925_s12 = inlined_call_operand.vmem [shape: f32[1,256], index: 12, kind: input, shape index: {}]   ;;  %s7926_s13 = inlined_call_operand.hbm [shape: bf16[256,512], index: 13, kind: input, shape index: {}]   ;;  %s7927_s14 = inlined_call_operand.vmem [shape: f32[1,512], index: 14, kind: input, shape index: {}]   ;;  %s7928_s15 = inlined_call_operand.hbm [shape: bf16[512,896], index: 15, kind: input, shape index: {}]   ;;  %s7929_s16 = inlined_call_operand.vmem [shape: f32[1,896], index: 16, kind: input, shape index: {}]   ;;  %s7930_s17 = inlined_call_operand.vmem [shape: bf16[16,896], index: 17, kind: output, shape index: {}]  }
   0x1   :  { %7933 = sst [smem:[#allocation24_spill]] %s7913_s0 }
   0x2   :  { %7934 = sst [smem:[#allocation25_spill]] %s7914_s1 }
   0x3   :  { %22 = vsyncpa [#allocation3], 0 }
   0x4   :  { %23 = vsyncpa [#allocation5], 0 }
   0x5   :  { %24 = vsyncpa [#allocation8], 0 }
   0x6   :  { %25 = vsyncpa [#allocation11], 0 }
   0x7   :  { %26 = vsyncpa [#allocation14], 0 }
   0x8   :  { %27 = vsyncpa [#allocation17], 0  ;;  %s7420_s24 = smov [#allocation4]   ;;  %s7421_s26 = smov [#allocation7]  }
   0x9   :  { %s48_s25 = sshll.u32 %s7420_s24, 4  ;;  %s70_s27 = sshll.u32 %s7421_s26, 4  ;;  %s49_s25 = int_to_ptr.vmem [resolvable:$true] %s48_s25  ;;  %s71_s27 = int_to_ptr.vmem [resolvable:$true] %s70_s27 }
   0xa   :  { %s7188_s0 = scalar_lea.hbm %s7915_s2, 64 }
   0xb   :  { %p7189_p0 = scmp.ne.s32.totalorder %s7915_s2, %s7188_s0  ;;  %p7192_p1 = scmp.lt.u32.totalorder %s7188_s0, %s7915_s2 }
   0xd   :  { %p7194_p2 = pnand %p7192_p1, %p7189_p0 }
   0xf   :  { %7197 = shalt.err (!%p7194_p2)
}
  0x10   :  { %s7198_s20 = scalar_lea.vmem %s49_s25, 64  ;;  %p7203_p4 = scmp.lt.s32.totalorder %s49_s25, %s49_s25 }
  0x11   :  { %p7199_p3 = scmp.ne.s32.totalorder %s49_s25, %s7198_s20  ;;  %p7204_p5 = scmp.lt.s32.totalorder %s7198_s20, %s7198_s20 }
  0x13   :  { %p7205_p6 = por %p7204_p5, %p7203_p4 }
  0x15   :  { %p7206_p7 = pnand %p7205_p6, %p7199_p3 }
  0x17   :  { %7209 = shalt.err (!%p7206_p7)
}
  0x18   :  { %51 = dma.hbm_to_vmem [thread:$0]  %s7915_s2, 64, %s49_s25, [#allocation5]  }
  0x19   :  { %s7210_s26 = scalar_lea.hbm %s7917_s4, 32 }
  0x1a   :  { %p7211_p8 = scmp.ne.s32.totalorder %s7917_s4, %s7210_s26  ;;  %p7214_p9 = scmp.lt.u32.totalorder %s7210_s26, %s7917_s4 }
  0x1c   :  { %p7216_p10 = pnand %p7214_p9, %p7211_p8 }
  0x1e   :  { %7219 = shalt.err (!%p7216_p10)
}
  0x1f   :  { %s7220_s18 = scalar_lea.vmem %s71_s27, 32  ;;  %p7225_p12 = scmp.lt.s32.totalorder %s71_s27, %s71_s27 }
  0x20   :  { %p7221_p11 = scmp.ne.s32.totalorder %s71_s27, %s7220_s18  ;;  %p7226_p13 = scmp.lt.s32.totalorder %s7220_s18, %s7220_s18 }
  0x22   :  { %p7227_p0 = por %p7226_p13, %p7225_p12 }
  0x24   :  { %p7228_p1 = pnand %p7227_p0, %p7221_p11 }
  0x26   :  { %7231 = shalt.err (!%p7228_p1)
}
  0x27   :  { %73 = dma.hbm_to_vmem [thread:$0]  %s7917_s4, 32, %s71_s27, [#allocation8]  }
  0x28   :  { %s7422_s19 = smov [#allocation10]   ;;  %s7232_s22 = scalar_lea.hbm %s7921_s8, 16 }
  0x29   :  { %s94_s1 = sshll.u32 %s7422_s19, 4  ;;  %p7233_p2 = scmp.ne.s32.totalorder %s7921_s8, %s7232_s22  ;;  %s95_s1 = int_to_ptr.vmem [resolvable:$true] %s94_s1 }
  0x2a   :  { %p7236_p3 = scmp.lt.u32.totalorder %s7232_s22, %s7921_s8 }
  0x2c   :  { %p7238_p4 = pnand %p7236_p3, %p7233_p2 }
  0x2e   :  { %7241 = shalt.err (!%p7238_p4)
}
  0x2f   :  { %s7242_s29 = scalar_lea.vmem %s95_s1, 16  ;;  %s7246_s4 = scalar_lea.vmem %s95_s1, 32 }
  0x30   :  { %p7243_p5 = scmp.ne.s32.totalorder %s95_s1, %s7242_s29  ;;  %p7247_p6 = scmp.lt.s32.totalorder %s95_s1, %s95_s1 }
  0x31   :  { %p7248_p7 = scmp.lt.s32.totalorder %s7246_s4, %s7242_s29 }
  0x33   :  { %p7249_p8 = por %p7248_p7, %p7247_p6 }
  0x35   :  { %p7250_p9 = pnand %p7249_p8, %p7243_p5 }
  0x37   :  { %7253 = shalt.err (!%p7250_p9)
}
  0x38   :  { %97 = dma.hbm_to_vmem [thread:$0]  %s7921_s8, 16, %s95_s1, [#allocation11]  }
  0x39   :  { %s7423_s30 = smov [#allocation13]   ;;  %s7424_s2 = smov [#allocation2]  }
  0x3a   :  { %s117_s18 = sshll.u32 %s7423_s30, 4  ;;  %s35_s25 = sshll.u32 %s7424_s2, 4  ;;  %s118_s18 = int_to_ptr.vmem [resolvable:$true] %s117_s18  ;;  %s36_s25 = int_to_ptr.vmem [resolvable:$true] %s35_s25 }
  0x3b   :  { %s7254_s21 = scalar_lea.hbm %s7924_s11, 2048 }
  0x3c   :  { %p7255_p10 = scmp.ne.s32.totalorder %s7924_s11, %s7254_s21  ;;  %p7258_p11 = scmp.lt.u32.totalorder %s7254_s21, %s7924_s11 }
  0x3e   :  { %p7260_p12 = pnand %p7258_p11, %p7255_p10 }
  0x40   :  { %7263 = shalt.err (!%p7260_p12)
}
  0x41   :  { %s7264_s8 = scalar_lea.vmem %s118_s18, 2048  ;;  %p7269_p0 = scmp.lt.s32.totalorder %s118_s18, %s118_s18 }
  0x42   :  { %p7265_p13 = scmp.ne.s32.totalorder %s118_s18, %s7264_s8  ;;  %p7270_p1 = scmp.lt.s32.totalorder %s7264_s8, %s7264_s8 }
  0x44   :  { %p7271_p2 = por %p7270_p1, %p7269_p0 }
  0x46   :  { %p7272_p3 = pnand %p7271_p2, %p7265_p13 }
  0x48   :  { %7275 = shalt.err (!%p7272_p3)
}
  0x49   :  { %s7425_s1 = smov 128   ;;  %s7426_s28 = smov 8  }
  0x4a   :  { %123 = dma.hbm_to_vmem [thread:$0]  %s7924_s11, 2048, %s118_s18, [#allocation14], %s7425_s1, %s7425_s1, %s7426_s28  }
  0x4b   :  { %s7935_s30 = sld [smem:[#allocation25_spill]] }
  0x51   :  { %s7276_s2 = scalar_lea.hbm %s7935_s30, 28672 }
  0x52   :  { %p7277_p4 = scmp.ne.s32.totalorder %s7935_s30, %s7276_s2  ;;  %p7280_p5 = scmp.lt.u32.totalorder %s7276_s2, %s7935_s30 }
  0x54   :  { %p7282_p6 = pnand %p7280_p5, %p7277_p4 }
  0x56   :  { %7285 = shalt.err (!%p7282_p6)
}
  0x57   :  { %s7286_s23 = scalar_lea.vmem %s36_s25, 28672  ;;  %p7291_p8 = scmp.lt.s32.totalorder %s36_s25, %s36_s25 }
  0x58   :  { %p7287_p7 = scmp.ne.s32.totalorder %s36_s25, %s7286_s23  ;;  %p7292_p9 = scmp.lt.s32.totalorder %s7286_s23, %s7286_s23 }
  0x5a   :  { %p7293_p10 = por %p7292_p9, %p7291_p8 }
  0x5c   :  { %p7294_p11 = pnand %p7293_p10, %p7287_p7 }
  0x5e   :  { %7297 = shalt.err (!%p7294_p11)
}
  0x5f   :  { %s7427_s11 = smov 256   ;;  %s7428_s18 = smov 16  }
  0x60   :  { %41 = dma.hbm_to_vmem [thread:$0]  %s7935_s30, 28672, %s36_s25, [#allocation3], %s7427_s11, %s7427_s11, %s7428_s18  }
  0x61   :  { %s7429_s8 = smov [#allocation6]   ;;  %s7430_s4 = smov [#allocation9]  }
  0x62   :  { %s57_s29 = sshll.u32 %s7429_s8, 4  ;;  %s82_s27 = sshll.u32 %s7430_s4, 4  ;;  %s58_s29 = int_to_ptr.vmem [resolvable:$true] %s57_s29  ;;  %s83_s27 = int_to_ptr.vmem [resolvable:$true] %s82_s27 }
  0x63   :  { %s7298_s19 = scalar_lea.hbm %s7916_s3, 8192 }
  0x64   :  { %p7299_p12 = scmp.ne.s32.totalorder %s7916_s3, %s7298_s19  ;;  %p7302_p13 = scmp.lt.u32.totalorder %s7298_s19, %s7916_s3 }
  0x66   :  { %p7304_p0 = pnand %p7302_p13, %p7299_p12 }
  0x68   :  { %7307 = shalt.err (!%p7304_p0)
}
  0x69   :  { %s7308_s25 = scalar_lea.vmem %s58_s29, 8192  ;;  %p7313_p2 = scmp.lt.s32.totalorder %s58_s29, %s58_s29 }
  0x6a   :  { %p7309_p1 = scmp.ne.s32.totalorder %s58_s29, %s7308_s25  ;;  %p7314_p3 = scmp.lt.s32.totalorder %s7308_s25, %s7308_s25 }
  0x6c   :  { %p7315_p4 = por %p7314_p3, %p7313_p2 }
  0x6e   :  { %p7316_p5 = pnand %p7315_p4, %p7309_p1 }
  0x70   :  { %7319 = shalt.err (!%p7316_p5)
}
  0x71   :  { %63 = dma.hbm_to_vmem [thread:$0]  %s7916_s3, 8192, %s58_s29, [#allocation5], %s7425_s1, %s7425_s1, %s7426_s28  }
  0x72   :  { %s7320_s4 = scalar_lea.hbm %s7919_s6, 16 }
  0x73   :  { %p7321_p6 = scmp.ne.s32.totalorder %s7919_s6, %s7320_s4  ;;  %p7324_p7 = scmp.lt.u32.totalorder %s7320_s4, %s7919_s6 }
  0x75   :  { %p7326_p8 = pnand %p7324_p7, %p7321_p6 }
  0x77   :  { %7329 = shalt.err (!%p7326_p8)
}
  0x78   :  { %s7330_s21 = scalar_lea.vmem %s83_s27, 16  ;;  %s7334_s22 = scalar_lea.vmem %s83_s27, 32 }
  0x79   :  { %p7331_p9 = scmp.ne.s32.totalorder %s83_s27, %s7330_s21  ;;  %p7335_p10 = scmp.lt.s32.totalorder %s83_s27, %s83_s27 }
  0x7a   :  { %p7336_p11 = scmp.lt.s32.totalorder %s7334_s22, %s7330_s21 }
  0x7c   :  { %p7337_p12 = por %p7336_p11, %p7335_p10 }
  0x7e   :  { %p7338_p13 = pnand %p7337_p12, %p7331_p9 }
  0x80   :  { %7341 = shalt.err (!%p7338_p13)
}
  0x81   :  { %85 = dma.hbm_to_vmem [thread:$0]  %s7919_s6, 16, %s83_s27, [#allocation8]  }
  0x82   :  { %s7431_s28 = smov [#allocation12]   ;;  %s7342_s30 = scalar_lea.hbm %s7922_s9, 1024 }
  0x83   :  { %s103_s29 = sshll.u32 %s7431_s28, 4  ;;  %p7343_p0 = scmp.ne.s32.totalorder %s7922_s9, %s7342_s30  ;;  %s104_s29 = int_to_ptr.vmem [resolvable:$true] %s103_s29 }
  0x84   :  { %p7346_p1 = scmp.lt.u32.totalorder %s7342_s30, %s7922_s9 }
  0x86   :  { %p7348_p2 = pnand %p7346_p1, %p7343_p0 }
  0x88   :  { %7351 = shalt.err (!%p7348_p2)
}
  0x89   :  { %s7352_s0 = scalar_lea.vmem %s104_s29, 1024  ;;  %p7357_p4 = scmp.lt.s32.totalorder %s104_s29, %s104_s29 }
  0x8a   :  { %p7353_p3 = scmp.ne.s32.totalorder %s104_s29, %s7352_s0  ;;  %p7358_p5 = scmp.lt.s32.totalorder %s7352_s0, %s7352_s0 }
  0x8c   :  { %p7359_p6 = por %p7358_p5, %p7357_p4 }
  0x8e   :  { %p7360_p7 = pnand %p7359_p6, %p7353_p3 }
  0x90   :  { %7363 = shalt.err (!%p7360_p7)
}
  0x91   :  { %s7432_s6 = smov 64   ;;  %s7433_s27 = smov 4  }
  0x92   :  { %109 = dma.hbm_to_vmem [thread:$0]  %s7922_s9, 1024, %s104_s29, [#allocation11], %s7432_s6, %s7432_s6, %s7433_s27  }
  0x93   :  { %s7434_s20 = smov [#allocation15]   ;;  %s7435_s22 = smov [#allocation16]  }
  0x94   :  { %s131_s21 = sshll.u32 %s7434_s20, 4  ;;  %s145_s3 = sshll.u32 %s7435_s22, 4  ;;  %s132_s21 = int_to_ptr.vmem [resolvable:$true] %s131_s21  ;;  %s7636_s3 = int_to_ptr.vmem [resolvable:$true] %s145_s3 }
  0x95   :  { %s7364_s23 = scalar_lea.hbm %s7926_s13, 8192 }
  0x96   :  { %p7365_p8 = scmp.ne.s32.totalorder %s7926_s13, %s7364_s23  ;;  %p7368_p9 = scmp.lt.u32.totalorder %s7364_s23, %s7926_s13 }
  0x98   :  { %p7370_p10 = pnand %p7368_p9, %p7365_p8 }
  0x9a   :  { %7373 = shalt.err (!%p7370_p10)
}
  0x9b   :  { %s7374_s9 = scalar_lea.vmem %s132_s21, 8192  ;;  %p7379_p12 = scmp.lt.s32.totalorder %s132_s21, %s132_s21 }
  0x9c   :  { %p7375_p11 = scmp.ne.s32.totalorder %s132_s21, %s7374_s9  ;;  %p7380_p13 = scmp.lt.s32.totalorder %s7374_s9, %s7374_s9 }
  0x9e   :  { %p7381_p0 = por %p7380_p13, %p7379_p12 }
  0xa0   :  { %p7382_p1 = pnand %p7381_p0, %p7375_p11 }
  0xa2   :  { %7385 = shalt.err (!%p7382_p1)
}
  0xa3   :  { %137 = dma.hbm_to_vmem [thread:$0]  %s7926_s13, 8192, %s132_s21, [#allocation14], %s7427_s11, %s7427_s11, %s7428_s18  }
  0xa4   :  { %s7386_s6 = scalar_lea.hbm %s7928_s15, 28672 }
  0xa5   :  { %p7387_p2 = scmp.ne.s32.totalorder %s7928_s15, %s7386_s6  ;;  %p7390_p3 = scmp.lt.u32.totalorder %s7386_s6, %s7928_s15 }
  0xa7   :  { %p7392_p4 = pnand %p7390_p3, %p7387_p2 }
  0xa9   :  { %7395 = shalt.err (!%p7392_p4)
}
  0xaa   :  { %s7396_s22 = scalar_lea.vmem %s7636_s3, 28672  ;;  %p7401_p6 = scmp.lt.s32.totalorder %s7636_s3, %s7636_s3 }
  0xab   :  { %p7397_p5 = scmp.ne.s32.totalorder %s7636_s3, %s7396_s22  ;;  %p7402_p7 = scmp.lt.s32.totalorder %s7396_s22, %s7396_s22 }
  0xad   :  { %p7403_p8 = por %p7402_p7, %p7401_p6 }
  0xaf   :  { %p7404_p9 = pnand %p7403_p8, %p7397_p5 }
  0xb1   :  { %7407 = shalt.err (!%p7404_p9)
}
  0xb2   :  { %s7436_s13 = smov 448   ;;  %s7437_s11 = smov 28  }
  0xb3   :  { %151 = dma.hbm_to_vmem [thread:$0]  %s7928_s15, 28672, %s7636_s3, [#allocation17], %s7436_s13, %s7436_s13, %s7437_s11  }
  0xb4   :  { %7408 = dma.done.wait [#allocation3], 28672  }
  0xb5   :  { %7409 = vsyncadd [#allocation3], 4294938624 }
  0xb6   :  { %7410 = dma.done.wait [#allocation5], 8256  }
  0xb7   :  { %7411 = vsyncadd [#allocation5], 4294959040 }
  0xb8   :  { %7412 = dma.done.wait [#allocation8], 48  }
  0xb9   :  { %7413 = vsyncadd [#allocation8], 4294967248 }
  0xba   :  { %7414 = dma.done.wait [#allocation11], 1040  }
  0xbb   :  { %7415 = vsyncadd [#allocation11], 4294966256 }
  0xbc   :  { %7416 = dma.done.wait [#allocation14], 10240  }
  0xbd   :  { %7417 = vsyncadd [#allocation14], 4294957056 }
  0xbe   :  { %7418 = dma.done.wait [#allocation17], 28672  }
  0xbf   :  { %7419 = vsyncadd [#allocation17], 4294938624  ;;  %v7438_v0 = vmov 0   ;;  %v6273_v1 = vld [vmem:[#allocation2 + $0x4] ss:$16 sps:$4 sm:$0xff]   ;;  %s7936_s1 = sld [smem:[#allocation24_spill]] }
  0xc0   :  { %1756 = vmatprep.mubr.bf16.mxu1 %v7438_v0  ;;  %v6275_v2 = vld [vmem:[#allocation2 + $0x604] ss:$16 sps:$4 sm:$0xff]   ;;  %1595 = vmatprep.subr.bf16.mxu0 %v6273_v1  ;;  %v6277_v3 = vld [vmem:[#allocation2] ss:$16 sps:$4 sm:$0xff]   ;;  %v6326_v34 = vld [vmem:[#allocation2 + $0xc] ss:$16 sps:$4 sm:$0xff]  }
  0xc1   :  { %v6278_v4 = vld [vmem:[#allocation2 + $0x600] ss:$16 sps:$4 sm:$0xff]   ;;  %1724 = vmatprep.subr.bf16.mxu1 %v6275_v2  ;;  %v6279_v5 = vld [vmem:[#allocation2 + $0x24] ss:$16 sps:$4 sm:$0xff]   ;;  %1596 = vmatpush1.bf16.msra.mxu0 %v6277_v3  ;;  %v6324_v36 = vld [vmem:[#allocation2 + $0x8] ss:$16 sps:$4 sm:$0xff]  }
  0xc2   :  { %1725 = vmatpush1.bf16.msra.mxu1 %v6278_v4  ;;  %v6281_v6 = vld [vmem:[#allocation2 + $0x624] ss:$16 sps:$4 sm:$0xff]   ;;  %v6283_v7 = vld [vmem:[#allocation2 + $0x20] ss:$16 sps:$4 sm:$0xff]   ;;  %1597 = vmatprep.subr.bf16.mxu0 %v6279_v5  ;;  %v6332_v39 = vld [vmem:[#allocation2 + $0x2c] ss:$16 sps:$4 sm:$0xff]  }
  0xc3   :  { %v6284_v8 = vld [vmem:[#allocation2 + $0x620] ss:$16 sps:$4 sm:$0xff]   ;;  %1726 = vmatprep.subr.bf16.mxu1 %v6281_v6  ;;  %v6285_v9 = vld [vmem:[#allocation2 + $0x44] ss:$16 sps:$4 sm:$0xff]   ;;  %v6330_v40 = vld [vmem:[#allocation2 + $0x28] ss:$16 sps:$4 sm:$0xff]  }
  0xc4   :  { %v6287_v10 = vld [vmem:[#allocation2 + $0x644] ss:$16 sps:$4 sm:$0xff]   ;;  %v6289_v11 = vld [vmem:[#allocation2 + $0x40] ss:$16 sps:$4 sm:$0xff]   ;;  %v6338_v43 = vld [vmem:[#allocation2 + $0x4c] ss:$16 sps:$4 sm:$0xff]  }
  0xc5   :  { %v6290_v12 = vld [vmem:[#allocation2 + $0x640] ss:$16 sps:$4 sm:$0xff]   ;;  %1598 = vmatpush1.bf16.msra.mxu0 %v6283_v7  ;;  %v6291_v13 = vld [vmem:[#allocation2 + $0x64] ss:$16 sps:$4 sm:$0xff]   ;;  %v6336_v44 = vld [vmem:[#allocation2 + $0x48] ss:$16 sps:$4 sm:$0xff]  }
  0xc6   :  { %1727 = vmatpush1.bf16.msra.mxu1 %v6284_v8  ;;  %1599 = vmatprep.subr.bf16.mxu0 %v6285_v9  ;;  %v6293_v14 = vld [vmem:[#allocation2 + $0x664] ss:$16 sps:$4 sm:$0xff]   ;;  %v6295_v15 = vld [vmem:[#allocation2 + $0x60] ss:$16 sps:$4 sm:$0xff]   ;;  %v6344_v47 = vld [vmem:[#allocation2 + $0x6c] ss:$16 sps:$4 sm:$0xff]  }
  0xc7   :  { %1728 = vmatprep.subr.bf16.mxu1 %v6287_v10  ;;  %v6296_v16 = vld [vmem:[#allocation2 + $0x660] ss:$16 sps:$4 sm:$0xff]   ;;  %v6297_v17 = vld [vmem:[#allocation2 + $0x84] ss:$16 sps:$4 sm:$0xff]   ;;  %v6342_v48 = vld [vmem:[#allocation2 + $0x68] ss:$16 sps:$4 sm:$0xff]  }
  0xc8   :  { %v6299_v18 = vld [vmem:[#allocation2 + $0x684] ss:$16 sps:$4 sm:$0xff]   ;;  %v6301_v19 = vld [vmem:[#allocation2 + $0x80] ss:$16 sps:$4 sm:$0xff]   ;;  %v6350_v52 = vld [vmem:[#allocation2 + $0x8c] ss:$16 sps:$4 sm:$0xff]  }
  0xc9   :  { %1600 = vmatpush1.bf16.msra.mxu0 %v6289_v11  ;;  %v6302_v20 = vld [vmem:[#allocation2 + $0x680] ss:$16 sps:$4 sm:$0xff]   ;;  %v6303_v21 = vld [vmem:[#allocation2 + $0xa4] ss:$16 sps:$4 sm:$0xff]   ;;  %v6348_v53 = vld [vmem:[#allocation2 + $0x88] ss:$16 sps:$4 sm:$0xff]  }
  0xca   :  { %1729 = vmatpush1.bf16.msra.mxu1 %v6290_v12  ;;  %1601 = vmatprep.subr.bf16.mxu0 %v6291_v13  ;;  %v6305_v22 = vld [vmem:[#allocation2 + $0x6a4] ss:$16 sps:$4 sm:$0xff]   ;;  %v6307_v23 = vld [vmem:[#allocation2 + $0xa0] ss:$16 sps:$4 sm:$0xff]   ;;  %v6356_v56 = vld [vmem:[#allocation2 + $0xac] ss:$16 sps:$4 sm:$0xff]  }
  0xcb   :  { %1730 = vmatprep.subr.bf16.mxu1 %v6293_v14  ;;  %v6308_v24 = vld [vmem:[#allocation2 + $0x6a0] ss:$16 sps:$4 sm:$0xff]   ;;  %v6309_v25 = vld [vmem:[#allocation2 + $0xc4] ss:$16 sps:$4 sm:$0xff]   ;;  %v6354_v57 = vld [vmem:[#allocation2 + $0xa8] ss:$16 sps:$4 sm:$0xff]  }
  0xcc   :  { %v6311_v26 = vld [vmem:[#allocation2 + $0x6c4] ss:$16 sps:$4 sm:$0xff]   ;;  %v6313_v27 = vld [vmem:[#allocation2 + $0xc0] ss:$16 sps:$4 sm:$0xff]   ;;  %v6362_v60 = vld [vmem:[#allocation2 + $0xcc] ss:$16 sps:$4 sm:$0xff]  }
  0xcd   :  { %1602 = vmatpush1.bf16.msra.mxu0 %v6295_v15  ;;  %v6314_v28 = vld [vmem:[#allocation2 + $0x6c0] ss:$16 sps:$4 sm:$0xff]   ;;  %v6315_v29 = vld [vmem:[#allocation2 + $0xe4] ss:$16 sps:$4 sm:$0xff]   ;;  %v6360_v61 = vld [vmem:[#allocation2 + $0xc8] ss:$16 sps:$4 sm:$0xff]  }
  0xce   :  { %1731 = vmatpush1.bf16.msra.mxu1 %v6296_v16  ;;  %1603 = vmatprep.subr.bf16.mxu0 %v6297_v17  ;;  %v6317_v30 = vld [vmem:[#allocation2 + $0x6e4] ss:$16 sps:$4 sm:$0xff]   ;;  %v6319_v31 = vld [vmem:[#allocation2 + $0xe0] ss:$16 sps:$4 sm:$0xff]   ;;  %v6368_v1 = vld [vmem:[#allocation2 + $0xec] ss:$16 sps:$4 sm:$0xff]  }
  0xcf   :  { %1732 = vmatprep.subr.bf16.mxu1 %v6299_v18  ;;  %v6320_v32 = vld [vmem:[#allocation2 + $0x6e0] ss:$16 sps:$4 sm:$0xff]   ;;  %v6321_v33 = vld [vmem:[#allocation2 + $0x104] ss:$16 sps:$4 sm:$0xff]   ;;  %v6366_v2 = vld [vmem:[#allocation2 + $0xe8] ss:$16 sps:$4 sm:$0xff]  }
  0xd0   :  { %v6323_v35 = vld [vmem:[%s7936_s1 + $0x18] ss:$28 sps:$4 sm:$0xff]   ;;  %v6327_v37 = vld [vmem:[#allocation2 + $0x100] ss:$16 sps:$4 sm:$0xff]   ;;  %v6378_v5 = vld [vmem:[#allocation2 + $0x10c] ss:$16 sps:$4 sm:$0xff]  }
  0xd1   :  { %1604 = vmatpush1.bf16.msra.mxu0 %v6301_v19  ;;  %v6328_v38 = vld [vmem:[#allocation2 + $0x124] ss:$16 sps:$4 sm:$0xff]   ;;  %v6333_v41 = vld [vmem:[#allocation2 + $0x120] ss:$16 sps:$4 sm:$0xff]   ;;  %v6376_v8 = vld [vmem:[#allocation2 + $0x108] ss:$16 sps:$4 sm:$0xff]  }
  0xd2   :  { %1733 = vmatpush1.bf16.msra.mxu1 %v6302_v20  ;;  %1605 = vmatprep.subr.bf16.mxu0 %v6303_v21  ;;  %v6334_v42 = vld [vmem:[#allocation2 + $0x144] ss:$16 sps:$4 sm:$0xff]   ;;  %v6339_v45 = vld [vmem:[#allocation2 + $0x140] ss:$16 sps:$4 sm:$0xff]   ;;  %v6384_v10 = vld [vmem:[#allocation2 + $0x12c] ss:$16 sps:$4 sm:$0xff]  }
  0xd3   :  { %1734 = vmatprep.subr.bf16.mxu1 %v6305_v22  ;;  %v6340_v46 = vld [vmem:[#allocation2 + $0x164] ss:$16 sps:$4 sm:$0xff]   ;;  %v6345_v49 = vld [vmem:[#allocation2 + $0x160] ss:$16 sps:$4 sm:$0xff]   ;;  %v6382_v12 = vld [vmem:[#allocation2 + $0x128] ss:$16 sps:$4 sm:$0xff]  }
  0xd4   :  { %v6346_v50 = vld [vmem:[#allocation2 + $0x184] ss:$16 sps:$4 sm:$0xff]   ;;  %v6351_v54 = vld [vmem:[#allocation2 + $0x180] ss:$16 sps:$4 sm:$0xff]   ;;  %v6390_v14 = vld [vmem:[#allocation2 + $0x14c] ss:$16 sps:$4 sm:$0xff]  }
  0xd5   :  { %1606 = vmatpush1.bf16.msra.mxu0 %v6307_v23  ;;  %v6372_v51 = vld [vmem:[%s7936_s1 + $0x4] ss:$28 sps:$4 sm:$0xff]   ;;  %v6388_v16 = vld [vmem:[#allocation2 + $0x148] ss:$16 sps:$4 sm:$0xff]   ;;  %v6396_v18 = vld [vmem:[#allocation2 + $0x16c] ss:$16 sps:$4 sm:$0xff]  }
  0xd6   :  { %1735 = vmatpush1.bf16.msra.mxu1 %v6308_v24  ;;  %1607 = vmatprep.subr.bf16.mxu0 %v6309_v25  ;;  %v6352_v55 = vld [vmem:[#allocation2 + $0x1a4] ss:$16 sps:$4 sm:$0xff]   ;;  %v6357_v58 = vld [vmem:[#allocation2 + $0x1a0] ss:$16 sps:$4 sm:$0xff]   ;;  %v6394_v20 = vld [vmem:[#allocation2 + $0x168] ss:$16 sps:$4 sm:$0xff]  }
  0xd7   :  { %1736 = vmatprep.subr.bf16.mxu1 %v6311_v26  ;;  %1627 = vmatprep.mubr.bf16.mxu0 %v6372_v51  ;;  %v6358_v59 = vld [vmem:[#allocation2 + $0x1c4] ss:$16 sps:$4 sm:$0xff]   ;;  %v6363_v62 = vld [vmem:[#allocation2 + $0x1c0] ss:$16 sps:$4 sm:$0xff]   ;;  %v6402_v22 = vld [vmem:[#allocation2 + $0x18c] ss:$16 sps:$4 sm:$0xff]  }
  0xd8   :  { %v6364_v63 = vld [vmem:[#allocation2 + $0x1e4] ss:$16 sps:$4 sm:$0xff]   ;;  %v6369_v3 = vld [vmem:[#allocation2 + $0x1e0] ss:$16 sps:$4 sm:$0xff]   ;;  %v6400_v24 = vld [vmem:[#allocation2 + $0x188] ss:$16 sps:$4 sm:$0xff]  }
  0xd9   :  { %1608 = vmatpush1.bf16.msra.mxu0 %v6313_v27  ;;  %v6375_v4 = vld [vmem:[#allocation2 + $0x204] ss:$16 sps:$4 sm:$0xff]   ;;  %v7680_v6 = vld [vmem:[%s7936_s1] ss:$28 sps:$4 sm:$0xff]   ;;  %vm7440_vm0 = vmmov 0  }
  0xda   :  { %1737 = vmatpush1.bf16.msra.mxu1 %v6314_v28  ;;  %1609 = vmatprep.subr.bf16.mxu0 %v6315_v29  ;;  %v6373_v7 = vld [vmem:[#allocation2 + $0x200] ss:$16 sps:$4 sm:$0xff]   ;;  %v6381_v9 = vld [vmem:[#allocation2 + $0x224] ss:$16 sps:$4 sm:$0xff]   ;;  %v6408_v26 = vld [vmem:[#allocation2 + $0x1ac] ss:$16 sps:$4 sm:$0xff]  }
  0xdb   :  { %1738 = vmatprep.subr.bf16.mxu1 %v6317_v30  ;;  %v6379_v11 = vld [vmem:[#allocation2 + $0x220] ss:$16 sps:$4 sm:$0xff]   ;;  %v6387_v13 = vld [vmem:[#allocation2 + $0x244] ss:$16 sps:$4 sm:$0xff]   ;;  %v6406_v28 = vld [vmem:[#allocation2 + $0x1a8] ss:$16 sps:$4 sm:$0xff]  }
  0xdc   :  { %v6385_v15 = vld [vmem:[#allocation2 + $0x240] ss:$16 sps:$4 sm:$0xff]   ;;  %v6393_v17 = vld [vmem:[#allocation2 + $0x264] ss:$16 sps:$4 sm:$0xff]   ;;  %v6414_v30 = vld [vmem:[#allocation2 + $0x1cc] ss:$16 sps:$4 sm:$0xff]  }
  0xdd   :  { %1610 = vmatpush1.bf16.msra.mxu0 %v6319_v31  ;;  %v6391_v19 = vld [vmem:[#allocation2 + $0x260] ss:$16 sps:$4 sm:$0xff]   ;;  %v6399_v21 = vld [vmem:[#allocation2 + $0x284] ss:$16 sps:$4 sm:$0xff]  }
  0xde   :  { %1739 = vmatpush1.bf16.msra.mxu1 %v6320_v32  ;;  %1611 = vmatprep.subr.bf16.mxu0 %v6321_v33  ;;  %v6397_v23 = vld [vmem:[#allocation2 + $0x280] ss:$16 sps:$4 sm:$0xff]   ;;  %v6405_v25 = vld [vmem:[#allocation2 + $0x2a4] ss:$16 sps:$4 sm:$0xff]   ;;  %v6412_v32 = vld [vmem:[#allocation2 + $0x1c8] ss:$16 sps:$4 sm:$0xff]  }
  0xdf   :  { %1767 = vmatprep.subr.bf16.mxu1 %v6326_v34  ;;  %v6403_v27 = vld [vmem:[#allocation2 + $0x2a0] ss:$16 sps:$4 sm:$0xff]   ;;  %v6411_v29 = vld [vmem:[#allocation2 + $0x2c4] ss:$16 sps:$4 sm:$0xff]   ;;  %v6471_v34 = vld [vmem:[%s7936_s1 + $0xc] ss:$28 sps:$4 sm:$0xff]  }
  0xe0   :  { %v6409_v31 = vld [vmem:[#allocation2 + $0x2c0] ss:$16 sps:$4 sm:$0xff]   ;;  %v6417_v33 = vld [vmem:[#allocation2 + $0x2e4] ss:$16 sps:$4 sm:$0xff]  }
  0xe1   :  { %1757 = vmatmul.mubr.bf16.vlgmr.msra.gmra.mrb[0].mxu1 %v6323_v35  ;;  %1612 = vmatpush1.bf16.msra.mxu0 %v6327_v37  ;;  %v6420_v35 = vld [vmem:[#allocation2 + $0x1ec] ss:$16 sps:$4 sm:$0xff]   ;;  %v6418_v37 = vld [vmem:[#allocation2 + $0x1e8] ss:$16 sps:$4 sm:$0xff]  }
  0xe2   :  { %1768 = vmatpush1.bf16.msra.mxu1 %v6324_v36  ;;  %1613 = vmatprep.subr.bf16.mxu0 %v6328_v38  ;;  %v6415_v36 = vld [vmem:[#allocation2 + $0x2e0] ss:$16 sps:$4 sm:$0xff]   ;;  %v6423_v38 = vld [vmem:[#allocation2 + $0x304] ss:$16 sps:$4 sm:$0xff]  }
  0xe3   :  { %1769 = vmatprep.subr.bf16.mxu1 %v6332_v39  ;;  %1799 = vmatprep.mubr.bf16.mxu1 %v6372_v51  ;;  %v6426_v39 = vld [vmem:[#allocation2 + $0x20c] ss:$16 sps:$4 sm:$0xff]  }
  0xe4   :  { %v6444_v51 = vld [vmem:[#allocation2 + $0x26c] ss:$16 sps:$4 sm:$0xff]  }
  0xe5   :  { %1614 = vmatpush1.bf16.msra.mxu0 %v6333_v41  ;;  %v6424_v41 = vld [vmem:[#allocation2 + $0x208] ss:$16 sps:$4 sm:$0xff]  }
  0xe6   :  { %1770 = vmatpush1.bf16.msra.mxu1 %v6330_v40  ;;  %1615 = vmatprep.subr.bf16.mxu0 %v6334_v42  ;;  %v6421_v40 = vld [vmem:[#allocation2 + $0x300] ss:$16 sps:$4 sm:$0xff]   ;;  %v6429_v42 = vld [vmem:[#allocation2 + $0x324] ss:$16 sps:$4 sm:$0xff]  }
  0xe7   :  { %1771 = vmatprep.subr.bf16.mxu1 %v6338_v43  ;;  %v6432_v43 = vld [vmem:[#allocation2 + $0x22c] ss:$16 sps:$4 sm:$0xff]  }
  0xe9   :  { %1616 = vmatpush1.bf16.msra.mxu0 %v6339_v45  ;;  %v6430_v45 = vld [vmem:[#allocation2 + $0x228] ss:$16 sps:$4 sm:$0xff]  }
  0xea   :  { %1772 = vmatpush1.bf16.msra.mxu1 %v6336_v44  ;;  %1617 = vmatprep.subr.bf16.mxu0 %v6340_v46  ;;  %v6427_v44 = vld [vmem:[#allocation2 + $0x320] ss:$16 sps:$4 sm:$0xff]   ;;  %v6435_v46 = vld [vmem:[#allocation2 + $0x344] ss:$16 sps:$4 sm:$0xff]  }
  0xeb   :  { %1773 = vmatprep.subr.bf16.mxu1 %v6344_v47  ;;  %v6438_v47 = vld [vmem:[#allocation2 + $0x24c] ss:$16 sps:$4 sm:$0xff]  }
  0xed   :  { %1618 = vmatpush1.bf16.msra.mxu0 %v6345_v49  ;;  %v6436_v49 = vld [vmem:[#allocation2 + $0x248] ss:$16 sps:$4 sm:$0xff]  }
  0xee   :  { %1774 = vmatpush1.bf16.msra.mxu1 %v6342_v48  ;;  %1619 = vmatprep.subr.bf16.mxu0 %v6346_v50  ;;  %v6433_v48 = vld [vmem:[#allocation2 + $0x340] ss:$16 sps:$4 sm:$0xff]   ;;  %v6441_v50 = vld [vmem:[#allocation2 + $0x364] ss:$16 sps:$4 sm:$0xff]  }
  0xef   :  { %1775 = vmatprep.subr.bf16.mxu1 %v6350_v52  ;;  %v6439_v52 = vld [vmem:[#allocation2 + $0x360] ss:$16 sps:$4 sm:$0xff]  }
  0xf1   :  { %1620 = vmatpush1.bf16.msra.mxu0 %v6351_v54  ;;  %v6447_v54 = vld [vmem:[#allocation2 + $0x384] ss:$16 sps:$4 sm:$0xff]  }
  0xf2   :  { %1776 = vmatpush1.bf16.msra.mxu1 %v6348_v53  ;;  %1621 = vmatprep.subr.bf16.mxu0 %v6352_v55  ;;  %v6442_v53 = vld [vmem:[#allocation2 + $0x268] ss:$16 sps:$4 sm:$0xff]   ;;  %v6450_v55 = vld [vmem:[#allocation2 + $0x28c] ss:$16 sps:$4 sm:$0xff]  }
  0xf3   :  { %1777 = vmatprep.subr.bf16.mxu1 %v6356_v56  ;;  %v6445_v56 = vld [vmem:[#allocation2 + $0x380] ss:$16 sps:$4 sm:$0xff]  }
  0xf5   :  { %1622 = vmatpush1.bf16.msra.mxu0 %v6357_v58  ;;  %v6453_v58 = vld [vmem:[#allocation2 + $0x3a4] ss:$16 sps:$4 sm:$0xff]  }
  0xf6   :  { %1778 = vmatpush1.bf16.msra.mxu1 %v6354_v57  ;;  %1623 = vmatprep.subr.bf16.mxu0 %v6358_v59  ;;  %v6448_v57 = vld [vmem:[#allocation2 + $0x288] ss:$16 sps:$4 sm:$0xff]   ;;  %v6456_v59 = vld [vmem:[#allocation2 + $0x2ac] ss:$16 sps:$4 sm:$0xff]  }
  0xf7   :  { %1779 = vmatprep.subr.bf16.mxu1 %v6362_v60  ;;  %v6451_v60 = vld [vmem:[#allocation2 + $0x3a0] ss:$16 sps:$4 sm:$0xff]  }
  0xf9   :  { %1624 = vmatpush1.bf16.msra.mxu0 %v6363_v62  ;;  %v6459_v62 = vld [vmem:[#allocation2 + $0x3c4] ss:$16 sps:$4 sm:$0xff]  }
  0xfa   :  { %1780 = vmatpush1.bf16.msra.mxu1 %v6360_v61  ;;  %1625 = vmatprep.subr.bf16.mxu0 %v6364_v63  ;;  %v6454_v61 = vld [vmem:[#allocation2 + $0x2a8] ss:$16 sps:$4 sm:$0xff]   ;;  %v6462_v63 = vld [vmem:[#allocation2 + $0x2cc] ss:$16 sps:$4 sm:$0xff]  }
  0xfb   :  { %1781 = vmatprep.subr.bf16.mxu1 %v6368_v1  ;;  %v6457_v1 = vld [vmem:[#allocation2 + $0x3c0] ss:$16 sps:$4 sm:$0xff]  }
  0xfd   :  { %1626 = vmatpush1.bf16.msra.mxu0 %v6369_v3  ;;  %v6465_v3 = vld [vmem:[#allocation2 + $0x3e4] ss:$16 sps:$4 sm:$0xff]  }
  0xfe   :  { %1782 = vmatpush1.bf16.msra.mxu1 %v6366_v2  ;;  %1638 = vmatprep.subr.bf16.mxu0 %v6375_v4  ;;  %v6460_v2 = vld [vmem:[#allocation2 + $0x2c8] ss:$16 sps:$4 sm:$0xff]   ;;  %v6468_v4 = vld [vmem:[#allocation2 + $0x2ec] ss:$16 sps:$4 sm:$0xff]  }
  0xff   :  { %1783 = vmatprep.subr.bf16.mxu1 %v6378_v5  ;;  %v6463_v5 = vld [vmem:[#allocation2 + $0x3e0] ss:$16 sps:$4 sm:$0xff]  }
 0x100   :  { %1628 = vmatmul.mubr.bf16.vlgmr.msra.gmra.mrb[0].mxu0 %v7680_v6 }
 0x101   :  { %1639 = vmatpush1.bf16.msra.mxu0 %v6373_v7  ;;  %1670 = vmatprep.mubr.bf16.mxu0 %v6471_v34  ;;  %v6474_v7 = vld [vmem:[#allocation2 + $0x404] ss:$16 sps:$4 sm:$0xff]  }
 0x102   :  { %1784 = vmatpush1.bf16.msra.mxu1 %v6376_v8  ;;  %1640 = vmatprep.subr.bf16.mxu0 %v6381_v9  ;;  %v6477_v8 = vld [vmem:[#allocation2 + $0x30c] ss:$16 sps:$4 sm:$0xff]   ;;  %v7690_v9 = vld [vmem:[%s7936_s1 + $0x8] ss:$28 sps:$4 sm:$0xff]  }
 0x103   :  { %1785 = vmatprep.subr.bf16.mxu1 %v6384_v10  ;;  %v6472_v10 = vld [vmem:[#allocation2 + $0x400] ss:$16 sps:$4 sm:$0xff]  }
 0x105   :  { %1641 = vmatpush1.bf16.msra.mxu0 %v6379_v11  ;;  %v6475_v11 = vld [vmem:[#allocation2 + $0x308] ss:$16 sps:$4 sm:$0xff]  }
 0x106   :  { %1786 = vmatpush1.bf16.msra.mxu1 %v6382_v12  ;;  %1642 = vmatprep.subr.bf16.mxu0 %v6387_v13  ;;  %v6480_v12 = vld [vmem:[#allocation2 + $0x424] ss:$16 sps:$4 sm:$0xff]   ;;  %v6483_v13 = vld [vmem:[#allocation2 + $0x32c] ss:$16 sps:$4 sm:$0xff]  }
 0x107   :  { %1787 = vmatprep.subr.bf16.mxu1 %v6390_v14  ;;  %v6478_v14 = vld [vmem:[#allocation2 + $0x420] ss:$16 sps:$4 sm:$0xff]  }
 0x109   :  { %1643 = vmatpush1.bf16.msra.mxu0 %v6385_v15  ;;  %v6481_v15 = vld [vmem:[#allocation2 + $0x328] ss:$16 sps:$4 sm:$0xff]  }
 0x10a   :  { %1788 = vmatpush1.bf16.msra.mxu1 %v6388_v16  ;;  %1644 = vmatprep.subr.bf16.mxu0 %v6393_v17  ;;  %v6486_v16 = vld [vmem:[#allocation2 + $0x444] ss:$16 sps:$4 sm:$0xff]  }
 0x10b   :  { %1789 = vmatprep.subr.bf16.mxu1 %v6396_v18  ;;  %v7696_v17 = vld [vmem:[%s7936_s1 + $0x14] ss:$28 sps:$4 sm:$0xff]   ;;  %v6489_v18 = vld [vmem:[#allocation2 + $0x34c] ss:$16 sps:$4 sm:$0xff]  }
 0x10d   :  { %1645 = vmatpush1.bf16.msra.mxu0 %v6391_v19  ;;  %v6484_v19 = vld [vmem:[#allocation2 + $0x440] ss:$16 sps:$4 sm:$0xff]  }
 0x10e   :  { %1790 = vmatpush1.bf16.msra.mxu1 %v6394_v20  ;;  %1646 = vmatprep.subr.bf16.mxu0 %v6399_v21  ;;  %v6487_v20 = vld [vmem:[#allocation2 + $0x348] ss:$16 sps:$4 sm:$0xff]   ;;  %v6492_v21 = vld [vmem:[#allocation2 + $0x464] ss:$16 sps:$4 sm:$0xff]  }
 0x10f   :  { %1791 = vmatprep.subr.bf16.mxu1 %v6402_v22  ;;  %v6495_v22 = vld [vmem:[#allocation2 + $0x36c] ss:$16 sps:$4 sm:$0xff]  }
 0x111   :  { %1647 = vmatpush1.bf16.msra.mxu0 %v6397_v23  ;;  %v6490_v23 = vld [vmem:[#allocation2 + $0x460] ss:$16 sps:$4 sm:$0xff]  }
 0x112   :  { %1792 = vmatpush1.bf16.msra.mxu1 %v6400_v24  ;;  %1648 = vmatprep.subr.bf16.mxu0 %v6405_v25  ;;  %v6493_v24 = vld [vmem:[#allocation2 + $0x368] ss:$16 sps:$4 sm:$0xff]   ;;  %v6498_v25 = vld [vmem:[#allocation2 + $0x484] ss:$16 sps:$4 sm:$0xff]  }
 0x113   :  { %1793 = vmatprep.subr.bf16.mxu1 %v6408_v26  ;;  %v6501_v26 = vld [vmem:[#allocation2 + $0x38c] ss:$16 sps:$4 sm:$0xff]  }
 0x115   :  { %1649 = vmatpush1.bf16.msra.mxu0 %v6403_v27  ;;  %v6496_v27 = vld [vmem:[#allocation2 + $0x480] ss:$16 sps:$4 sm:$0xff]  }
 0x116   :  { %1794 = vmatpush1.bf16.msra.mxu1 %v6406_v28  ;;  %1650 = vmatprep.subr.bf16.mxu0 %v6411_v29  ;;  %v6499_v28 = vld [vmem:[#allocation2 + $0x388] ss:$16 sps:$4 sm:$0xff]   ;;  %v6504_v29 = vld [vmem:[#allocation2 + $0x4a4] ss:$16 sps:$4 sm:$0xff]  }
 0x117   :  { %1795 = vmatprep.subr.bf16.mxu1 %v6414_v30  ;;  %v6507_v30 = vld [vmem:[#allocation2 + $0x3ac] ss:$16 sps:$4 sm:$0xff]  }
 0x119   :  { %1651 = vmatpush1.bf16.msra.mxu0 %v6409_v31  ;;  %v6502_v31 = vld [vmem:[#allocation2 + $0x4a0] ss:$16 sps:$4 sm:$0xff]  }
 0x11a   :  { %1796 = vmatpush1.bf16.msra.mxu1 %v6412_v32  ;;  %1652 = vmatprep.subr.bf16.mxu0 %v6417_v33  ;;  %v6505_v32 = vld [vmem:[#allocation2 + $0x3a8] ss:$16 sps:$4 sm:$0xff]   ;;  %v6510_v33 = vld [vmem:[#allocation2 + $0x4c4] ss:$16 sps:$4 sm:$0xff]  }
 0x11b   :  { %1797 = vmatprep.subr.bf16.mxu1 %v6420_v35  ;;  %v6508_v35 = vld [vmem:[#allocation2 + $0x4c0] ss:$16 sps:$4 sm:$0xff]  }
 0x11d   :  { %1653 = vmatpush1.bf16.msra.mxu0 %v6415_v36  ;;  %v6511_v36 = vld [vmem:[#allocation2 + $0x3c8] ss:$16 sps:$4 sm:$0xff]  }
 0x11e   :  { %1798 = vmatpush1.bf16.msra.mxu1 %v6418_v37  ;;  %1654 = vmatprep.subr.bf16.mxu0 %v6423_v38  ;;  %v6516_v37 = vld [vmem:[#allocation2 + $0x4e4] ss:$16 sps:$4 sm:$0xff]   ;;  %v6519_v38 = vld [vmem:[#allocation2 + $0x3ec] ss:$16 sps:$4 sm:$0xff]  }
 0x11f   :  { %1810 = vmatprep.subr.bf16.mxu1 %v6426_v39  ;;  %v6514_v39 = vld [vmem:[#allocation2 + $0x4e0] ss:$16 sps:$4 sm:$0xff]  }
 0x121   :  { %1800 = vmatmul.mubr.bf16.vlgmr.msra.gmra.mrb[4].mxu1 %v7680_v6  ;;  %1655 = vmatpush1.bf16.msra.mxu0 %v6421_v40  ;;  %v6466_v6 = vld [vmem:[#allocation2 + $0x2e8] ss:$16 sps:$4 sm:$0xff]  }
 0x122   :  { %1811 = vmatpush1.bf16.msra.mxu1 %v6424_v41  ;;  %1656 = vmatprep.subr.bf16.mxu0 %v6429_v42  ;;  %v6517_v40 = vld [vmem:[#allocation2 + $0x3e8] ss:$16 sps:$4 sm:$0xff]   ;;  %v6522_v41 = vld [vmem:[#allocation2 + $0x504] ss:$16 sps:$4 sm:$0xff]   ;;  %v6525_v42 = vld [vmem:[#allocation2 + $0x40c] ss:$16 sps:$4 sm:$0xff]  }
 0x123   :  { %1812 = vmatprep.subr.bf16.mxu1 %v6432_v43  ;;  %1842 = vmatprep.mubr.bf16.mxu1 %v6471_v34  ;;  %v6513_v34 = vld [vmem:[#allocation2 + $0x3cc] ss:$16 sps:$4 sm:$0xff]   ;;  %v6520_v43 = vld [vmem:[#allocation2 + $0x500] ss:$16 sps:$4 sm:$0xff]  }
 0x125   :  { %1657 = vmatpush1.bf16.msra.mxu0 %v6427_v44  ;;  %v6523_v44 = vld [vmem:[#allocation2 + $0x408] ss:$16 sps:$4 sm:$0xff]  }
 0x126   :  { %1813 = vmatpush1.bf16.msra.mxu1 %v6430_v45  ;;  %1658 = vmatprep.subr.bf16.mxu0 %v6435_v46  ;;  %v6528_v45 = vld [vmem:[#allocation2 + $0x524] ss:$16 sps:$4 sm:$0xff]   ;;  %v6531_v46 = vld [vmem:[#allocation2 + $0x42c] ss:$16 sps:$4 sm:$0xff]  }
 0x127   :  { %1814 = vmatprep.subr.bf16.mxu1 %v6438_v47  ;;  %v6526_v47 = vld [vmem:[#allocation2 + $0x520] ss:$16 sps:$4 sm:$0xff]  }
 0x129   :  { %1659 = vmatpush1.bf16.msra.mxu0 %v6433_v48  ;;  %v6529_v48 = vld [vmem:[#allocation2 + $0x428] ss:$16 sps:$4 sm:$0xff]  }
 0x12a   :  { %1815 = vmatpush1.bf16.msra.mxu1 %v6436_v49  ;;  %1660 = vmatprep.subr.bf16.mxu0 %v6441_v50  ;;  %v6534_v49 = vld [vmem:[#allocation2 + $0x544] ss:$16 sps:$4 sm:$0xff]   ;;  %v6537_v50 = vld [vmem:[#allocation2 + $0x44c] ss:$16 sps:$4 sm:$0xff]  }
 0x12b   :  { %1816 = vmatprep.subr.bf16.mxu1 %v6444_v51  ;;  %v6532_v51 = vld [vmem:[#allocation2 + $0x540] ss:$16 sps:$4 sm:$0xff]  }
 0x12d   :  { %1661 = vmatpush1.bf16.msra.mxu0 %v6439_v52  ;;  %v6535_v52 = vld [vmem:[#allocation2 + $0x448] ss:$16 sps:$4 sm:$0xff]  }
 0x12e   :  { %1817 = vmatpush1.bf16.msra.mxu1 %v6442_v53  ;;  %1662 = vmatprep.subr.bf16.mxu0 %v6447_v54  ;;  %v6540_v53 = vld [vmem:[#allocation2 + $0x564] ss:$16 sps:$4 sm:$0xff]   ;;  %v6543_v54 = vld [vmem:[#allocation2 + $0x46c] ss:$16 sps:$4 sm:$0xff]  }
 0x12f   :  { %1818 = vmatprep.subr.bf16.mxu1 %v6450_v55  ;;  %v6538_v55 = vld [vmem:[#allocation2 + $0x560] ss:$16 sps:$4 sm:$0xff]  }
 0x131   :  { %1663 = vmatpush1.bf16.msra.mxu0 %v6445_v56  ;;  %v6541_v56 = vld [vmem:[#allocation2 + $0x468] ss:$16 sps:$4 sm:$0xff]  }
 0x132   :  { %1819 = vmatpush1.bf16.msra.mxu1 %v6448_v57  ;;  %1664 = vmatprep.subr.bf16.mxu0 %v6453_v58  ;;  %v6546_v57 = vld [vmem:[#allocation2 + $0x584] ss:$16 sps:$4 sm:$0xff]   ;;  %v6549_v58 = vld [vmem:[#allocation2 + $0x48c] ss:$16 sps:$4 sm:$0xff]  }
 0x133   :  { %1820 = vmatprep.subr.bf16.mxu1 %v6456_v59  ;;  %v6544_v59 = vld [vmem:[#allocation2 + $0x580] ss:$16 sps:$4 sm:$0xff]  }
 0x135   :  { %1665 = vmatpush1.bf16.msra.mxu0 %v6451_v60  ;;  %v6547_v60 = vld [vmem:[#allocation2 + $0x488] ss:$16 sps:$4 sm:$0xff]  }
 0x136   :  { %1821 = vmatpush1.bf16.msra.mxu1 %v6454_v61  ;;  %1666 = vmatprep.subr.bf16.mxu0 %v6459_v62  ;;  %v6552_v61 = vld [vmem:[#allocation2 + $0x5a4] ss:$16 sps:$4 sm:$0xff]   ;;  %v6555_v62 = vld [vmem:[#allocation2 + $0x4ac] ss:$16 sps:$4 sm:$0xff]  }
 0x137   :  { %1822 = vmatprep.subr.bf16.mxu1 %v6462_v63  ;;  %v6550_v63 = vld [vmem:[#allocation2 + $0x5a0] ss:$16 sps:$4 sm:$0xff]  }
 0x139   :  { %1667 = vmatpush1.bf16.msra.mxu0 %v6457_v1  ;;  %v6553_v1 = vld [vmem:[#allocation2 + $0x4a8] ss:$16 sps:$4 sm:$0xff]  }
 0x13a   :  { %1823 = vmatpush1.bf16.msra.mxu1 %v6460_v2  ;;  %1668 = vmatprep.subr.bf16.mxu0 %v6465_v3  ;;  %v6558_v2 = vld [vmem:[#allocation2 + $0x5c4] ss:$16 sps:$4 sm:$0xff]   ;;  %v6561_v3 = vld [vmem:[#allocation2 + $0x4cc] ss:$16 sps:$4 sm:$0xff]  }
 0x13b   :  { %1824 = vmatprep.subr.bf16.mxu1 %v6468_v4  ;;  %v6556_v4 = vld [vmem:[#allocation2 + $0x5c0] ss:$16 sps:$4 sm:$0xff]  }
 0x13d   :  { %1669 = vmatpush1.bf16.msra.mxu0 %v6463_v5  ;;  %v6559_v5 = vld [vmem:[#allocation2 + $0x4c8] ss:$16 sps:$4 sm:$0xff]  }
 0x13e   :  { %1825 = vmatpush1.bf16.msra.mxu1 %v6466_v6  ;;  %1681 = vmatprep.subr.bf16.mxu0 %v6474_v7  ;;  %v6564_v6 = vld [vmem:[#allocation2 + $0x5e4] ss:$16 sps:$4 sm:$0xff]   ;;  %v6567_v7 = vld [vmem:[#allocation2 + $0x4ec] ss:$16 sps:$4 sm:$0xff]  }
 0x13f   :  { %1826 = vmatprep.subr.bf16.mxu1 %v6477_v8  ;;  %v6562_v8 = vld [vmem:[#allocation2 + $0x5e0] ss:$16 sps:$4 sm:$0xff]  }
 0x140   :  { %1671 = vmatmul.mubr.bf16.vlgmr.msra.gmra.mrb[0].mxu0 %v7690_v9 }
 0x141   :  { %1682 = vmatpush1.bf16.msra.mxu0 %v6472_v10  ;;  %1713 = vmatprep.mubr.bf16.mxu0 %v7696_v17  ;;  %v6573_v10 = vld [vmem:[#allocation2 + $0x50c] ss:$16 sps:$4 sm:$0xff]  }
 0x142   :  { %1827 = vmatpush1.bf16.msra.mxu1 %v6475_v11  ;;  %1683 = vmatprep.subr.bf16.mxu0 %v6480_v12  ;;  %v6621_v11 = vld [vmem:[#allocation6 + $0x4] ss:$8 sps:$4 sm:$0xff]  }
 0x143   :  { %1828 = vmatprep.subr.bf16.mxu1 %v6483_v13  ;;  %v7704_v12 = vld [vmem:[%s7936_s1 + $0x10] ss:$28 sps:$4 sm:$0xff]   ;;  %v6571_v13 = vld [vmem:[#allocation2 + $0x508] ss:$16 sps:$4 sm:$0xff]  }
 0x145   :  { %1684 = vmatpush1.bf16.msra.mxu0 %v6478_v14  ;;  %v6619_v14 = vld [vmem:[#allocation6] ss:$8 sps:$4 sm:$0xff]  }
 0x146   :  { %1829 = vmatpush1.bf16.msra.mxu1 %v6481_v15  ;;  %1685 = vmatprep.subr.bf16.mxu0 %v6486_v16  ;;  %v6576_v15 = vld [vmem:[#allocation2 + $0x52c] ss:$16 sps:$4 sm:$0xff]   ;;  %v6624_v16 = vld [vmem:[#allocation6 + $0x14] ss:$8 sps:$4 sm:$0xff]  }
 0x147   :  { %1830 = vmatprep.subr.bf16.mxu1 %v6489_v18  ;;  %v6622_v18 = vld [vmem:[#allocation6 + $0x10] ss:$8 sps:$4 sm:$0xff]  }
 0x149   :  { %1686 = vmatpush1.bf16.msra.mxu0 %v6484_v19  ;;  %v6579_v19 = vld [vmem:[#allocation2 + $0x54c] ss:$16 sps:$4 sm:$0xff]  }
 0x14a   :  { %1831 = vmatpush1.bf16.msra.mxu1 %v6487_v20  ;;  %1687 = vmatprep.subr.bf16.mxu0 %v6492_v21  ;;  %v6627_v20 = vld [vmem:[#allocation6 + $0x24] ss:$8 sps:$4 sm:$0xff]  }
 0x14b   :  { %1832 = vmatprep.subr.bf16.mxu1 %v6495_v22  ;;  %v6577_v21 = vld [vmem:[#allocation2 + $0x548] ss:$16 sps:$4 sm:$0xff]   ;;  %v6625_v22 = vld [vmem:[#allocation6 + $0x20] ss:$8 sps:$4 sm:$0xff]  }
 0x14d   :  { %1688 = vmatpush1.bf16.msra.mxu0 %v6490_v23  ;;  %v6582_v23 = vld [vmem:[#allocation2 + $0x56c] ss:$16 sps:$4 sm:$0xff]  }
 0x14e   :  { %1833 = vmatpush1.bf16.msra.mxu1 %v6493_v24  ;;  %1689 = vmatprep.subr.bf16.mxu0 %v6498_v25  ;;  %v6630_v24 = vld [vmem:[#allocation6 + $0x34] ss:$8 sps:$4 sm:$0xff]  }
 0x14f   :  { %1834 = vmatprep.subr.bf16.mxu1 %v6501_v26  ;;  %v6580_v25 = vld [vmem:[#allocation2 + $0x568] ss:$16 sps:$4 sm:$0xff]   ;;  %v6628_v26 = vld [vmem:[#allocation6 + $0x30] ss:$8 sps:$4 sm:$0xff]  }
 0x151   :  { %1690 = vmatpush1.bf16.msra.mxu0 %v6496_v27  ;;  %v6585_v27 = vld [vmem:[#allocation2 + $0x58c] ss:$16 sps:$4 sm:$0xff]  }
 0x152   :  { %1835 = vmatpush1.bf16.msra.mxu1 %v6499_v28  ;;  %1691 = vmatprep.subr.bf16.mxu0 %v6504_v29  ;;  %v6633_v28 = vld [vmem:[#allocation6 + $0x44] ss:$8 sps:$4 sm:$0xff]  }
 0x153   :  { %1836 = vmatprep.subr.bf16.mxu1 %v6507_v30  ;;  %v6583_v29 = vld [vmem:[#allocation2 + $0x588] ss:$16 sps:$4 sm:$0xff]   ;;  %v6631_v30 = vld [vmem:[#allocation6 + $0x40] ss:$8 sps:$4 sm:$0xff]  }
 0x155   :  { %1692 = vmatpush1.bf16.msra.mxu0 %v6502_v31  ;;  %v6588_v31 = vld [vmem:[#allocation2 + $0x5ac] ss:$16 sps:$4 sm:$0xff]  }
 0x156   :  { %1837 = vmatpush1.bf16.msra.mxu1 %v6505_v32  ;;  %1693 = vmatprep.subr.bf16.mxu0 %v6510_v33  ;;  %v6636_v32 = vld [vmem:[#allocation6 + $0x54] ss:$8 sps:$4 sm:$0xff]  }
 0x157   :  { %1838 = vmatprep.subr.bf16.mxu1 %v6513_v34  ;;  %v6586_v33 = vld [vmem:[#allocation2 + $0x5a8] ss:$16 sps:$4 sm:$0xff]   ;;  %v6634_v34 = vld [vmem:[#allocation6 + $0x50] ss:$8 sps:$4 sm:$0xff]  }
 0x159   :  { %1694 = vmatpush1.bf16.msra.mxu0 %v6508_v35  ;;  %v6591_v35 = vld [vmem:[#allocation2 + $0x5cc] ss:$16 sps:$4 sm:$0xff]  }
 0x15a   :  { %1839 = vmatpush1.bf16.msra.mxu1 %v6511_v36  ;;  %1695 = vmatprep.subr.bf16.mxu0 %v6516_v37  ;;  %v6639_v36 = vld [vmem:[#allocation6 + $0x64] ss:$8 sps:$4 sm:$0xff]  }
 0x15b   :  { %1840 = vmatprep.subr.bf16.mxu1 %v6519_v38  ;;  %v6589_v37 = vld [vmem:[#allocation2 + $0x5c8] ss:$16 sps:$4 sm:$0xff]   ;;  %v6637_v38 = vld [vmem:[#allocation6 + $0x60] ss:$8 sps:$4 sm:$0xff]  }
 0x15d   :  { %1696 = vmatpush1.bf16.msra.mxu0 %v6514_v39  ;;  %v6594_v39 = vld [vmem:[#allocation2 + $0x5ec] ss:$16 sps:$4 sm:$0xff]  }
 0x15e   :  { %1841 = vmatpush1.bf16.msra.mxu1 %v6517_v40  ;;  %1697 = vmatprep.subr.bf16.mxu0 %v6522_v41  ;;  %v6642_v40 = vld [vmem:[#allocation6 + $0x74] ss:$8 sps:$4 sm:$0xff]  }
 0x15f   :  { %1853 = vmatprep.subr.bf16.mxu1 %v6525_v42  ;;  %v6592_v41 = vld [vmem:[#allocation2 + $0x5e8] ss:$16 sps:$4 sm:$0xff]   ;;  %v6640_v42 = vld [vmem:[#allocation6 + $0x70] ss:$8 sps:$4 sm:$0xff]  }
 0x161   :  { %1843 = vmatmul.mubr.bf16.vlgmr.msra.gmra.mrb[4].mxu1 %v7690_v9  ;;  %1698 = vmatpush1.bf16.msra.mxu0 %v6520_v43  ;;  %v6565_v9 = vld [vmem:[#allocation2 + $0x4e8] ss:$16 sps:$4 sm:$0xff]   ;;  %v6597_v43 = vld [vmem:[#allocation2 + $0x60c] ss:$16 sps:$4 sm:$0xff]  }
 0x162   :  { %1854 = vmatpush1.bf16.msra.mxu1 %v6523_v44  ;;  %1699 = vmatprep.subr.bf16.mxu0 %v6528_v45  ;;  %v6645_v44 = vld [vmem:[#allocation6 + $0x84] ss:$8 sps:$4 sm:$0xff]  }
 0x163   :  { %1855 = vmatprep.subr.bf16.mxu1 %v6531_v46  ;;  %1885 = vmatprep.mubr.bf16.mxu1 %v7696_v17  ;;  %v6574_v17 = vld [vmem:[#allocation2 + $0x528] ss:$16 sps:$4 sm:$0xff]   ;;  %v6600_v46 = vld [vmem:[#allocation2 + $0x62c] ss:$16 sps:$4 sm:$0xff]  }
 0x164   :  { %v6595_v45 = vld [vmem:[#allocation2 + $0x608] ss:$16 sps:$4 sm:$0xff]  }
 0x165   :  { %1700 = vmatpush1.bf16.msra.mxu0 %v6526_v47  ;;  %v6643_v47 = vld [vmem:[#allocation6 + $0x80] ss:$8 sps:$4 sm:$0xff]  }
 0x166   :  { %1856 = vmatpush1.bf16.msra.mxu1 %v6529_v48  ;;  %1701 = vmatprep.subr.bf16.mxu0 %v6534_v49  ;;  %v6648_v48 = vld [vmem:[#allocation6 + $0x94] ss:$8 sps:$4 sm:$0xff]  }
 0x167   :  { %1857 = vmatprep.subr.bf16.mxu1 %v6537_v50  ;;  %v6598_v49 = vld [vmem:[#allocation2 + $0x628] ss:$16 sps:$4 sm:$0xff]   ;;  %v6603_v50 = vld [vmem:[#allocation2 + $0x64c] ss:$16 sps:$4 sm:$0xff]  }
 0x169   :  { %1702 = vmatpush1.bf16.msra.mxu0 %v6532_v51  ;;  %v6646_v51 = vld [vmem:[#allocation6 + $0x90] ss:$8 sps:$4 sm:$0xff]  }
 0x16a   :  { %1858 = vmatpush1.bf16.msra.mxu1 %v6535_v52  ;;  %1703 = vmatprep.subr.bf16.mxu0 %v6540_v53  ;;  %v6651_v52 = vld [vmem:[#allocation6 + $0xa4] ss:$8 sps:$4 sm:$0xff]  }
 0x16b   :  { %1859 = vmatprep.subr.bf16.mxu1 %v6543_v54  ;;  %v6601_v53 = vld [vmem:[#allocation2 + $0x648] ss:$16 sps:$4 sm:$0xff]   ;;  %v6606_v54 = vld [vmem:[#allocation2 + $0x66c] ss:$16 sps:$4 sm:$0xff]  }
 0x16d   :  { %1704 = vmatpush1.bf16.msra.mxu0 %v6538_v55  ;;  %v6649_v55 = vld [vmem:[#allocation6 + $0xa0] ss:$8 sps:$4 sm:$0xff]  }
 0x16e   :  { %1860 = vmatpush1.bf16.msra.mxu1 %v6541_v56  ;;  %1705 = vmatprep.subr.bf16.mxu0 %v6546_v57  ;;  %v6654_v56 = vld [vmem:[#allocation6 + $0xb4] ss:$8 sps:$4 sm:$0xff]  }
 0x16f   :  { %1861 = vmatprep.subr.bf16.mxu1 %v6549_v58  ;;  %v6604_v57 = vld [vmem:[#allocation2 + $0x668] ss:$16 sps:$4 sm:$0xff]   ;;  %v6609_v58 = vld [vmem:[#allocation2 + $0x68c] ss:$16 sps:$4 sm:$0xff]  }
 0x171   :  { %1706 = vmatpush1.bf16.msra.mxu0 %v6544_v59  ;;  %v6652_v59 = vld [vmem:[#allocation6 + $0xb0] ss:$8 sps:$4 sm:$0xff]  }
 0x172   :  { %1862 = vmatpush1.bf16.msra.mxu1 %v6547_v60  ;;  %1707 = vmatprep.subr.bf16.mxu0 %v6552_v61  ;;  %v6657_v60 = vld [vmem:[#allocation6 + $0xc4] ss:$8 sps:$4 sm:$0xff]  }
 0x173   :  { %1863 = vmatprep.subr.bf16.mxu1 %v6555_v62  ;;  %v6607_v61 = vld [vmem:[#allocation2 + $0x688] ss:$16 sps:$4 sm:$0xff]   ;;  %v6612_v62 = vld [vmem:[#allocation2 + $0x6ac] ss:$16 sps:$4 sm:$0xff]  }
 0x175   :  { %1708 = vmatpush1.bf16.msra.mxu0 %v6550_v63  ;;  %v6655_v63 = vld [vmem:[#allocation6 + $0xc0] ss:$8 sps:$4 sm:$0xff]  }
 0x176   :  { %1864 = vmatpush1.bf16.msra.mxu1 %v6553_v1  ;;  %1709 = vmatprep.subr.bf16.mxu0 %v6558_v2  ;;  %v6610_v1 = vld [vmem:[#allocation2 + $0x6a8] ss:$16 sps:$4 sm:$0xff]   ;;  %v6615_v2 = vld [vmem:[#allocation2 + $0x6cc] ss:$16 sps:$4 sm:$0xff]  }
 0x177   :  { %1865 = vmatprep.subr.bf16.mxu1 %v6561_v3 }
 0x179   :  { %1710 = vmatpush1.bf16.msra.mxu0 %v6556_v4  ;;  %v6613_v4 = vld [vmem:[#allocation2 + $0x6c8] ss:$16 sps:$4 sm:$0xff]  }
 0x17a   :  { %1866 = vmatpush1.bf16.msra.mxu1 %v6559_v5  ;;  %1711 = vmatprep.subr.bf16.mxu0 %v6564_v6  ;;  %v6618_v6 = vld [vmem:[#allocation2 + $0x6ec] ss:$16 sps:$4 sm:$0xff]  }
 0x17b   :  { %1867 = vmatprep.subr.bf16.mxu1 %v6567_v7 }
 0x17d   :  { %1712 = vmatpush1.bf16.msra.mxu0 %v6562_v8 }
 0x17e   :  { %1868 = vmatpush1.bf16.msra.mxu1 %v6565_v9  ;;  %2355 = vmatprep.subr.bf16.mxu0 %v6621_v11  ;;  %v6616_v9 = vld [vmem:[#allocation2 + $0x6e8] ss:$16 sps:$4 sm:$0xff]  }
 0x17f   :  { %1869 = vmatprep.subr.bf16.mxu1 %v6573_v10  ;;  %v7187_v10 = vld [vmem:[%s7936_s1 + $0x18] ss:$28 sps:$4 sm:$0xff]  }
 0x180   :  { %1714 = vmatmul.mubr.bf16.vlgmr.msra.gmra.mrb[0].mxu0 %v7704_v12  ;;  %v6660_v11 = vld [vmem:[#allocation6 + $0xd4] ss:$8 sps:$4 sm:$0xff]  }
 0x181   :  { %2356 = vmatpush1.bf16.msra.mxu0 %v6619_v14  ;;  %v6661_v14 = vld [vmem:[#allocation6 + $0xe0] ss:$8 sps:$4 sm:$0xff]  }
 0x182   :  { %1870 = vmatpush1.bf16.msra.mxu1 %v6571_v13  ;;  %2357 = vmatprep.subr.bf16.mxu0 %v6624_v16  ;;  %v6663_v13 = vld [vmem:[#allocation6 + $0xe4] ss:$8 sps:$4 sm:$0xff]   ;;  %v6664_v16 = vld [vmem:[#allocation6 + $0xf0] ss:$8 sps:$4 sm:$0xff]  }
 0x183   :  { %1871 = vmatprep.subr.bf16.mxu1 %v6576_v15  ;;  %v6666_v15 = vld [vmem:[#allocation6 + $0xf4] ss:$8 sps:$4 sm:$0xff]  }
 0x185   :  { %2358 = vmatpush1.bf16.msra.mxu0 %v6622_v18  ;;  %v6715_v18 = vld [vmem:[%s7918_s5 + $0x40] sm:$0xff]  }
 0x186   :  { %1872 = vmatpush1.bf16.msra.mxu1 %v6574_v17  ;;  %2359 = vmatprep.subr.bf16.mxu0 %v6627_v20  ;;  %v6669_v17 = vld [vmem:[#allocation6 + $0x104] ss:$8 sps:$4 sm:$0xff]  }
 0x187   :  { %1873 = vmatprep.subr.bf16.mxu1 %v6579_v19  ;;  %v6716_v19 = vld [vmem:[%s7918_s5] sm:$0xff]   ;;  %v6717_v20 = vld [vmem:[%s7918_s5 + $0x48] sm:$0xff]  }
 0x189   :  { %2360 = vmatpush1.bf16.msra.mxu0 %v6625_v22  ;;  %v6719_v22 = vld [vmem:[%s7918_s5 + $0x50] sm:$0xff]  }
 0x18a   :  { %1874 = vmatpush1.bf16.msra.mxu1 %v6577_v21  ;;  %2361 = vmatprep.subr.bf16.mxu0 %v6630_v24  ;;  %v6718_v21 = vld [vmem:[%s7918_s5 + $0x8] sm:$0xff]   ;;  %v6721_v24 = vld [vmem:[%s7918_s5 + $0x58] sm:$0xff]  }
 0x18b   :  { %1875 = vmatprep.subr.bf16.mxu1 %v6582_v23  ;;  %v6720_v23 = vld [vmem:[%s7918_s5 + $0x10] sm:$0xff]  }
 0x18d   :  { %2362 = vmatpush1.bf16.msra.mxu0 %v6628_v26  ;;  %v6723_v26 = vld [vmem:[%s7918_s5 + $0x60] sm:$0xff]  }
 0x18e   :  { %1876 = vmatpush1.bf16.msra.mxu1 %v6580_v25  ;;  %2363 = vmatprep.subr.bf16.mxu0 %v6633_v28  ;;  %v6722_v25 = vld [vmem:[%s7918_s5 + $0x18] sm:$0xff]   ;;  %v419_v28 = vlaneseq }
 0x18f   :  { %1877 = vmatprep.subr.bf16.mxu1 %v6585_v27  ;;  %v6724_v27 = vld [vmem:[%s7918_s5 + $0x20] sm:$0xff]  }
 0x191   :  { %2364 = vmatpush1.bf16.msra.mxu0 %v6631_v30 }
 0x192   :  { %1878 = vmatpush1.bf16.msra.mxu1 %v6583_v29  ;;  %2365 = vmatprep.subr.bf16.mxu0 %v6636_v32  ;;  %v7742_v29 = vshrl.u32 %v419_v28, 7  ;;  %v6711_v28 = vld [vmem:[#allocation6 + $0x1e4] ss:$8 sps:$4 sm:$0xff]  }
 0x193   :  { %1879 = vmatprep.subr.bf16.mxu1 %v6588_v31  ;;  %v7747_v31 = vld [vmem:[#allocation4] sm:$0xf] }
 0x194   :  { %v7745_v30 = vsub.s32 0, %v7742_v29  ;;  %v7750_v32 = vsub.s32 1, %v7742_v29 }
 0x195   :  { %2366 = vmatpush1.bf16.msra.mxu0 %v6634_v34 }
 0x196   :  { %1880 = vmatpush1.bf16.msra.mxu1 %v6586_v33  ;;  %2367 = vmatprep.subr.bf16.mxu0 %v6639_v36  ;;  %v422_v33 = vrot.slane %v7747_v31, %v7745_v30  ;;  %v426_v34 = vrot.slane %v7747_v31, %v7750_v32 }
 0x197   :  { %1881 = vmatprep.subr.bf16.mxu1 %v6591_v35 }
 0x199   :  { %2368 = vmatpush1.bf16.msra.mxu0 %v6637_v38 }
 0x19a   :  { %1882 = vmatpush1.bf16.msra.mxu1 %v6589_v37  ;;  %2369 = vmatprep.subr.bf16.mxu0 %v6642_v40 }
 0x19b   :  { %1883 = vmatprep.subr.bf16.mxu1 %v6594_v39 }
 0x19d   :  { %2370 = vmatpush1.bf16.msra.mxu0 %v6640_v42 }
 0x19e   :  { %1884 = vmatpush1.bf16.msra.mxu1 %v6592_v41  ;;  %2371 = vmatprep.subr.bf16.mxu0 %v6645_v44 }
 0x19f   :  { %1896 = vmatprep.subr.bf16.mxu1 %v6597_v43 }
 0x1a1   :  { %1886 = vmatmul.mubr.bf16.vlgmr.msra.gmra.mrb[4].mxu1 %v7704_v12  ;;  %2372 = vmatpush1.bf16.msra.mxu0 %v6643_v47  ;;  %v6658_v12 = vld [vmem:[#allocation6 + $0xd0] ss:$8 sps:$4 sm:$0xff]  }
 0x1a2   :  { %1897 = vmatpush1.bf16.msra.mxu1 %v6595_v45  ;;  %1928 = vmatprep.mubr.bf16.mxu1 %v7438_v0 }
 0x1a3   :  { %1898 = vmatprep.subr.bf16.mxu1 %v6600_v46  ;;  %2373 = vmatprep.subr.bf16.mxu0 %v6648_v48 }
 0x1a5   :  { %2374 = vmatpush1.bf16.msra.mxu0 %v6646_v51 }
 0x1a6   :  { %1899 = vmatpush1.bf16.msra.mxu1 %v6598_v49  ;;  %2375 = vmatprep.subr.bf16.mxu0 %v6651_v52 }
 0x1a7   :  { %1900 = vmatprep.subr.bf16.mxu1 %v6603_v50 }
 0x1a9   :  { %2376 = vmatpush1.bf16.msra.mxu0 %v6649_v55 }
 0x1aa   :  { %1901 = vmatpush1.bf16.msra.mxu1 %v6601_v53  ;;  %2377 = vmatprep.subr.bf16.mxu0 %v6654_v56 }
 0x1ab   :  { %1902 = vmatprep.subr.bf16.mxu1 %v6606_v54 }
 0x1ad   :  { %2378 = vmatpush1.bf16.msra.mxu0 %v6652_v59  ;;  %v6670_v59 = vld [vmem:[#allocation6 + $0x110] ss:$8 sps:$4 sm:$0xff]  }
 0x1ae   :  { %1903 = vmatpush1.bf16.msra.mxu1 %v6604_v57  ;;  %2379 = vmatprep.subr.bf16.mxu0 %v6657_v60  ;;  %v6667_v57 = vld [vmem:[#allocation6 + $0x100] ss:$8 sps:$4 sm:$0xff]   ;;  %v6675_v60 = vld [vmem:[#allocation6 + $0x124] ss:$8 sps:$4 sm:$0xff]  }
 0x1af   :  { %1904 = vmatprep.subr.bf16.mxu1 %v6609_v58  ;;  %v6672_v58 = vld [vmem:[#allocation6 + $0x114] ss:$8 sps:$4 sm:$0xff]  }
 0x1b1   :  { %2380 = vmatpush1.bf16.msra.mxu0 %v6655_v63  ;;  %v6676_v63 = vld [vmem:[#allocation6 + $0x130] ss:$8 sps:$4 sm:$0xff]  }
 0x1b2   :  { %1905 = vmatpush1.bf16.msra.mxu1 %v6607_v61  ;;  %2381 = vmatprep.subr.bf16.mxu0 %v6660_v11  ;;  %v6673_v61 = vld [vmem:[#allocation6 + $0x120] ss:$8 sps:$4 sm:$0xff]   ;;  %v6696_v11 = vld [vmem:[#allocation6 + $0x194] ss:$8 sps:$4 sm:$0xff]  }
 0x1b3   :  { %1906 = vmatprep.subr.bf16.mxu1 %v6612_v62  ;;  %v6678_v62 = vld [vmem:[#allocation6 + $0x134] ss:$8 sps:$4 sm:$0xff]  }
 0x1b4   :  { %v1758_v3 = vpop.f32.mrb[0].mxu1 }
 0x1b5   :  { %v1760_v5 = vpop.f32.mrb[1].mxu1  ;;  %2382 = vmatpush1.bf16.msra.mxu0 %v6658_v12  ;;  %v6694_v12 = vld [vmem:[#allocation6 + $0x190] ss:$8 sps:$4 sm:$0xff]  }
 0x1b6   :  { %v1762_v7 = vpop.f32.mrb[2].mxu1  ;;  %1907 = vmatpush1.bf16.msra.mxu1 %v6610_v1  ;;  %2383 = vmatprep.subr.bf16.mxu0 %v6663_v13  ;;  %v6681_v1 = vld [vmem:[#allocation6 + $0x144] ss:$8 sps:$4 sm:$0xff]  }
 0x1b7   :  { %v1764_v8 = vpop.f32.mrb[3].mxu1  ;;  %1908 = vmatprep.subr.bf16.mxu1 %v6615_v2  ;;  %v6679_v2 = vld [vmem:[#allocation6 + $0x140] ss:$8 sps:$4 sm:$0xff]   ;;  %v6699_v13 = vld [vmem:[#allocation6 + $0x1a4] ss:$8 sps:$4 sm:$0xff]  }
 0x1b9   :  { %2384 = vmatpush1.bf16.msra.mxu0 %v6661_v14  ;;  %v6697_v14 = vld [vmem:[#allocation6 + $0x1a0] ss:$8 sps:$4 sm:$0xff]  }
 0x1ba   :  { %1909 = vmatpush1.bf16.msra.mxu1 %v6613_v4  ;;  %2385 = vmatprep.subr.bf16.mxu0 %v6666_v15  ;;  %v6682_v4 = vld [vmem:[#allocation6 + $0x150] ss:$8 sps:$4 sm:$0xff]   ;;  %v6702_v15 = vld [vmem:[#allocation6 + $0x1b4] ss:$8 sps:$4 sm:$0xff]  }
 0x1bb   :  { %1910 = vmatprep.subr.bf16.mxu1 %v6618_v6  ;;  %v6685_v6 = vld [vmem:[#allocation6 + $0x160] ss:$8 sps:$4 sm:$0xff]  }
 0x1bd   :  { %2386 = vmatpush1.bf16.msra.mxu0 %v6664_v16  ;;  %v6700_v16 = vld [vmem:[#allocation6 + $0x1b0] ss:$8 sps:$4 sm:$0xff]  }
 0x1be   :  { %1911 = vmatpush1.bf16.msra.mxu1 %v6616_v9  ;;  %2398 = vmatprep.subr.bf16.mxu0 %v6669_v17  ;;  %v6693_v9 = vld [vmem:[#allocation6 + $0x184] ss:$8 sps:$4 sm:$0xff]  }
 0x1bf   :  { %6064 = vmatprep.subr.bf16.mxu1 %v6715_v18  ;;  %v6705_v17 = vld [vmem:[#allocation6 + $0x1c4] ss:$8 sps:$4 sm:$0xff]   ;;  %v7757_v18 = vsub.s32 2, %v7742_v29 }
 0x1c1   :  { %1929 = vmatmul.mubr.bf16.vlgmr.msra.gmra.mrb[4].mxu1 %v7187_v10  ;;  %v6691_v10 = vld [vmem:[#allocation6 + $0x180] ss:$8 sps:$4 sm:$0xff]  }
 0x1c2   :  { %6065 = vmatpush3.bf16.msra.mxu1 %v6716_v19  ;;  %v7760_v19 = vsub.s32 3, %v7742_v29 }
 0x1c3   :  { %6066 = vmatprep.subr.bf16.mxu1 %v6717_v20  ;;  %v6703_v20 = vld [vmem:[#allocation6 + $0x1c0] ss:$8 sps:$4 sm:$0xff]  }
 0x1c6   :  { %6067 = vmatpush3.bf16.msra.mxu1 %v6718_v21  ;;  %v430_v21 = vrot.slane %v7747_v31, %v7757_v18 }
 0x1c7   :  { %6068 = vmatprep.subr.bf16.mxu1 %v6719_v22  ;;  %v6708_v22 = vld [vmem:[#allocation6 + $0x1d4] ss:$8 sps:$4 sm:$0xff]  }
 0x1ca   :  { %6069 = vmatpush3.bf16.msra.mxu1 %v6720_v23  ;;  %v434_v23 = vrot.slane %v7747_v31, %v7760_v19 }
 0x1cb   :  { %6070 = vmatprep.subr.bf16.mxu1 %v6721_v24 }
 0x1ce   :  { %6071 = vmatpush3.bf16.msra.mxu1 %v6722_v25  ;;  %v6706_v25 = vld [vmem:[#allocation6 + $0x1d0] ss:$8 sps:$4 sm:$0xff]  }
 0x1cf   :  { %6072 = vmatprep.subr.bf16.mxu1 %v6723_v26 }
 0x1d2   :  { %6073 = vmatpush3.bf16.msra.mxu1 %v6724_v27 }
 0x253   :  { %v1715_v35 = vpop.f32.mrb[0].mxu0 }
 0x254   :  { %v6188_v36 = vadd.f32 %v1715_v35, %v422_v33  ;;  %v1717_v37 = vpop.f32.mrb[1].mxu0 }
 0x255   :  { %v6190_v38 = vadd.f32 %v1717_v37, %v426_v34  ;;  %v1719_v39 = vpop.f32.mrb[2].mxu0 }
 0x256   :  { %v6189_v40 = vadd.f32 %v6188_v36, %v1758_v3  ;;  %v6192_v41 = vadd.f32 %v1719_v39, %v422_v33  ;;  %v1721_v42 = vpop.f32.mrb[3].mxu0  ;;  %v6684_v3 = vld [vmem:[#allocation6 + $0x154] ss:$8 sps:$4 sm:$0xff]  }
 0x257   :  { %v6191_v43 = vadd.f32 %v6190_v38, %v1760_v5  ;;  %v6194_v44 = vadd.f32 %v1721_v42, %v426_v34  ;;  %v6687_v5 = vld [vmem:[#allocation6 + $0x164] ss:$8 sps:$4 sm:$0xff]   ;;  %v6714_v42 = vld [vmem:[#allocation6 + $0x1f4] ss:$8 sps:$4 sm:$0xff]  }
 0x258   :  { %v1939_v45 = vmul.f32 0.5, %v6189_v40  ;;  %v6193_v46 = vadd.f32 %v6192_v41, %v1762_v7  ;;  %v6690_v7 = vld [vmem:[#allocation6 + $0x174] ss:$8 sps:$4 sm:$0xff]  }
 0x259   :  { %v1940_v47 = vmul.f32 0.5, %v6191_v43  ;;  %v6195_v48 = vadd.f32 %v6194_v44, %v1764_v8  ;;  %v6688_v8 = vld [vmem:[#allocation6 + $0x170] ss:$8 sps:$4 sm:$0xff]  }
 0x25a   :  { %v1943_v49 = vmul.f32 0.5, %v6193_v46  ;;  %v1947_v51 = vmax.f32 %v6189_v40, %v1939_v45  ;;  %v6709_v40 = vld [vmem:[#allocation6 + $0x1e0] ss:$8 sps:$4 sm:$0xff]  }
 0x25b   :  { %v1944_v50 = vmul.f32 0.5, %v6195_v48  ;;  %v1948_v53 = vmax.f32 %v6191_v43, %v1940_v47  ;;  %v6712_v47 = vld [vmem:[#allocation6 + $0x1f0] ss:$8 sps:$4 sm:$0xff]  }
 0x25c   :  { %v1951_v52 = vmax.f32 %v6193_v46, %v1943_v49 }
 0x25d   :  { %v1952_v54 = vmax.f32 %v6195_v48, %v1944_v50  ;;  %v6725_v50 = vld [vmem:[%s7918_s5 + $0x68] sm:$0xff]  }
 0x25e   :  { %v1955_v55 = vpack.c.bf16 %v1951_v52, %v1947_v51  ;;  %v6726_v51 = vld [vmem:[%s7918_s5 + $0x28] sm:$0xff]   ;;  %6074 = vmatprep.subr.bf16.mxu1 %v6725_v50  ;;  %v6727_v52 = vld [vmem:[%s7918_s5 + $0x70] sm:$0xff]  }
 0x25f   :  { %v1956_v56 = vpack.c.bf16 %v1952_v54, %v1948_v53  ;;  %6075 = vmatpush3.bf16.msra.mxu1 %v6726_v51  ;;  %v6728_v53 = vld [vmem:[%s7918_s5 + $0x30] sm:$0xff]   ;;  %v6729_v54 = vld [vmem:[%s7918_s5 + $0x78] sm:$0xff]   ;;  %v5726_v51 = vld [vmem:[#allocation10] ss:$0 sm:$0xff] }
 0x260   :  { %6076 = vmatprep.subr.bf16.mxu1 %v6727_v52  ;;  %v6749_v50 = vld [vmem:[#allocation13 + $0x4] ss:$8 sps:$4 sm:$0xff]  }
 0x261   :  { %2387 = vmatprep.mubr.bf16.mxu0 %v1956_v56  ;;  %v7439_v56 = vmov 0.0  }
 0x262   :  { %2388 = vmatmul.mubr.bf16.vlgmr.msra.gmra.mrb[4].mxu0 %v1955_v55  ;;  %v6730_v55 = vld [vmem:[%s7918_s5 + $0x38] sm:$0xff]  }
 0x263   :  { %2399 = vmatpush1.bf16.msra.mxu0 %v6667_v57  ;;  %6077 = vmatpush3.bf16.msra.mxu1 %v6728_v53  ;;  %v2023_v57 = vld [vmem:[#allocation7] sm:$0x3] }
 0x264   :  { %2400 = vmatprep.subr.bf16.mxu0 %v6672_v58  ;;  %6078 = vmatprep.subr.bf16.mxu1 %v6729_v54  ;;  %v2028_v58 = vrot.slane %v2023_v57, %v7745_v30 }
 0x267   :  { %2401 = vmatpush1.bf16.msra.mxu0 %v6670_v59  ;;  %6079 = vmatpush3.bf16.msra.mxu1 %v6730_v55  ;;  %v2032_v59 = vrot.slane %v2023_v57, %v7750_v32 }
 0x268   :  { %2402 = vmatprep.subr.bf16.mxu0 %v6675_v60  ;;  %6148 = vmatprep.subr.bf16.mxu1 %v7439_v56 }
 0x26b   :  { %2403 = vmatpush1.bf16.msra.mxu0 %v6673_v61 }
 0x26c   :  { %2404 = vmatprep.subr.bf16.mxu0 %v6678_v62 }
 0x26f   :  { %2405 = vmatpush1.bf16.msra.mxu0 %v6676_v63 }
 0x270   :  { %2406 = vmatprep.subr.bf16.mxu0 %v6681_v1 }
 0x273   :  { %2407 = vmatpush1.bf16.msra.mxu0 %v6679_v2 }
 0x274   :  { %2408 = vmatprep.subr.bf16.mxu0 %v6684_v3 }
 0x277   :  { %2409 = vmatpush1.bf16.msra.mxu0 %v6682_v4 }
 0x278   :  { %2410 = vmatprep.subr.bf16.mxu0 %v6687_v5 }
 0x27b   :  { %2411 = vmatpush1.bf16.msra.mxu0 %v6685_v6 }
 0x27c   :  { %2412 = vmatprep.subr.bf16.mxu0 %v6690_v7 }
 0x27f   :  { %2413 = vmatpush1.bf16.msra.mxu0 %v6688_v8 }
 0x280   :  { %2414 = vmatprep.subr.bf16.mxu0 %v6693_v9 }
 0x283   :  { %2415 = vmatpush1.bf16.msra.mxu0 %v6691_v10 }
 0x284   :  { %2416 = vmatprep.subr.bf16.mxu0 %v6696_v11 }
 0x287   :  { %2417 = vmatpush1.bf16.msra.mxu0 %v6694_v12 }
 0x288   :  { %2418 = vmatprep.subr.bf16.mxu0 %v6699_v13 }
 0x28b   :  { %2419 = vmatpush1.bf16.msra.mxu0 %v6697_v14 }
 0x28c   :  { %2420 = vmatprep.subr.bf16.mxu0 %v6702_v15  ;;  %v6731_v15 = vld [vmem:[%s7920_s7] sm:$0xff]  }
 0x28f   :  { %2421 = vmatpush1.bf16.msra.mxu0 %v6700_v16  ;;  %v6732_v16 = vld [vmem:[%s7920_s7 + $0x8] sm:$0xff]  }
 0x290   :  { %2422 = vmatprep.subr.bf16.mxu0 %v6705_v17  ;;  %v6733_v17 = vld [vmem:[%s7920_s7 + $0x10] sm:$0xff]  }
 0x293   :  { %2423 = vmatpush1.bf16.msra.mxu0 %v6703_v20  ;;  %v6734_v20 = vld [vmem:[%s7920_s7 + $0x18] sm:$0xff]  }
 0x294   :  { %v1930_v24 = vpop.f32.mrb[4].mxu1  ;;  %2424 = vmatprep.subr.bf16.mxu0 %v6708_v22  ;;  %v6736_v22 = vld [vmem:[%s7920_s7 + $0x28] sm:$0xff]  }
 0x295   :  { %v6196_v26 = vadd.f32 %v1930_v24, %v430_v21  ;;  %v1932_v27 = vpop.f32.mrb[5].mxu1  ;;  %v6738_v24 = vld [vmem:[%s7920_s7 + $0x38] sm:$0xff]  }
 0x296   :  { %v6197_v33 = vadd.f32 %v1932_v27, %v434_v23  ;;  %v1934_v34 = vpop.f32.mrb[6].mxu1 }
 0x297   :  { %v1941_v35 = vmul.f32 0.5, %v6196_v26  ;;  %v6198_v36 = vadd.f32 %v1934_v34, %v430_v21  ;;  %v1936_v37 = vpop.f32.mrb[7].mxu1  ;;  %2425 = vmatpush1.bf16.msra.mxu0 %v6706_v25  ;;  %v6735_v21 = vld [vmem:[%s7920_s7 + $0x20] sm:$0xff]  }
 0x298   :  { %v1942_v38 = vmul.f32 0.5, %v6197_v33  ;;  %v6199_v39 = vadd.f32 %v1936_v37, %v434_v23  ;;  %2426 = vmatprep.subr.bf16.mxu0 %v6711_v28  ;;  %v6737_v23 = vld [vmem:[%s7920_s7 + $0x30] sm:$0xff]  }
 0x299   :  { %v1945_v41 = vmul.f32 0.5, %v6198_v36  ;;  %v1949_v43 = vmax.f32 %v6196_v26, %v1941_v35  ;;  %v5709_v26 = vld [vmem:[#allocation9] ss:$0 sm:$0xff] }
 0x29a   :  { %v1946_v31 = vmul.f32 0.5, %v6199_v39  ;;  %v1950_v45 = vmax.f32 %v6197_v33, %v1942_v38 }
 0x29b   :  { %v1953_v44 = vmax.f32 %v6198_v36, %v1945_v41  ;;  %2427 = vmatpush1.bf16.msra.mxu0 %v6709_v40 }
 0x29c   :  { %v1954_v46 = vmax.f32 %v6199_v39, %v1946_v31  ;;  %2428 = vmatprep.subr.bf16.mxu0 %v6714_v42  ;;  %v6739_v42 = vld [vmem:[#allocation12] sm:$0xff]  }
 0x29d   :  { %v1957_v48 = vpack.c.bf16 %v1953_v44, %v1949_v43  ;;  %v6740_v43 = vld [vmem:[#allocation12 + $0x8] sm:$0xff]   ;;  %v6741_v44 = vld [vmem:[#allocation12 + $0x10] sm:$0xff]  }
 0x29e   :  { %v1958_v49 = vpack.c.bf16 %v1954_v46, %v1950_v45  ;;  %v6742_v45 = vld [vmem:[#allocation12 + $0x18] sm:$0xff]   ;;  %v6743_v46 = vld [vmem:[#allocation12 + $0x20] sm:$0xff]  }
 0x29f   :  { %2429 = vmatpush1.bf16.msra.mxu0 %v6712_v47  ;;  %v6744_v47 = vld [vmem:[#allocation12 + $0x28] sm:$0xff]  }
 0x2a0   :  { %2430 = vmatprep.mubr.bf16.mxu0 %v1958_v49  ;;  %v6746_v49 = vld [vmem:[#allocation12 + $0x38] sm:$0xff]  }
 0x2a2   :  { %2431 = vmatmul.mubr.bf16.vlgmr.msra.gmra.mrb[4].mxu0 %v1957_v48  ;;  %v6745_v48 = vld [vmem:[#allocation12 + $0x30] sm:$0xff]  }
 0x375   :  { %v2432_v60 = vpop.f32.mrb[4].mxu0 }
 0x376   :  { %v6200_v61 = vadd.f32 %v2432_v60, %v2028_v58  ;;  %v2434_v62 = vpop.f32.mrb[5].mxu0 }
 0x377   :  { %v6201_v63 = vadd.f32 %v2434_v62, %v2032_v59  ;;  %v2436_v1 = vpop.f32.mrb[6].mxu0 }
 0x378   :  { %v2441_v2 = vmul.f32 0.5, %v6200_v61  ;;  %v6202_v3 = vadd.f32 %v2436_v1, %v2028_v58  ;;  %v2438_v4 = vpop.f32.mrb[7].mxu0 }
 0x379   :  { %v2442_v5 = vmul.f32 0.5, %v6201_v63  ;;  %v6203_v6 = vadd.f32 %v2438_v4, %v2032_v59  ;;  %v6753_v4 = vld [vmem:[#allocation13 + $0x20] ss:$8 sps:$4 sm:$0xff]  }
 0x37a   :  { %v2443_v7 = vmul.f32 0.5, %v6202_v3  ;;  %v2445_v9 = vmax.f32 %v6200_v61, %v2441_v2  ;;  %v6752_v2 = vld [vmem:[#allocation13 + $0x14] ss:$8 sps:$4 sm:$0xff]  }
 0x37b   :  { %v2444_v8 = vmul.f32 0.5, %v6203_v6  ;;  %v2446_v11 = vmax.f32 %v6201_v63, %v2442_v5  ;;  %v6747_v63 = vld [vmem:[#allocation13] ss:$8 sps:$4 sm:$0xff]   ;;  %v6758_v5 = vld [vmem:[#allocation13 + $0x34] ss:$8 sps:$4 sm:$0xff]  }
 0x37c   :  { %v2447_v10 = vmax.f32 %v6202_v3, %v2443_v7  ;;  %v6755_v3 = vld [vmem:[#allocation13 + $0x24] ss:$8 sps:$4 sm:$0xff]  }
 0x37d   :  { %v2448_v12 = vmax.f32 %v6203_v6, %v2444_v8  ;;  %v6756_v6 = vld [vmem:[#allocation13 + $0x30] ss:$8 sps:$4 sm:$0xff]   ;;  %v6761_v7 = vld [vmem:[#allocation13 + $0x44] ss:$8 sps:$4 sm:$0xff]   ;;  %v6759_v8 = vld [vmem:[#allocation13 + $0x40] ss:$8 sps:$4 sm:$0xff]  }
 0x37e   :  { %v2449_v13 = vpack.c.bf16 %v2447_v10, %v2445_v9  ;;  %v6764_v9 = vld [vmem:[#allocation13 + $0x54] ss:$8 sps:$4 sm:$0xff]   ;;  %v6762_v10 = vld [vmem:[#allocation13 + $0x50] ss:$8 sps:$4 sm:$0xff]  }
 0x37f   :  { %v2450_v14 = vpack.c.bf16 %v2448_v12, %v2446_v11  ;;  %v6767_v11 = vld [vmem:[#allocation13 + $0x64] ss:$8 sps:$4 sm:$0xff]   ;;  %v6770_v12 = vld [vmem:[#allocation13 + $0x74] ss:$8 sps:$4 sm:$0xff]  }
 0x381   :  { %2618 = vmatprep.mubr.bf16.mxu1 %v2450_v14  ;;  %v6771_v14 = vld [vmem:[#allocation15] ss:$16 sps:$4 sm:$0xff]  }
 0x382   :  { %2619 = vmatmul.mubr.bf16.vlgmr.msra.gmra.mrb[8].mxu1 %v2449_v13  ;;  %v6768_v13 = vld [vmem:[#allocation13 + $0x70] ss:$8 sps:$4 sm:$0xff]  }
 0x383   :  { %6149 = vmatpush3.bf16.msra.mxu1 %v6731_v15  ;;  %6164 = vmatprep.mubr.msk.bf16.mxu1 %vm7440_vm0, %v7439_v56  ;;  %v6773_v15 = vld [vmem:[#allocation15 + $0x4] ss:$16 sps:$4 sm:$0xff]  }
 0x384   :  { %6150 = vmatprep.subr.bf16.mxu1 %v7439_v56  ;;  %3433 = vmatprep.subr.bf16.mxu0 %v6773_v15  ;;  %v6842_v15 = vld [vmem:[#allocation15 + $0x16c] ss:$16 sps:$4 sm:$0xff]  }
 0x385   :  { %3434 = vmatpush1.bf16.msra.mxu0 %v6771_v14  ;;  %v6834_v14 = vld [vmem:[#allocation15 + $0x148] ss:$16 sps:$4 sm:$0xff]  }
 0x387   :  { %6151 = vmatpush3.bf16.msra.mxu1 %v6732_v16  ;;  %v6776_v16 = vld [vmem:[#allocation15 + $0xc] ss:$16 sps:$4 sm:$0xff]  }
 0x388   :  { %6152 = vmatprep.subr.bf16.mxu1 %v7439_v56 }
 0x38b   :  { %6153 = vmatpush3.bf16.msra.mxu1 %v6733_v17  ;;  %v6779_v17 = vld [vmem:[#allocation15 + $0x24] ss:$16 sps:$4 sm:$0xff]  }
 0x38c   :  { %6154 = vmatprep.subr.bf16.mxu1 %v7439_v56  ;;  %3435 = vmatprep.subr.bf16.mxu0 %v6779_v17  ;;  %v6848_v17 = vld [vmem:[#allocation15 + $0x18c] ss:$16 sps:$4 sm:$0xff]  }
 0x38f   :  { %6155 = vmatpush3.bf16.msra.mxu1 %v6734_v20  ;;  %v6777_v20 = vld [vmem:[#allocation15 + $0x20] ss:$16 sps:$4 sm:$0xff]  }
 0x390   :  { %6156 = vmatprep.subr.bf16.mxu1 %v7439_v56  ;;  %3436 = vmatpush1.bf16.msra.mxu0 %v6777_v20  ;;  %v6846_v20 = vld [vmem:[#allocation15 + $0x188] ss:$16 sps:$4 sm:$0xff]  }
 0x393   :  { %6157 = vmatpush3.bf16.msra.mxu1 %v6735_v21  ;;  %v6785_v21 = vld [vmem:[#allocation15 + $0x44] ss:$16 sps:$4 sm:$0xff]  }
 0x394   :  { %6158 = vmatprep.subr.bf16.mxu1 %v7439_v56  ;;  %3437 = vmatprep.subr.bf16.mxu0 %v6785_v21  ;;  %v6851_v21 = vld [vmem:[#allocation15 + $0x1a4] ss:$16 sps:$4 sm:$0xff]  }
 0x397   :  { %6159 = vmatpush3.bf16.msra.mxu1 %v6736_v22  ;;  %v6783_v22 = vld [vmem:[#allocation15 + $0x40] ss:$16 sps:$4 sm:$0xff]  }
 0x398   :  { %6160 = vmatprep.subr.bf16.mxu1 %v7439_v56  ;;  %3438 = vmatpush1.bf16.msra.mxu0 %v6783_v22  ;;  %v6854_v22 = vld [vmem:[#allocation15 + $0x1ac] ss:$16 sps:$4 sm:$0xff]  }
 0x39b   :  { %6161 = vmatpush3.bf16.msra.mxu1 %v6737_v23  ;;  %v6791_v23 = vld [vmem:[#allocation15 + $0x64] ss:$16 sps:$4 sm:$0xff]  }
 0x39c   :  { %6162 = vmatprep.subr.bf16.mxu1 %v7439_v56  ;;  %3439 = vmatprep.subr.bf16.mxu0 %v6791_v23  ;;  %v6849_v23 = vld [vmem:[#allocation15 + $0x1a0] ss:$16 sps:$4 sm:$0xff]  }
 0x39f   :  { %6163 = vmatpush3.bf16.msra.mxu1 %v6738_v24  ;;  %v6789_v24 = vld [vmem:[#allocation15 + $0x60] ss:$16 sps:$4 sm:$0xff]  }
 0x3a0   :  { %6168 = vmatprep.subr.bf16.mxu1 %v7439_v56  ;;  %3440 = vmatpush1.bf16.msra.mxu0 %v6789_v24  ;;  %v6852_v24 = vld [vmem:[#allocation15 + $0x1a8] ss:$16 sps:$4 sm:$0xff]  }
 0x455   :  { %v6080_v25 = vpop.f32.mrb[8].mxu1 }
 0x456   :  { %v6081_v27 = vpop.f32.mrb[9].mxu1 }
 0x457   :  { %v6082_v28 = vadd.f32 %v6081_v27, %v6080_v25  ;;  %v6083_v33 = vpop.f32.mrb[10].mxu1  ;;  %v6797_v25 = vld [vmem:[#allocation15 + $0x84] ss:$16 sps:$4 sm:$0xff]  }
 0x458   :  { %v6084_v34 = vpop.f32.mrb[11].mxu1  ;;  %3441 = vmatprep.subr.bf16.mxu0 %v6797_v25  ;;  %v6803_v27 = vld [vmem:[#allocation15 + $0xa4] ss:$16 sps:$4 sm:$0xff]  }
 0x459   :  { %v2621_v35 = vadd.f32 %v6082_v28, %v5709_v26  ;;  %v6085_v36 = vadd.f32 %v6084_v34, %v6083_v33  ;;  %v6801_v28 = vld [vmem:[#allocation15 + $0xa0] ss:$16 sps:$4 sm:$0xff]   ;;  %v6809_v33 = vld [vmem:[#allocation15 + $0xc4] ss:$16 sps:$4 sm:$0xff]  }
 0x45a   :  { %v6807_v34 = vld [vmem:[#allocation15 + $0xc0] ss:$16 sps:$4 sm:$0xff]   ;;  %v6857_v25 = vld [vmem:[#allocation15 + $0x1c4] ss:$16 sps:$4 sm:$0xff]  }
 0x45b   :  { %v2627_v37 = vmul.f32 0.5, %v2621_v35  ;;  %v2624_v38 = vadd.f32 %v6085_v36, %v5709_v26  ;;  %v6795_v26 = vld [vmem:[#allocation15 + $0x80] ss:$16 sps:$4 sm:$0xff]  }
 0x45c   :  { %3442 = vmatpush1.bf16.msra.mxu0 %v6795_v26  ;;  %v6813_v36 = vld [vmem:[#allocation15 + $0xe0] ss:$16 sps:$4 sm:$0xff]   ;;  %v6860_v26 = vld [vmem:[#allocation15 + $0x1cc] ss:$16 sps:$4 sm:$0xff]  }
 0x45d   :  { %v2628_v39 = vmul.f32 0.5, %v2624_v38  ;;  %v2629_v40 = vmax.f32 %v2621_v35, %v2627_v37  ;;  %3443 = vmatprep.subr.bf16.mxu0 %v6803_v27  ;;  %v6815_v35 = vld [vmem:[#allocation15 + $0xe4] ss:$16 sps:$4 sm:$0xff]   ;;  %v6855_v27 = vld [vmem:[#allocation15 + $0x1c0] ss:$16 sps:$4 sm:$0xff]  }
 0x45e   :  { %v6821_v37 = vld [vmem:[#allocation15 + $0x104] ss:$16 sps:$4 sm:$0xff]  }
 0x45f   :  { %v2630_v41 = vmax.f32 %v2624_v38, %v2628_v39  ;;  %v6819_v38 = vld [vmem:[#allocation15 + $0x100] ss:$16 sps:$4 sm:$0xff]   ;;  %v6827_v39 = vld [vmem:[#allocation15 + $0x124] ss:$16 sps:$4 sm:$0xff]  }
 0x460   :  { %3444 = vmatpush1.bf16.msra.mxu0 %v6801_v28  ;;  %v6858_v28 = vld [vmem:[#allocation15 + $0x1c8] ss:$16 sps:$4 sm:$0xff]  }
 0x461   :  { %v2631_v31 = vpack.c.bf16 %v2630_v41, %v2629_v40  ;;  %3445 = vmatprep.subr.bf16.mxu0 %v6809_v33  ;;  %v6825_v40 = vld [vmem:[#allocation15 + $0x120] ss:$16 sps:$4 sm:$0xff]   ;;  %v6833_v41 = vld [vmem:[#allocation15 + $0x144] ss:$16 sps:$4 sm:$0xff]  }
 0x462   :  { %v6863_v33 = vld [vmem:[#allocation15 + $0x1e4] ss:$16 sps:$4 sm:$0xff]  }
 0x463   :  { %6165 = vmatmul.mubr.bf16.vlgmr.msra.gmra.mrb[12].mxu1 %v2631_v31  ;;  %v6839_v31 = vld [vmem:[#allocation15 + $0x164] ss:$16 sps:$4 sm:$0xff]  }
 0x464   :  { %6169 = vmatpush3.bf16.msra.mxu1 %v6739_v42  ;;  %6184 = vmatprep.mubr.msk.bf16.mxu1 %vm7440_vm0, %v7439_v56  ;;  %v6831_v42 = vld [vmem:[#allocation15 + $0x140] ss:$16 sps:$4 sm:$0xff]  }
 0x465   :  { %6170 = vmatprep.subr.bf16.mxu1 %v7439_v56  ;;  %3446 = vmatpush1.bf16.msra.mxu0 %v6807_v34  ;;  %v6866_v34 = vld [vmem:[#allocation15 + $0x1ec] ss:$16 sps:$4 sm:$0xff]  }
 0x466   :  { %3447 = vmatprep.subr.bf16.mxu0 %v6815_v35  ;;  %v6861_v35 = vld [vmem:[#allocation15 + $0x1e0] ss:$16 sps:$4 sm:$0xff]  }
 0x468   :  { %6171 = vmatpush3.bf16.msra.mxu1 %v6740_v43  ;;  %v6837_v43 = vld [vmem:[#allocation15 + $0x160] ss:$16 sps:$4 sm:$0xff]  }
 0x469   :  { %6172 = vmatprep.subr.bf16.mxu1 %v7439_v56  ;;  %3448 = vmatpush1.bf16.msra.mxu0 %v6813_v36  ;;  %v6864_v36 = vld [vmem:[#allocation15 + $0x1e8] ss:$16 sps:$4 sm:$0xff]  }
 0x46a   :  { %3449 = vmatprep.subr.bf16.mxu0 %v6821_v37  ;;  %v6869_v37 = vld [vmem:[#allocation16 + $0x4] ss:$28 sps:$4 sm:$0xff]  }
 0x46c   :  { %6173 = vmatpush3.bf16.msra.mxu1 %v6741_v44  ;;  %v6845_v44 = vld [vmem:[#allocation15 + $0x184] ss:$16 sps:$4 sm:$0xff]  }
 0x46d   :  { %6174 = vmatprep.subr.bf16.mxu1 %v7439_v56  ;;  %3450 = vmatpush1.bf16.msra.mxu0 %v6819_v38  ;;  %v6872_v38 = vld [vmem:[#allocation16 + $0xc] ss:$28 sps:$4 sm:$0xff]  }
 0x46e   :  { %3451 = vmatprep.subr.bf16.mxu0 %v6827_v39  ;;  %v2882_v39 = vld [vmem:[%s7925_s12] sm:$0x3] }
 0x470   :  { %6175 = vmatpush3.bf16.msra.mxu1 %v6742_v45  ;;  %v6843_v45 = vld [vmem:[#allocation15 + $0x180] ss:$16 sps:$4 sm:$0xff]  }
 0x471   :  { %6176 = vmatprep.subr.bf16.mxu1 %v7439_v56  ;;  %3452 = vmatpush1.bf16.msra.mxu0 %v6825_v40  ;;  %v2887_v40 = vrot.slane %v2882_v39, %v7745_v30 }
 0x472   :  { %3453 = vmatprep.subr.bf16.mxu0 %v6833_v41  ;;  %v2891_v41 = vrot.slane %v2882_v39, %v7750_v32  ;;  %v6929_v39 = vld [vmem:[#allocation16 + $0x234] ss:$28 sps:$4 sm:$0xff]  }
 0x474   :  { %6177 = vmatpush3.bf16.msra.mxu1 %v6743_v46  ;;  %v5735_v46 = vld [vmem:[%s7923_s10] ss:$0 sm:$0xff] }
 0x475   :  { %6178 = vmatprep.subr.bf16.mxu1 %v7439_v56  ;;  %3454 = vmatpush1.bf16.msra.mxu0 %v6831_v42 }
 0x476   :  { %3455 = vmatprep.subr.bf16.mxu0 %v6839_v31 }
 0x478   :  { %6179 = vmatpush3.bf16.msra.mxu1 %v6744_v47 }
 0x479   :  { %6180 = vmatprep.subr.bf16.mxu1 %v7439_v56  ;;  %3456 = vmatpush1.bf16.msra.mxu0 %v6837_v43 }
 0x47a   :  { %3457 = vmatprep.subr.bf16.mxu0 %v6845_v44 }
 0x47c   :  { %6181 = vmatpush3.bf16.msra.mxu1 %v6745_v48 }
 0x47d   :  { %6182 = vmatprep.subr.bf16.mxu1 %v7439_v56  ;;  %v6750_v56 = vld [vmem:[#allocation13 + $0x10] ss:$8 sps:$4 sm:$0xff]   ;;  %3458 = vmatpush1.bf16.msra.mxu0 %v6843_v45 }
 0x47e   :  { %3459 = vmatprep.subr.bf16.mxu0 %v6851_v21  ;;  %v6903_v21 = vld [vmem:[#allocation16 + $0x150] ss:$28 sps:$4 sm:$0xff]  }
 0x480   :  { %6183 = vmatpush3.bf16.msra.mxu1 %v6746_v49 }
 0x481   :  { %2974 = vmatprep.subr.bf16.mxu1 %v6749_v50  ;;  %3460 = vmatpush1.bf16.msra.mxu0 %v6849_v23  ;;  %v6911_v23 = vld [vmem:[#allocation16 + $0x18c] ss:$28 sps:$4 sm:$0xff]  }
 0x482   :  { %3461 = vmatprep.subr.bf16.mxu0 %v6857_v25  ;;  %v6909_v25 = vld [vmem:[#allocation16 + $0x188] ss:$28 sps:$4 sm:$0xff]  }
 0x485   :  { %3462 = vmatpush1.bf16.msra.mxu0 %v6855_v27  ;;  %v6917_v27 = vld [vmem:[#allocation16 + $0x1c4] ss:$28 sps:$4 sm:$0xff]  }
 0x486   :  { %3463 = vmatprep.subr.bf16.mxu0 %v6863_v33  ;;  %v6915_v33 = vld [vmem:[#allocation16 + $0x1c0] ss:$28 sps:$4 sm:$0xff]  }
 0x489   :  { %3464 = vmatpush1.bf16.msra.mxu0 %v6861_v35  ;;  %v6923_v35 = vld [vmem:[#allocation16 + $0x1fc] ss:$28 sps:$4 sm:$0xff]  }
 0x48a   :  { %4984 = vmatprep.subr.bf16.mxu0 %v6869_v37  ;;  %v6921_v37 = vld [vmem:[#allocation16 + $0x1f8] ss:$28 sps:$4 sm:$0xff]  }
 0x536   :  { %v2737_v52 = vpop.f32.mrb[12].mxu1 }
 0x537   :  { %v2738_v53 = vadd.f32 %v5726_v51, %v2737_v52  ;;  %v6166_v54 = vpop.f32.mrb[13].mxu1 }
 0x538   :  { %v2740_v55 = vpop.f32.mrb[14].mxu1 }
 0x539   :  { %v2744_v57 = vmul.f32 0.5, %v2738_v53  ;;  %v2741_v58 = vadd.f32 %v5726_v51, %v2740_v55  ;;  %v6167_v59 = vpop.f32.mrb[15].mxu1 }
 0x53b   :  { %v2745_v60 = vmul.f32 0.5, %v2741_v58  ;;  %v2746_v61 = vmax.f32 %v2738_v53, %v2744_v57 }
 0x53d   :  { %v2747_v62 = vmax.f32 %v2741_v58, %v2745_v60  ;;  %v6774_v58 = vld [vmem:[#allocation15 + $0x8] ss:$16 sps:$4 sm:$0xff]   ;;  %v6782_v60 = vld [vmem:[#allocation15 + $0x2c] ss:$16 sps:$4 sm:$0xff]  }
 0x53f   :  { %v2748_v1 = vpack.c.bf16 %v2747_v62, %v2746_v61  ;;  %v6780_v61 = vld [vmem:[#allocation15 + $0x28] ss:$16 sps:$4 sm:$0xff]   ;;  %v6788_v62 = vld [vmem:[#allocation15 + $0x4c] ss:$16 sps:$4 sm:$0xff]  }
 0x541   :  { %6185 = vmatmul.mubr.bf16.vlgmr.msra.gmra.mrb[16].mxu1 %v2748_v1  ;;  %v6794_v1 = vld [vmem:[#allocation15 + $0x6c] ss:$16 sps:$4 sm:$0xff]  }
 0x542   :  { %2975 = vmatpush1.bf16.msra.mxu1 %v6747_v63  ;;  %3006 = vmatprep.mubr.bf16.mxu1 %v7438_v0  ;;  %v6765_v0 = vld [vmem:[#allocation13 + $0x60] ss:$8 sps:$4 sm:$0xff]  }
 0x543   :  { %2976 = vmatprep.subr.bf16.mxu1 %v6752_v2  ;;  %v6786_v63 = vld [vmem:[#allocation15 + $0x48] ss:$16 sps:$4 sm:$0xff]  }
 0x544   :  { %v6792_v2 = vld [vmem:[#allocation15 + $0x68] ss:$16 sps:$4 sm:$0xff]  }
 0x546   :  { %2977 = vmatpush1.bf16.msra.mxu1 %v6750_v56  ;;  %v6800_v56 = vld [vmem:[#allocation15 + $0x8c] ss:$16 sps:$4 sm:$0xff]  }
 0x547   :  { %2978 = vmatprep.subr.bf16.mxu1 %v6755_v3  ;;  %v6798_v3 = vld [vmem:[#allocation15 + $0x88] ss:$16 sps:$4 sm:$0xff]  }
 0x54a   :  { %2979 = vmatpush1.bf16.msra.mxu1 %v6753_v4  ;;  %v6806_v4 = vld [vmem:[#allocation15 + $0xac] ss:$16 sps:$4 sm:$0xff]  }
 0x54b   :  { %2980 = vmatprep.subr.bf16.mxu1 %v6758_v5  ;;  %v6804_v5 = vld [vmem:[#allocation15 + $0xa8] ss:$16 sps:$4 sm:$0xff]  }
 0x54e   :  { %2981 = vmatpush1.bf16.msra.mxu1 %v6756_v6  ;;  %v6812_v6 = vld [vmem:[#allocation15 + $0xcc] ss:$16 sps:$4 sm:$0xff]  }
 0x54f   :  { %2982 = vmatprep.subr.bf16.mxu1 %v6761_v7  ;;  %v6810_v7 = vld [vmem:[#allocation15 + $0xc8] ss:$16 sps:$4 sm:$0xff]  }
 0x552   :  { %2983 = vmatpush1.bf16.msra.mxu1 %v6759_v8  ;;  %v6818_v8 = vld [vmem:[#allocation15 + $0xec] ss:$16 sps:$4 sm:$0xff]  }
 0x553   :  { %2984 = vmatprep.subr.bf16.mxu1 %v6764_v9  ;;  %v6816_v9 = vld [vmem:[#allocation15 + $0xe8] ss:$16 sps:$4 sm:$0xff]  }
 0x556   :  { %2985 = vmatpush1.bf16.msra.mxu1 %v6762_v10  ;;  %v6824_v10 = vld [vmem:[#allocation15 + $0x10c] ss:$16 sps:$4 sm:$0xff]  }
 0x557   :  { %2986 = vmatprep.subr.bf16.mxu1 %v6767_v11  ;;  %v6822_v11 = vld [vmem:[#allocation15 + $0x108] ss:$16 sps:$4 sm:$0xff]  }
 0x55a   :  { %2987 = vmatpush1.bf16.msra.mxu1 %v6765_v0  ;;  %v6830_v0 = vld [vmem:[#allocation15 + $0x12c] ss:$16 sps:$4 sm:$0xff]  }
 0x55b   :  { %2988 = vmatprep.subr.bf16.mxu1 %v6770_v12  ;;  %v6828_v12 = vld [vmem:[#allocation15 + $0x128] ss:$16 sps:$4 sm:$0xff]  }
 0x55e   :  { %2989 = vmatpush1.bf16.msra.mxu1 %v6768_v13  ;;  %v6836_v13 = vld [vmem:[#allocation15 + $0x14c] ss:$16 sps:$4 sm:$0xff]  }
 0x55f   :  { %3476 = vmatprep.subr.bf16.mxu1 %v6776_v16  ;;  %v6840_v16 = vld [vmem:[#allocation15 + $0x168] ss:$16 sps:$4 sm:$0xff]  }
 0x614   :  { %v2854_v47 = vpop.f32.mrb[16].mxu1 }
 0x615   :  { %v2855_v48 = vadd.f32 %v5735_v46, %v2854_v47  ;;  %v6186_v49 = vpop.f32.mrb[17].mxu1 }
 0x616   :  { %v2857_v50 = vpop.f32.mrb[18].mxu1 }
 0x617   :  { %v2861_v51 = vmul.f32 0.5, %v2855_v48  ;;  %v2858_v52 = vadd.f32 %v5735_v46, %v2857_v50  ;;  %v6187_v53 = vpop.f32.mrb[19].mxu1 }
 0x619   :  { %v2862_v54 = vmul.f32 0.5, %v2858_v52  ;;  %v2863_v55 = vmax.f32 %v2855_v48, %v2861_v51 }
 0x61b   :  { %v2864_v57 = vmax.f32 %v2858_v52, %v2862_v54 }
 0x61d   :  { %v2865_v59 = vpack.c.bf16 %v2864_v57, %v2863_v55 }
 0x61f   :  { %3007 = vmatmul.mubr.bf16.vlgmr.msra.gmra.mrb[20].mxu1 %v2865_v59 }
 0x620   :  { %3477 = vmatpush1.bf16.msra.mxu1 %v6774_v58 }
 0x621   :  { %3478 = vmatprep.subr.bf16.mxu1 %v6782_v60  ;;  %v6867_v60 = vld [vmem:[#allocation16] ss:$28 sps:$4 sm:$0xff]  }
 0x624   :  { %3479 = vmatpush1.bf16.msra.mxu1 %v6780_v61  ;;  %v6870_v61 = vld [vmem:[#allocation16 + $0x8] ss:$28 sps:$4 sm:$0xff]  }
 0x625   :  { %3480 = vmatprep.subr.bf16.mxu1 %v6788_v62  ;;  %v6875_v62 = vld [vmem:[#allocation16 + $0x3c] ss:$28 sps:$4 sm:$0xff]  }
 0x628   :  { %3481 = vmatpush1.bf16.msra.mxu1 %v6786_v63  ;;  %v6878_v63 = vld [vmem:[#allocation16 + $0x44] ss:$28 sps:$4 sm:$0xff]  }
 0x629   :  { %3482 = vmatprep.subr.bf16.mxu1 %v6794_v1  ;;  %v6873_v1 = vld [vmem:[#allocation16 + $0x38] ss:$28 sps:$4 sm:$0xff]  }
 0x62c   :  { %3483 = vmatpush1.bf16.msra.mxu1 %v6792_v2  ;;  %v6876_v2 = vld [vmem:[#allocation16 + $0x40] ss:$28 sps:$4 sm:$0xff]  }
 0x62d   :  { %3484 = vmatprep.subr.bf16.mxu1 %v6800_v56  ;;  %v6881_v56 = vld [vmem:[#allocation16 + $0x74] ss:$28 sps:$4 sm:$0xff]  }
 0x630   :  { %3485 = vmatpush1.bf16.msra.mxu1 %v6798_v3  ;;  %v6884_v3 = vld [vmem:[#allocation16 + $0x7c] ss:$28 sps:$4 sm:$0xff]  }
 0x631   :  { %3486 = vmatprep.subr.bf16.mxu1 %v6806_v4  ;;  %v6879_v4 = vld [vmem:[#allocation16 + $0x70] ss:$28 sps:$4 sm:$0xff]  }
 0x634   :  { %3487 = vmatpush1.bf16.msra.mxu1 %v6804_v5  ;;  %v6882_v5 = vld [vmem:[#allocation16 + $0x78] ss:$28 sps:$4 sm:$0xff]  }
 0x635   :  { %3488 = vmatprep.subr.bf16.mxu1 %v6812_v6  ;;  %v6887_v6 = vld [vmem:[#allocation16 + $0xac] ss:$28 sps:$4 sm:$0xff]  }
 0x638   :  { %3489 = vmatpush1.bf16.msra.mxu1 %v6810_v7  ;;  %v6890_v7 = vld [vmem:[#allocation16 + $0xb4] ss:$28 sps:$4 sm:$0xff]  }
 0x639   :  { %3490 = vmatprep.subr.bf16.mxu1 %v6818_v8  ;;  %v6885_v8 = vld [vmem:[#allocation16 + $0xa8] ss:$28 sps:$4 sm:$0xff]  }
 0x63c   :  { %3491 = vmatpush1.bf16.msra.mxu1 %v6816_v9  ;;  %v6888_v9 = vld [vmem:[#allocation16 + $0xb0] ss:$28 sps:$4 sm:$0xff]  }
 0x63d   :  { %3492 = vmatprep.subr.bf16.mxu1 %v6824_v10  ;;  %v6893_v10 = vld [vmem:[#allocation16 + $0xe4] ss:$28 sps:$4 sm:$0xff]  }
 0x640   :  { %3493 = vmatpush1.bf16.msra.mxu1 %v6822_v11  ;;  %v6896_v11 = vld [vmem:[#allocation16 + $0xec] ss:$28 sps:$4 sm:$0xff]  }
 0x641   :  { %3494 = vmatprep.subr.bf16.mxu1 %v6830_v0  ;;  %v6891_v0 = vld [vmem:[#allocation16 + $0xe0] ss:$28 sps:$4 sm:$0xff]  }
 0x644   :  { %3495 = vmatpush1.bf16.msra.mxu1 %v6828_v12  ;;  %v6894_v12 = vld [vmem:[#allocation16 + $0xe8] ss:$28 sps:$4 sm:$0xff]  }
 0x645   :  { %3496 = vmatprep.subr.bf16.mxu1 %v6836_v13  ;;  %v6899_v13 = vld [vmem:[#allocation16 + $0x11c] ss:$28 sps:$4 sm:$0xff]  }
 0x648   :  { %3497 = vmatpush1.bf16.msra.mxu1 %v6834_v14  ;;  %v6902_v14 = vld [vmem:[#allocation16 + $0x124] ss:$28 sps:$4 sm:$0xff]  }
 0x649   :  { %3498 = vmatprep.subr.bf16.mxu1 %v6842_v15  ;;  %v6897_v15 = vld [vmem:[#allocation16 + $0x118] ss:$28 sps:$4 sm:$0xff]  }
 0x64c   :  { %3499 = vmatpush1.bf16.msra.mxu1 %v6840_v16  ;;  %v6900_v16 = vld [vmem:[#allocation16 + $0x120] ss:$28 sps:$4 sm:$0xff]  }
 0x64d   :  { %3500 = vmatprep.subr.bf16.mxu1 %v6848_v17  ;;  %v6905_v17 = vld [vmem:[#allocation16 + $0x154] ss:$28 sps:$4 sm:$0xff]  }
 0x650   :  { %3501 = vmatpush1.bf16.msra.mxu1 %v6846_v20  ;;  %v6908_v20 = vld [vmem:[#allocation16 + $0x15c] ss:$28 sps:$4 sm:$0xff]  }
 0x651   :  { %3502 = vmatprep.subr.bf16.mxu1 %v6854_v22  ;;  %v6906_v22 = vld [vmem:[#allocation16 + $0x158] ss:$28 sps:$4 sm:$0xff]  }
 0x654   :  { %3503 = vmatpush1.bf16.msra.mxu1 %v6852_v24  ;;  %v6914_v24 = vld [vmem:[#allocation16 + $0x194] ss:$28 sps:$4 sm:$0xff]  }
 0x655   :  { %3504 = vmatprep.subr.bf16.mxu1 %v6860_v26  ;;  %v6912_v26 = vld [vmem:[#allocation16 + $0x190] ss:$28 sps:$4 sm:$0xff]  }
 0x658   :  { %3505 = vmatpush1.bf16.msra.mxu1 %v6858_v28  ;;  %v6920_v28 = vld [vmem:[#allocation16 + $0x1cc] ss:$28 sps:$4 sm:$0xff]  }
 0x659   :  { %3506 = vmatprep.subr.bf16.mxu1 %v6866_v34  ;;  %v6918_v34 = vld [vmem:[#allocation16 + $0x1c8] ss:$28 sps:$4 sm:$0xff]  }
 0x65c   :  { %3507 = vmatpush1.bf16.msra.mxu1 %v6864_v36  ;;  %v6926_v36 = vld [vmem:[#allocation16 + $0x204] ss:$28 sps:$4 sm:$0xff]  }
 0x65d   :  { %5070 = vmatprep.subr.bf16.mxu1 %v6872_v38  ;;  %v6924_v38 = vld [vmem:[#allocation16 + $0x200] ss:$28 sps:$4 sm:$0xff]  }
 0x6f2   :  { %v3008_v42 = vpop.f32.mrb[20].mxu1 }
 0x6f3   :  { %v3009_v31 = vadd.f32 %v3008_v42, %v2887_v40  ;;  %v3010_v43 = vpop.f32.mrb[21].mxu1  ;;  %v6930_v42 = vld [vmem:[#allocation16 + $0x238] ss:$28 sps:$4 sm:$0xff]  }
 0x6f4   :  { %v3011_v44 = vadd.f32 %v3010_v43, %v2891_v41  ;;  %v3012_v45 = vpop.f32.mrb[22].mxu1  ;;  %v6938_v43 = vld [vmem:[#allocation16 + $0x274] ss:$28 sps:$4 sm:$0xff]  }
 0x6f5   :  { %v3017_v46 = vmul.f32 0.5, %v3009_v31  ;;  %v3013_v47 = vadd.f32 %v3012_v45, %v2887_v40  ;;  %v3014_v48 = vpop.f32.mrb[23].mxu1  ;;  %v6932_v40 = vld [vmem:[#allocation16 + $0x23c] ss:$28 sps:$4 sm:$0xff]   ;;  %v6936_v45 = vld [vmem:[#allocation16 + $0x270] ss:$28 sps:$4 sm:$0xff]  }
 0x6f6   :  { %v3018_v49 = vmul.f32 0.5, %v3011_v44  ;;  %v3015_v50 = vadd.f32 %v3014_v48, %v2891_v41  ;;  %v6927_v41 = vld [vmem:[#allocation16 + $0x230] ss:$28 sps:$4 sm:$0xff]   ;;  %v6939_v48 = vld [vmem:[#allocation16 + $0x2a0] ss:$28 sps:$4 sm:$0xff]  }
 0x6f7   :  { %v3019_v51 = vmul.f32 0.5, %v3013_v47  ;;  %v3021_v53 = vmax.f32 %v3009_v31, %v3017_v46  ;;  %v6935_v31 = vld [vmem:[#allocation16 + $0x26c] ss:$28 sps:$4 sm:$0xff]   ;;  %v6941_v46 = vld [vmem:[#allocation16 + $0x2a4] ss:$28 sps:$4 sm:$0xff]  }
 0x6f8   :  { %v3020_v52 = vmul.f32 0.5, %v3015_v50  ;;  %v3022_v55 = vmax.f32 %v3011_v44, %v3018_v49  ;;  %v6933_v44 = vld [vmem:[#allocation16 + $0x268] ss:$28 sps:$4 sm:$0xff]  }
 0x6f9   :  { %v3023_v54 = vmax.f32 %v3013_v47, %v3019_v51  ;;  %v6944_v47 = vld [vmem:[#allocation16 + $0x2ac] ss:$28 sps:$4 sm:$0xff]   ;;  %v6950_v51 = vld [vmem:[#allocation16 + $0x2e4] ss:$28 sps:$4 sm:$0xff]  }
 0x6fa   :  { %v3024_v57 = vmax.f32 %v3015_v50, %v3020_v52  ;;  %v6942_v49 = vld [vmem:[#allocation16 + $0x2a8] ss:$28 sps:$4 sm:$0xff]   ;;  %v6947_v50 = vld [vmem:[#allocation16 + $0x2dc] ss:$28 sps:$4 sm:$0xff]  }
 0x6fb   :  { %v3025_v58 = vpack.c.bf16 %v3023_v54, %v3021_v53  ;;  %v6945_v52 = vld [vmem:[#allocation16 + $0x2d8] ss:$28 sps:$4 sm:$0xff]   ;;  %v6948_v53 = vld [vmem:[#allocation16 + $0x2e0] ss:$28 sps:$4 sm:$0xff]  }
 0x6fc   :  { %v3026_v59 = vpack.c.bf16 %v3024_v57, %v3022_v55  ;;  %v6953_v54 = vld [vmem:[#allocation16 + $0x314] ss:$28 sps:$4 sm:$0xff]   ;;  %v6956_v55 = vld [vmem:[#allocation16 + $0x31c] ss:$28 sps:$4 sm:$0xff]  }
 0x6fd   :  { %v6951_v57 = vld [vmem:[#allocation16 + $0x310] ss:$28 sps:$4 sm:$0xff]  }
 0x6fe   :  { %3465 = vmatprep.mubr.bf16.mxu0 %v3026_v59  ;;  %3508 = vmatprep.mubr.bf16.mxu1 %v3026_v59  ;;  %v6959_v59 = vld [vmem:[#allocation16 + $0x34c] ss:$28 sps:$4 sm:$0xff]  }
 0x6ff   :  { %3466 = vmatmul.mubr.bf16.vlgmr.msra.gmra.mrb[8].mxu0 %v3025_v58  ;;  %3509 = vmatmul.mubr.bf16.vlgmr.msra.gmra.mrb[24].mxu1 %v3025_v58  ;;  %v6954_v58 = vld [vmem:[#allocation16 + $0x318] ss:$28 sps:$4 sm:$0xff]  }
 0x700   :  { %4985 = vmatpush1.bf16.msra.mxu0 %v6867_v60  ;;  %5071 = vmatpush1.bf16.msra.mxu1 %v6870_v61  ;;  %v6962_v60 = vld [vmem:[#allocation16 + $0x354] ss:$28 sps:$4 sm:$0xff]   ;;  %v6957_v61 = vld [vmem:[#allocation16 + $0x348] ss:$28 sps:$4 sm:$0xff]  }
 0x701   :  { %4986 = vmatprep.subr.bf16.mxu0 %v6875_v62  ;;  %5072 = vmatprep.subr.bf16.mxu1 %v6878_v63  ;;  %v6960_v62 = vld [vmem:[#allocation16 + $0x350] ss:$28 sps:$4 sm:$0xff]   ;;  %v6965_v63 = vld [vmem:[#allocation16 + $0x384] ss:$28 sps:$4 sm:$0xff]  }
 0x704   :  { %4987 = vmatpush1.bf16.msra.mxu0 %v6873_v1  ;;  %5073 = vmatpush1.bf16.msra.mxu1 %v6876_v2  ;;  %v6968_v1 = vld [vmem:[#allocation16 + $0x38c] ss:$28 sps:$4 sm:$0xff]   ;;  %v3091_v2 = vld [vmem:[%s7927_s14] sm:$0xf] }
 0x705   :  { %4988 = vmatprep.subr.bf16.mxu0 %v6881_v56  ;;  %5074 = vmatprep.subr.bf16.mxu1 %v6884_v3  ;;  %v3096_v56 = vrot.slane %v3091_v2, %v7745_v30  ;;  %v3104_v3 = vrot.slane %v3091_v2, %v7757_v18 }
 0x708   :  { %4989 = vmatpush1.bf16.msra.mxu0 %v6879_v4  ;;  %5075 = vmatpush1.bf16.msra.mxu1 %v6882_v5  ;;  %v3100_v4 = vrot.slane %v3091_v2, %v7750_v32  ;;  %v3108_v5 = vrot.slane %v3091_v2, %v7760_v19  ;;  %v6995_v2 = vld [vmem:[#allocation16 + $0x49c] ss:$28 sps:$4 sm:$0xff]  }
 0x709   :  { %4990 = vmatprep.subr.bf16.mxu0 %v6887_v6  ;;  %5076 = vmatprep.subr.bf16.mxu1 %v6890_v7 }
 0x70c   :  { %4991 = vmatpush1.bf16.msra.mxu0 %v6885_v8  ;;  %5077 = vmatpush1.bf16.msra.mxu1 %v6888_v9 }
 0x70d   :  { %4992 = vmatprep.subr.bf16.mxu0 %v6893_v10  ;;  %5078 = vmatprep.subr.bf16.mxu1 %v6896_v11 }
 0x710   :  { %4993 = vmatpush1.bf16.msra.mxu0 %v6891_v0  ;;  %5079 = vmatpush1.bf16.msra.mxu1 %v6894_v12 }
 0x711   :  { %4994 = vmatprep.subr.bf16.mxu0 %v6899_v13  ;;  %5080 = vmatprep.subr.bf16.mxu1 %v6902_v14 }
 0x714   :  { %4995 = vmatpush1.bf16.msra.mxu0 %v6897_v15  ;;  %5081 = vmatpush1.bf16.msra.mxu1 %v6900_v16 }
 0x715   :  { %4996 = vmatprep.subr.bf16.mxu0 %v6905_v17  ;;  %5082 = vmatprep.subr.bf16.mxu1 %v6908_v20 }
 0x718   :  { %4997 = vmatpush1.bf16.msra.mxu0 %v6903_v21  ;;  %5083 = vmatpush1.bf16.msra.mxu1 %v6906_v22 }
 0x719   :  { %4998 = vmatprep.subr.bf16.mxu0 %v6911_v23  ;;  %5084 = vmatprep.subr.bf16.mxu1 %v6914_v24 }
 0x71c   :  { %4999 = vmatpush1.bf16.msra.mxu0 %v6909_v25  ;;  %5085 = vmatpush1.bf16.msra.mxu1 %v6912_v26 }
 0x71d   :  { %5000 = vmatprep.subr.bf16.mxu0 %v6917_v27  ;;  %5086 = vmatprep.subr.bf16.mxu1 %v6920_v28 }
 0x720   :  { %5001 = vmatpush1.bf16.msra.mxu0 %v6915_v33  ;;  %5087 = vmatpush1.bf16.msra.mxu1 %v6918_v34 }
 0x721   :  { %5002 = vmatprep.subr.bf16.mxu0 %v6923_v35  ;;  %5088 = vmatprep.subr.bf16.mxu1 %v6926_v36 }
 0x724   :  { %5003 = vmatpush1.bf16.msra.mxu0 %v6921_v37  ;;  %5089 = vmatpush1.bf16.msra.mxu1 %v6924_v38 }
 0x725   :  { %5004 = vmatprep.subr.bf16.mxu0 %v6929_v39  ;;  %5090 = vmatprep.subr.bf16.mxu1 %v6932_v40 }
 0x728   :  { %5005 = vmatpush1.bf16.msra.mxu0 %v6927_v41  ;;  %5091 = vmatpush1.bf16.msra.mxu1 %v6930_v42 }
 0x729   :  { %5006 = vmatprep.subr.bf16.mxu0 %v6935_v31  ;;  %5092 = vmatprep.subr.bf16.mxu1 %v6938_v43 }
 0x72c   :  { %5007 = vmatpush1.bf16.msra.mxu0 %v6933_v44  ;;  %5093 = vmatpush1.bf16.msra.mxu1 %v6936_v45 }
 0x72d   :  { %5008 = vmatprep.subr.bf16.mxu0 %v6941_v46  ;;  %5094 = vmatprep.subr.bf16.mxu1 %v6944_v47  ;;  %v6963_v46 = vld [vmem:[#allocation16 + $0x380] ss:$28 sps:$4 sm:$0xff]   ;;  %v6966_v47 = vld [vmem:[#allocation16 + $0x388] ss:$28 sps:$4 sm:$0xff]  }
 0x730   :  { %5009 = vmatpush1.bf16.msra.mxu0 %v6939_v48  ;;  %5095 = vmatpush1.bf16.msra.mxu1 %v6942_v49  ;;  %v6971_v48 = vld [vmem:[#allocation16 + $0x3bc] ss:$28 sps:$4 sm:$0xff]   ;;  %v6974_v49 = vld [vmem:[#allocation16 + $0x3c4] ss:$28 sps:$4 sm:$0xff]  }
 0x731   :  { %5010 = vmatprep.subr.bf16.mxu0 %v6947_v50  ;;  %5096 = vmatprep.subr.bf16.mxu1 %v6950_v51  ;;  %v6969_v50 = vld [vmem:[#allocation16 + $0x3b8] ss:$28 sps:$4 sm:$0xff]   ;;  %v6972_v51 = vld [vmem:[#allocation16 + $0x3c0] ss:$28 sps:$4 sm:$0xff]  }
 0x734   :  { %5011 = vmatpush1.bf16.msra.mxu0 %v6945_v52  ;;  %5097 = vmatpush1.bf16.msra.mxu1 %v6948_v53  ;;  %v6977_v52 = vld [vmem:[#allocation16 + $0x3f4] ss:$28 sps:$4 sm:$0xff]   ;;  %v6980_v53 = vld [vmem:[#allocation16 + $0x3fc] ss:$28 sps:$4 sm:$0xff]  }
 0x735   :  { %5012 = vmatprep.subr.bf16.mxu0 %v6953_v54  ;;  %5098 = vmatprep.subr.bf16.mxu1 %v6956_v55  ;;  %v6975_v54 = vld [vmem:[#allocation16 + $0x3f0] ss:$28 sps:$4 sm:$0xff]   ;;  %v6978_v55 = vld [vmem:[#allocation16 + $0x3f8] ss:$28 sps:$4 sm:$0xff]  }
 0x738   :  { %5013 = vmatpush1.bf16.msra.mxu0 %v6951_v57  ;;  %5099 = vmatpush1.bf16.msra.mxu1 %v6954_v58  ;;  %v6983_v57 = vld [vmem:[#allocation16 + $0x42c] ss:$28 sps:$4 sm:$0xff]   ;;  %v6986_v58 = vld [vmem:[#allocation16 + $0x434] ss:$28 sps:$4 sm:$0xff]  }
 0x739   :  { %5014 = vmatprep.subr.bf16.mxu0 %v6959_v59  ;;  %5100 = vmatprep.subr.bf16.mxu1 %v6962_v60  ;;  %v6981_v59 = vld [vmem:[#allocation16 + $0x428] ss:$28 sps:$4 sm:$0xff]   ;;  %v6984_v60 = vld [vmem:[#allocation16 + $0x430] ss:$28 sps:$4 sm:$0xff]  }
 0x73c   :  { %5015 = vmatpush1.bf16.msra.mxu0 %v6957_v61  ;;  %5101 = vmatpush1.bf16.msra.mxu1 %v6960_v62  ;;  %v6989_v61 = vld [vmem:[#allocation16 + $0x464] ss:$28 sps:$4 sm:$0xff]   ;;  %v6992_v62 = vld [vmem:[#allocation16 + $0x46c] ss:$28 sps:$4 sm:$0xff]  }
 0x73d   :  { %5027 = vmatprep.subr.bf16.mxu0 %v6965_v63  ;;  %5113 = vmatprep.subr.bf16.mxu1 %v6968_v1  ;;  %v6987_v63 = vld [vmem:[#allocation16 + $0x460] ss:$28 sps:$4 sm:$0xff]   ;;  %v6990_v1 = vld [vmem:[#allocation16 + $0x468] ss:$28 sps:$4 sm:$0xff]  }
 0x7d2   :  { %v3467_v6 = vpop.f32.mrb[8].mxu0  ;;  %v3510_v7 = vpop.f32.mrb[24].mxu1 }
 0x7d3   :  { %v3468_v8 = vadd.f32 %v3467_v6, %v3096_v56  ;;  %v3511_v9 = vadd.f32 %v3510_v7, %v3104_v3  ;;  %v3469_v10 = vpop.f32.mrb[9].mxu0  ;;  %v3512_v11 = vpop.f32.mrb[25].mxu1  ;;  %v7004_v6 = vld [vmem:[#allocation16 + $0x4dc] ss:$28 sps:$4 sm:$0xff]   ;;  %v6999_v7 = vld [vmem:[#allocation16 + $0x4d0] ss:$28 sps:$4 sm:$0xff]  }
 0x7d4   :  { %v3470_v0 = vadd.f32 %v3469_v10, %v3100_v4  ;;  %v3513_v12 = vadd.f32 %v3512_v11, %v3108_v5  ;;  %v3471_v13 = vpop.f32.mrb[10].mxu0  ;;  %v3514_v14 = vpop.f32.mrb[26].mxu1  ;;  %v7010_v10 = vld [vmem:[#allocation16 + $0x514] ss:$28 sps:$4 sm:$0xff]   ;;  %v7005_v11 = vld [vmem:[#allocation16 + $0x508] ss:$28 sps:$4 sm:$0xff]  }
 0x7d5   :  { %v3519_v15 = vmul.f32 0.5, %v3468_v8  ;;  %v3521_v16 = vmul.f32 0.5, %v3511_v9  ;;  %v3472_v17 = vadd.f32 %v3471_v13, %v3096_v56  ;;  %v3515_v20 = vadd.f32 %v3514_v14, %v3104_v3  ;;  %v3473_v21 = vpop.f32.mrb[11].mxu0  ;;  %v3516_v22 = vpop.f32.mrb[27].mxu1  ;;  %v6998_v56 = vld [vmem:[#allocation16 + $0x4a4] ss:$28 sps:$4 sm:$0xff]  }
 0x7d6   :  { %v3520_v23 = vmul.f32 0.5, %v3470_v0  ;;  %v3522_v24 = vmul.f32 0.5, %v3513_v12  ;;  %v3474_v25 = vadd.f32 %v3473_v21, %v3100_v4  ;;  %v3517_v26 = vadd.f32 %v3516_v22, %v3108_v5  ;;  %v6993_v3 = vld [vmem:[#allocation16 + $0x498] ss:$28 sps:$4 sm:$0xff]   ;;  %v6996_v4 = vld [vmem:[#allocation16 + $0x4a0] ss:$28 sps:$4 sm:$0xff]  }
 0x7d7   :  { %v3523_v27 = vmul.f32 0.5, %v3472_v17  ;;  %v3525_v28 = vmul.f32 0.5, %v3515_v20  ;;  %v3527_v35 = vmax.f32 %v3468_v8, %v3519_v15  ;;  %v3529_v36 = vmax.f32 %v3511_v9, %v3521_v16  ;;  %v7001_v5 = vld [vmem:[#allocation16 + $0x4d4] ss:$28 sps:$4 sm:$0xff]   ;;  %v7007_v9 = vld [vmem:[#allocation16 + $0x50c] ss:$28 sps:$4 sm:$0xff]  }
 0x7d8   :  { %v3524_v33 = vmul.f32 0.5, %v3474_v25  ;;  %v3526_v34 = vmul.f32 0.5, %v3517_v26  ;;  %v3528_v39 = vmax.f32 %v3470_v0, %v3520_v23  ;;  %v3530_v40 = vmax.f32 %v3513_v12, %v3522_v24  ;;  %v7002_v8 = vld [vmem:[#allocation16 + $0x4d8] ss:$28 sps:$4 sm:$0xff]   ;;  %v7008_v0 = vld [vmem:[#allocation16 + $0x510] ss:$28 sps:$4 sm:$0xff]  }
 0x7d9   :  { %v3531_v37 = vmax.f32 %v3472_v17, %v3523_v27  ;;  %v3533_v38 = vmax.f32 %v3515_v20, %v3525_v28  ;;  %v7013_v12 = vld [vmem:[#allocation16 + $0x544] ss:$28 sps:$4 sm:$0xff]   ;;  %v7016_v13 = vld [vmem:[#allocation16 + $0x54c] ss:$28 sps:$4 sm:$0xff]   ;;  %v7019_v16 = vld [vmem:[#allocation16 + $0x57c] ss:$28 sps:$4 sm:$0xff]  }
 0x7da   :  { %v3532_v41 = vmax.f32 %v3474_v25, %v3524_v33  ;;  %v3534_v42 = vmax.f32 %v3517_v26, %v3526_v34  ;;  %v7011_v14 = vld [vmem:[#allocation16 + $0x540] ss:$28 sps:$4 sm:$0xff]   ;;  %v7014_v15 = vld [vmem:[#allocation16 + $0x548] ss:$28 sps:$4 sm:$0xff]   ;;  %v7017_v20 = vld [vmem:[#allocation16 + $0x578] ss:$28 sps:$4 sm:$0xff]  }
 0x7db   :  { %v7846_v31 = vpack.c.bf16 %v3531_v37, %v3527_v35  ;;  %v7848_v43 = vpack.c.bf16 %v3533_v38, %v3529_v36  ;;  %v7022_v17 = vld [vmem:[#allocation16 + $0x584] ss:$28 sps:$4 sm:$0xff]   ;;  %v7025_v22 = vld [vmem:[#allocation16 + $0x5b4] ss:$28 sps:$4 sm:$0xff]   ;;  %v7028_v23 = vld [vmem:[#allocation16 + $0x5bc] ss:$28 sps:$4 sm:$0xff]  }
 0x7dc   :  { %v7850_v44 = vpack.c.bf16 %v3532_v41, %v3528_v39  ;;  %v7852_v45 = vpack.c.bf16 %v3534_v42, %v3530_v40  ;;  %v7020_v21 = vld [vmem:[#allocation16 + $0x580] ss:$28 sps:$4 sm:$0xff]   ;;  %v7023_v24 = vld [vmem:[#allocation16 + $0x5b0] ss:$28 sps:$4 sm:$0xff]   ;;  %v7026_v25 = vld [vmem:[#allocation16 + $0x5b8] ss:$28 sps:$4 sm:$0xff]  }
 0x7dd   :  { %v7031_v26 = vld [vmem:[#allocation16 + $0x5ec] ss:$28 sps:$4 sm:$0xff]   ;;  %v7034_v27 = vld [vmem:[#allocation16 + $0x5f4] ss:$28 sps:$4 sm:$0xff]   ;;  %v7037_v34 = vld [vmem:[#allocation16 + $0x624] ss:$28 sps:$4 sm:$0xff]  }
 0x7de   :  { %5016 = vmatprep.mubr.bf16.mxu0 %v7850_v44  ;;  %5102 = vmatprep.mubr.bf16.mxu1 %v7850_v44  ;;  %v7029_v28 = vld [vmem:[#allocation16 + $0x5e8] ss:$28 sps:$4 sm:$0xff]   ;;  %v7032_v33 = vld [vmem:[#allocation16 + $0x5f0] ss:$28 sps:$4 sm:$0xff]   ;;  %v7035_v36 = vld [vmem:[#allocation16 + $0x620] ss:$28 sps:$4 sm:$0xff]  }
 0x7df   :  { %5017 = vmatmul.mubr.bf16.vlgmr.msra.gmra.mrb[12].mxu0 %v7846_v31  ;;  %5103 = vmatmul.mubr.bf16.vlgmr.msra.gmra.mrb[28].mxu1 %v7846_v31  ;;  %v7040_v35 = vld [vmem:[#allocation16 + $0x62c] ss:$28 sps:$4 sm:$0xff]   ;;  %v7043_v38 = vld [vmem:[#allocation16 + $0x65c] ss:$28 sps:$4 sm:$0xff]   ;;  %v7046_v39 = vld [vmem:[#allocation16 + $0x664] ss:$28 sps:$4 sm:$0xff]  }
 0x7e0   :  { %5028 = vmatpush1.bf16.msra.mxu0 %v6963_v46  ;;  %5114 = vmatpush1.bf16.msra.mxu1 %v6966_v47  ;;  %v7038_v37 = vld [vmem:[#allocation16 + $0x628] ss:$28 sps:$4 sm:$0xff]   ;;  %v7041_v40 = vld [vmem:[#allocation16 + $0x658] ss:$28 sps:$4 sm:$0xff]   ;;  %v7044_v41 = vld [vmem:[#allocation16 + $0x660] ss:$28 sps:$4 sm:$0xff]  }
 0x7e1   :  { %5059 = vmatprep.mubr.bf16.mxu0 %v7852_v45  ;;  %5145 = vmatprep.mubr.bf16.mxu1 %v7852_v45  ;;  %v7049_v42 = vld [vmem:[#allocation16 + $0x694] ss:$28 sps:$4 sm:$0xff]   ;;  %v7052_v46 = vld [vmem:[#allocation16 + $0x69c] ss:$28 sps:$4 sm:$0xff]  }
 0x7e2   :  { %5029 = vmatprep.subr.bf16.mxu0 %v6971_v48  ;;  %5115 = vmatprep.subr.bf16.mxu1 %v6974_v49  ;;  %v7047_v47 = vld [vmem:[#allocation16 + $0x690] ss:$28 sps:$4 sm:$0xff]   ;;  %v7050_v48 = vld [vmem:[#allocation16 + $0x698] ss:$28 sps:$4 sm:$0xff]  }
 0x7e3   :  { %v7055_v49 = vld [vmem:[#allocation16 + $0x6cc] ss:$28 sps:$4 sm:$0xff]  }
 0x7e4   :  { %5030 = vmatpush1.bf16.msra.mxu0 %v6969_v50  ;;  %5116 = vmatpush1.bf16.msra.mxu1 %v6972_v51  ;;  %v7058_v50 = vld [vmem:[#allocation16 + $0x6d4] ss:$28 sps:$4 sm:$0xff]   ;;  %v7053_v51 = vld [vmem:[#allocation16 + $0x6c8] ss:$28 sps:$4 sm:$0xff]  }
 0x7e5   :  { %5031 = vmatprep.subr.bf16.mxu0 %v6977_v52  ;;  %5117 = vmatprep.subr.bf16.mxu1 %v6980_v53  ;;  %v7056_v52 = vld [vmem:[#allocation16 + $0x6d0] ss:$28 sps:$4 sm:$0xff]  }
 0x7e6   :  { %v7061_v53 = vld [vmem:[#allocation16 + $0x14] ss:$28 sps:$4 sm:$0xff]  }
 0x7e8   :  { %5032 = vmatpush1.bf16.msra.mxu0 %v6975_v54  ;;  %5118 = vmatpush1.bf16.msra.mxu1 %v6978_v55  ;;  %v7062_v54 = vld [vmem:[#allocation16 + $0x1d8] ss:$28 sps:$4 sm:$0xff]   ;;  %v7059_v55 = vld [vmem:[#allocation16 + $0x10] ss:$28 sps:$4 sm:$0xff]  }
 0x7e9   :  { %5033 = vmatprep.subr.bf16.mxu0 %v6983_v57  ;;  %5119 = vmatprep.subr.bf16.mxu1 %v6986_v58  ;;  %v7063_v57 = vld [vmem:[#allocation16 + $0x18] ss:$28 sps:$4 sm:$0xff]   ;;  %v7066_v58 = vld [vmem:[#allocation16 + $0x4c] ss:$28 sps:$4 sm:$0xff]  }
 0x7ec   :  { %5034 = vmatpush1.bf16.msra.mxu0 %v6981_v59  ;;  %5120 = vmatpush1.bf16.msra.mxu1 %v6984_v60  ;;  %v7067_v59 = vld [vmem:[#allocation16 + $0x210] ss:$28 sps:$4 sm:$0xff]   ;;  %v7064_v60 = vld [vmem:[#allocation16 + $0x48] ss:$28 sps:$4 sm:$0xff]  }
 0x7ed   :  { %5035 = vmatprep.subr.bf16.mxu0 %v6989_v61  ;;  %5121 = vmatprep.subr.bf16.mxu1 %v6992_v62  ;;  %v7068_v61 = vld [vmem:[#allocation16 + $0x50] ss:$28 sps:$4 sm:$0xff]   ;;  %v7071_v62 = vld [vmem:[#allocation16 + $0x84] ss:$28 sps:$4 sm:$0xff]  }
 0x7f0   :  { %5036 = vmatpush1.bf16.msra.mxu0 %v6987_v63  ;;  %5122 = vmatpush1.bf16.msra.mxu1 %v6990_v1  ;;  %v7072_v63 = vld [vmem:[#allocation16 + $0x248] ss:$28 sps:$4 sm:$0xff]   ;;  %v7069_v1 = vld [vmem:[#allocation16 + $0x80] ss:$28 sps:$4 sm:$0xff]  }
 0x7f1   :  { %5037 = vmatprep.subr.bf16.mxu0 %v6995_v2  ;;  %5123 = vmatprep.subr.bf16.mxu1 %v6998_v56  ;;  %v7073_v2 = vld [vmem:[#allocation16 + $0x88] ss:$28 sps:$4 sm:$0xff]   ;;  %v7076_v56 = vld [vmem:[#allocation16 + $0xbc] ss:$28 sps:$4 sm:$0xff]  }
 0x7f4   :  { %5038 = vmatpush1.bf16.msra.mxu0 %v6993_v3  ;;  %5124 = vmatpush1.bf16.msra.mxu1 %v6996_v4  ;;  %v7077_v3 = vld [vmem:[#allocation16 + $0x280] ss:$28 sps:$4 sm:$0xff]   ;;  %v7074_v4 = vld [vmem:[#allocation16 + $0xb8] ss:$28 sps:$4 sm:$0xff]  }
 0x7f5   :  { %5039 = vmatprep.subr.bf16.mxu0 %v7001_v5  ;;  %5125 = vmatprep.subr.bf16.mxu1 %v7004_v6  ;;  %v7078_v5 = vld [vmem:[#allocation16 + $0xc0] ss:$28 sps:$4 sm:$0xff]   ;;  %v7081_v6 = vld [vmem:[#allocation16 + $0xf4] ss:$28 sps:$4 sm:$0xff]  }
 0x7f8   :  { %5040 = vmatpush1.bf16.msra.mxu0 %v6999_v7  ;;  %5126 = vmatpush1.bf16.msra.mxu1 %v7002_v8  ;;  %v7079_v7 = vld [vmem:[#allocation16 + $0xf0] ss:$28 sps:$4 sm:$0xff]   ;;  %v7083_v8 = vld [vmem:[#allocation16 + $0xf8] ss:$28 sps:$4 sm:$0xff]  }
 0x7f9   :  { %5041 = vmatprep.subr.bf16.mxu0 %v7007_v9  ;;  %5127 = vmatprep.subr.bf16.mxu1 %v7010_v10  ;;  %v7086_v9 = vld [vmem:[#allocation16 + $0x12c] ss:$28 sps:$4 sm:$0xff]  }
 0x7fa   :  { %v7087_v10 = vld [vmem:[#allocation16 + $0x2f0] ss:$28 sps:$4 sm:$0xff]  }
 0x7fc   :  { %5042 = vmatpush1.bf16.msra.mxu0 %v7005_v11  ;;  %5128 = vmatpush1.bf16.msra.mxu1 %v7008_v0  ;;  %v7084_v11 = vld [vmem:[#allocation16 + $0x128] ss:$28 sps:$4 sm:$0xff]   ;;  %v7088_v0 = vld [vmem:[#allocation16 + $0x130] ss:$28 sps:$4 sm:$0xff]  }
 0x7fd   :  { %5043 = vmatprep.subr.bf16.mxu0 %v7013_v12  ;;  %5129 = vmatprep.subr.bf16.mxu1 %v7016_v13  ;;  %v7091_v12 = vld [vmem:[#allocation16 + $0x164] ss:$28 sps:$4 sm:$0xff]  }
 0x7fe   :  { %v7092_v13 = vld [vmem:[#allocation16 + $0x328] ss:$28 sps:$4 sm:$0xff]  }
 0x800   :  { %5044 = vmatpush1.bf16.msra.mxu0 %v7011_v14  ;;  %5130 = vmatpush1.bf16.msra.mxu1 %v7014_v15  ;;  %v7089_v14 = vld [vmem:[#allocation16 + $0x160] ss:$28 sps:$4 sm:$0xff]   ;;  %v7093_v15 = vld [vmem:[#allocation16 + $0x168] ss:$28 sps:$4 sm:$0xff]  }
 0x801   :  { %5045 = vmatprep.subr.bf16.mxu0 %v7019_v16  ;;  %5131 = vmatprep.subr.bf16.mxu1 %v7022_v17  ;;  %v7096_v16 = vld [vmem:[#allocation16 + $0x19c] ss:$28 sps:$4 sm:$0xff]  }
 0x802   :  { %v7097_v17 = vld [vmem:[#allocation16 + $0x360] ss:$28 sps:$4 sm:$0xff]  }
 0x804   :  { %5046 = vmatpush1.bf16.msra.mxu0 %v7017_v20  ;;  %5132 = vmatpush1.bf16.msra.mxu1 %v7020_v21  ;;  %v7094_v20 = vld [vmem:[#allocation16 + $0x198] ss:$28 sps:$4 sm:$0xff]   ;;  %v7098_v21 = vld [vmem:[#allocation16 + $0x1a0] ss:$28 sps:$4 sm:$0xff]  }
 0x805   :  { %5047 = vmatprep.subr.bf16.mxu0 %v7025_v22  ;;  %5133 = vmatprep.subr.bf16.mxu1 %v7028_v23  ;;  %v7101_v22 = vld [vmem:[#allocation16 + $0x1d4] ss:$28 sps:$4 sm:$0xff]  }
 0x806   :  { %v7102_v23 = vld [vmem:[#allocation16 + $0x558] ss:$28 sps:$4 sm:$0xff]  }
 0x808   :  { %5048 = vmatpush1.bf16.msra.mxu0 %v7023_v24  ;;  %5134 = vmatpush1.bf16.msra.mxu1 %v7026_v25  ;;  %v7099_v24 = vld [vmem:[#allocation16 + $0x1d0] ss:$28 sps:$4 sm:$0xff]   ;;  %v7103_v25 = vld [vmem:[#allocation16 + $0x398] ss:$28 sps:$4 sm:$0xff]  }
 0x809   :  { %5049 = vmatprep.subr.bf16.mxu0 %v7031_v26  ;;  %5135 = vmatprep.subr.bf16.mxu1 %v7034_v27  ;;  %v7106_v26 = vld [vmem:[#allocation16 + $0x20c] ss:$28 sps:$4 sm:$0xff]  }
 0x80a   :  { %v7107_v27 = vld [vmem:[#allocation16 + $0x590] ss:$28 sps:$4 sm:$0xff]  }
 0x80c   :  { %5050 = vmatpush1.bf16.msra.mxu0 %v7029_v28  ;;  %5136 = vmatpush1.bf16.msra.mxu1 %v7032_v33  ;;  %v7104_v28 = vld [vmem:[#allocation16 + $0x208] ss:$28 sps:$4 sm:$0xff]   ;;  %v7108_v33 = vld [vmem:[#allocation16 + $0x3d0] ss:$28 sps:$4 sm:$0xff]  }
 0x80d   :  { %5051 = vmatprep.subr.bf16.mxu0 %v7037_v34  ;;  %5137 = vmatprep.subr.bf16.mxu1 %v7040_v35  ;;  %v7111_v34 = vld [vmem:[#allocation16 + $0x244] ss:$28 sps:$4 sm:$0xff]  }
 0x80e   :  { %v7112_v35 = vld [vmem:[#allocation16 + $0x5c8] ss:$28 sps:$4 sm:$0xff]  }
 0x810   :  { %5052 = vmatpush1.bf16.msra.mxu0 %v7035_v36  ;;  %5138 = vmatpush1.bf16.msra.mxu1 %v7038_v37  ;;  %v7109_v36 = vld [vmem:[#allocation16 + $0x240] ss:$28 sps:$4 sm:$0xff]   ;;  %v7113_v37 = vld [vmem:[#allocation16 + $0x408] ss:$28 sps:$4 sm:$0xff]  }
 0x811   :  { %5053 = vmatprep.subr.bf16.mxu0 %v7043_v38  ;;  %5139 = vmatprep.subr.bf16.mxu1 %v7046_v39  ;;  %v7116_v38 = vld [vmem:[#allocation16 + $0x27c] ss:$28 sps:$4 sm:$0xff]  }
 0x812   :  { %v7117_v39 = vld [vmem:[#allocation16 + $0x600] ss:$28 sps:$4 sm:$0xff]  }
 0x814   :  { %5054 = vmatpush1.bf16.msra.mxu0 %v7041_v40  ;;  %5140 = vmatpush1.bf16.msra.mxu1 %v7044_v41  ;;  %v7114_v40 = vld [vmem:[#allocation16 + $0x278] ss:$28 sps:$4 sm:$0xff]   ;;  %v7118_v41 = vld [vmem:[#allocation16 + $0x440] ss:$28 sps:$4 sm:$0xff]  }
 0x815   :  { %5055 = vmatprep.subr.bf16.mxu0 %v7049_v42  ;;  %5141 = vmatprep.subr.bf16.mxu1 %v7052_v46  ;;  %v7121_v42 = vld [vmem:[#allocation16 + $0x2b4] ss:$28 sps:$4 sm:$0xff]  }
 0x816   :  { %v7122_v46 = vld [vmem:[#allocation16 + $0x638] ss:$28 sps:$4 sm:$0xff]  }
 0x818   :  { %5056 = vmatpush1.bf16.msra.mxu0 %v7047_v47  ;;  %5142 = vmatpush1.bf16.msra.mxu1 %v7050_v48  ;;  %v7119_v47 = vld [vmem:[#allocation16 + $0x2b0] ss:$28 sps:$4 sm:$0xff]   ;;  %v7123_v48 = vld [vmem:[#allocation16 + $0x478] ss:$28 sps:$4 sm:$0xff]  }
 0x819   :  { %5057 = vmatprep.subr.bf16.mxu0 %v7055_v49  ;;  %5143 = vmatprep.subr.bf16.mxu1 %v7058_v50  ;;  %v7126_v49 = vld [vmem:[#allocation16 + $0x2ec] ss:$28 sps:$4 sm:$0xff]  }
 0x81a   :  { %v7127_v50 = vld [vmem:[#allocation16 + $0x670] ss:$28 sps:$4 sm:$0xff]  }
 0x81c   :  { %5058 = vmatpush1.bf16.msra.mxu0 %v7053_v51  ;;  %5144 = vmatpush1.bf16.msra.mxu1 %v7056_v52  ;;  %v7124_v51 = vld [vmem:[#allocation16 + $0x2e8] ss:$28 sps:$4 sm:$0xff]   ;;  %v7128_v52 = vld [vmem:[#allocation16 + $0x4b0] ss:$28 sps:$4 sm:$0xff]  }
 0x81d   :  { %5156 = vmatprep.subr.bf16.mxu0 %v7061_v53  ;;  %6104 = vmatprep.subr.bf16.mxu1 %v7062_v54  ;;  %v7131_v53 = vld [vmem:[#allocation16 + $0x324] ss:$28 sps:$4 sm:$0xff]  }
 0x81e   :  { %v7132_v54 = vld [vmem:[#allocation16 + $0x6a8] ss:$28 sps:$4 sm:$0xff]  }
 0x81f   :  { %5060 = vmatmul.mubr.bf16.vlgmr.msra.gmra.mrb[12].mxu0 %v7848_v43  ;;  %5146 = vmatmul.mubr.bf16.vlgmr.msra.gmra.mrb[28].mxu1 %v7848_v43 }
 0x820   :  { %5157 = vmatpush1.bf16.msra.mxu0 %v7059_v55  ;;  %5188 = vmatprep.mubr.bf16.mxu0 %v7850_v44  ;;  %v7129_v55 = vld [vmem:[#allocation16 + $0x320] ss:$28 sps:$4 sm:$0xff]  }
 0x821   :  { %6105 = vmatpush3.bf16.msra.mxu1 %v7063_v57  ;;  %5274 = vmatprep.mubr.bf16.mxu1 %v7850_v44  ;;  %v7082_v44 = vld [vmem:[#allocation16 + $0x2b8] ss:$28 sps:$4 sm:$0xff]   ;;  %v7133_v57 = vld [vmem:[#allocation16 + $0x4e8] ss:$28 sps:$4 sm:$0xff]  }
 0x822   :  { %5158 = vmatprep.subr.bf16.mxu0 %v7066_v58  ;;  %6106 = vmatprep.subr.bf16.mxu1 %v7067_v59  ;;  %v7136_v58 = vld [vmem:[#allocation16 + $0x35c] ss:$28 sps:$4 sm:$0xff]  }
 0x823   :  { %v7137_v59 = vld [vmem:[#allocation16 + $0x6e0] ss:$28 sps:$4 sm:$0xff]  }
 0x824   :  { %5159 = vmatpush1.bf16.msra.mxu0 %v7064_v60  ;;  %v7134_v60 = vld [vmem:[#allocation16 + $0x358] ss:$28 sps:$4 sm:$0xff]  }
 0x825   :  { %6107 = vmatpush3.bf16.msra.mxu1 %v7068_v61  ;;  %5160 = vmatprep.subr.bf16.mxu0 %v7071_v62  ;;  %v7138_v61 = vld [vmem:[#allocation16 + $0x520] ss:$28 sps:$4 sm:$0xff]   ;;  %v7141_v62 = vld [vmem:[#allocation16 + $0x394] ss:$28 sps:$4 sm:$0xff]  }
 0x826   :  { %6108 = vmatprep.subr.bf16.mxu1 %v7072_v63  ;;  %v7139_v63 = vld [vmem:[#allocation16 + $0x390] ss:$28 sps:$4 sm:$0xff]  }
 0x828   :  { %5161 = vmatpush1.bf16.msra.mxu0 %v7069_v1  ;;  %v7144_v1 = vld [vmem:[#allocation16 + $0x3cc] ss:$28 sps:$4 sm:$0xff]  }
 0x829   :  { %6109 = vmatpush3.bf16.msra.mxu1 %v7073_v2  ;;  %5162 = vmatprep.subr.bf16.mxu0 %v7076_v56  ;;  %v7142_v2 = vld [vmem:[#allocation16 + $0x3c8] ss:$28 sps:$4 sm:$0xff]  }
 0x82a   :  { %6110 = vmatprep.subr.bf16.mxu1 %v7077_v3  ;;  %v7147_v56 = vld [vmem:[#allocation16 + $0x404] ss:$28 sps:$4 sm:$0xff]  }
 0x82b   :  { %v7145_v3 = vld [vmem:[#allocation16 + $0x400] ss:$28 sps:$4 sm:$0xff]  }
 0x82c   :  { %5163 = vmatpush1.bf16.msra.mxu0 %v7074_v4  ;;  %v7150_v4 = vld [vmem:[#allocation16 + $0x43c] ss:$28 sps:$4 sm:$0xff]  }
 0x82d   :  { %6111 = vmatpush3.bf16.msra.mxu1 %v7078_v5  ;;  %5164 = vmatprep.subr.bf16.mxu0 %v7081_v6  ;;  %v7148_v5 = vld [vmem:[#allocation16 + $0x438] ss:$28 sps:$4 sm:$0xff]  }
 0x82e   :  { %6112 = vmatprep.subr.bf16.mxu1 %v7082_v44  ;;  %v7153_v6 = vld [vmem:[#allocation16 + $0x474] ss:$28 sps:$4 sm:$0xff]  }
 0x82f   :  { %v7151_v44 = vld [vmem:[#allocation16 + $0x470] ss:$28 sps:$4 sm:$0xff]  }
 0x830   :  { %5165 = vmatpush1.bf16.msra.mxu0 %v7079_v7  ;;  %v7154_v7 = vld [vmem:[#allocation16 + $0x4a8] ss:$28 sps:$4 sm:$0xff]  }
 0x831   :  { %6113 = vmatpush3.bf16.msra.mxu1 %v7083_v8  ;;  %5166 = vmatprep.subr.bf16.mxu0 %v7086_v9  ;;  %v7159_v8 = vld [vmem:[#allocation16 + $0x4e4] ss:$28 sps:$4 sm:$0xff]   ;;  %v7162_v9 = vld [vmem:[#allocation16 + $0x51c] ss:$28 sps:$4 sm:$0xff]  }
 0x832   :  { %6114 = vmatprep.subr.bf16.mxu1 %v7087_v10  ;;  %v7160_v10 = vld [vmem:[#allocation16 + $0x518] ss:$28 sps:$4 sm:$0xff]  }
 0x834   :  { %5167 = vmatpush1.bf16.msra.mxu0 %v7084_v11  ;;  %v7165_v11 = vld [vmem:[#allocation16 + $0x554] ss:$28 sps:$4 sm:$0xff]  }
 0x835   :  { %6115 = vmatpush3.bf16.msra.mxu1 %v7088_v0  ;;  %5168 = vmatprep.subr.bf16.mxu0 %v7091_v12  ;;  %v7163_v0 = vld [vmem:[#allocation16 + $0x550] ss:$28 sps:$4 sm:$0xff]  }
 0x836   :  { %6116 = vmatprep.subr.bf16.mxu1 %v7092_v13  ;;  %v7168_v12 = vld [vmem:[#allocation16 + $0x58c] ss:$28 sps:$4 sm:$0xff]  }
 0x837   :  { %v7166_v13 = vld [vmem:[#allocation16 + $0x588] ss:$28 sps:$4 sm:$0xff]  }
 0x838   :  { %5169 = vmatpush1.bf16.msra.mxu0 %v7089_v14  ;;  %v7171_v14 = vld [vmem:[#allocation16 + $0x5c4] ss:$28 sps:$4 sm:$0xff]  }
 0x839   :  { %6117 = vmatpush3.bf16.msra.mxu1 %v7093_v15  ;;  %5170 = vmatprep.subr.bf16.mxu0 %v7096_v16  ;;  %v7169_v15 = vld [vmem:[#allocation16 + $0x5c0] ss:$28 sps:$4 sm:$0xff]  }
 0x83a   :  { %6118 = vmatprep.subr.bf16.mxu1 %v7097_v17  ;;  %v7174_v16 = vld [vmem:[#allocation16 + $0x5fc] ss:$28 sps:$4 sm:$0xff]  }
 0x83b   :  { %v7172_v17 = vld [vmem:[#allocation16 + $0x5f8] ss:$28 sps:$4 sm:$0xff]  }
 0x83c   :  { %5171 = vmatpush1.bf16.msra.mxu0 %v7094_v20  ;;  %v7177_v20 = vld [vmem:[#allocation16 + $0x634] ss:$28 sps:$4 sm:$0xff]  }
 0x83d   :  { %6119 = vmatpush3.bf16.msra.mxu1 %v7098_v21  ;;  %5172 = vmatprep.subr.bf16.mxu0 %v7101_v22  ;;  %v7175_v21 = vld [vmem:[#allocation16 + $0x630] ss:$28 sps:$4 sm:$0xff]  }
 0x83e   :  { %6126 = vmatprep.subr.bf16.mxu1 %v7102_v23  ;;  %v7180_v22 = vld [vmem:[#allocation16 + $0x66c] ss:$28 sps:$4 sm:$0xff]  }
 0x83f   :  { %v7178_v23 = vld [vmem:[#allocation16 + $0x668] ss:$28 sps:$4 sm:$0xff]  }
 0x840   :  { %5275 = vmatmul.mubr.bf16.vlgmr.msra.gmra.mrb[32].mxu1 %v7846_v31  ;;  %5173 = vmatpush1.bf16.msra.mxu0 %v7099_v24  ;;  %v7183_v24 = vld [vmem:[#allocation16 + $0x6a4] ss:$28 sps:$4 sm:$0xff]  }
 0x841   :  { %6127 = vmatpush3.bf16.msra.mxu1 %v7103_v25  ;;  %5315 = vmatprep.mubr.bf16.mxu1 %v7852_v45  ;;  %v7181_v25 = vld [vmem:[#allocation16 + $0x6a0] ss:$28 sps:$4 sm:$0xff]  }
 0x842   :  { %5174 = vmatprep.subr.bf16.mxu0 %v7106_v26  ;;  %6128 = vmatprep.subr.bf16.mxu1 %v7107_v27  ;;  %v7186_v26 = vld [vmem:[#allocation16 + $0x6dc] ss:$28 sps:$4 sm:$0xff]  }
 0x843   :  { %v7184_v27 = vld [vmem:[#allocation16 + $0x6d8] ss:$28 sps:$4 sm:$0xff]  }
 0x844   :  { %5175 = vmatpush1.bf16.msra.mxu0 %v7104_v28  ;;  %v7873_v28 = vld [vmem:[%s7929_s16] sm:$0xff] }
 0x845   :  { %6129 = vmatpush3.bf16.msra.mxu1 %v7108_v33  ;;  %5176 = vmatprep.subr.bf16.mxu0 %v7111_v34  ;;  %v3800_v33 = vrot.slane %v7873_v28, %v7745_v30  ;;  %v3808_v34 = vrot.slane %v7873_v28, %v7757_v18 }
 0x846   :  { %6130 = vmatprep.subr.bf16.mxu1 %v7112_v35  ;;  %v3804_v35 = vrot.slane %v7873_v28, %v7750_v32 }
 0x848   :  { %5177 = vmatpush1.bf16.msra.mxu0 %v7109_v36  ;;  %v3812_v36 = vrot.slane %v7873_v28, %v7760_v19 }
 0x849   :  { %6131 = vmatpush3.bf16.msra.mxu1 %v7113_v37  ;;  %5178 = vmatprep.subr.bf16.mxu0 %v7116_v38 }
 0x84a   :  { %6132 = vmatprep.subr.bf16.mxu1 %v7117_v39 }
 0x84c   :  { %5179 = vmatpush1.bf16.msra.mxu0 %v7114_v40 }
 0x84d   :  { %6133 = vmatpush3.bf16.msra.mxu1 %v7118_v41  ;;  %5180 = vmatprep.subr.bf16.mxu0 %v7121_v42 }
 0x84e   :  { %6134 = vmatprep.subr.bf16.mxu1 %v7122_v46 }
 0x850   :  { %5181 = vmatpush1.bf16.msra.mxu0 %v7119_v47 }
 0x851   :  { %6135 = vmatpush3.bf16.msra.mxu1 %v7123_v48  ;;  %5182 = vmatprep.subr.bf16.mxu0 %v7126_v49 }
 0x852   :  { %6136 = vmatprep.subr.bf16.mxu1 %v7127_v50 }
 0x854   :  { %5183 = vmatpush1.bf16.msra.mxu0 %v7124_v51 }
 0x855   :  { %6137 = vmatpush3.bf16.msra.mxu1 %v7128_v52  ;;  %5184 = vmatprep.subr.bf16.mxu0 %v7131_v53 }
 0x856   :  { %6138 = vmatprep.subr.bf16.mxu1 %v7132_v54 }
 0x858   :  { %5185 = vmatpush1.bf16.msra.mxu0 %v7129_v55 }
 0x859   :  { %6139 = vmatpush3.bf16.msra.mxu1 %v7133_v57  ;;  %5186 = vmatprep.subr.bf16.mxu0 %v7136_v58 }
 0x85a   :  { %6140 = vmatprep.subr.bf16.mxu1 %v7137_v59 }
 0x85c   :  { %5187 = vmatpush1.bf16.msra.mxu0 %v7134_v60 }
 0x85d   :  { %6141 = vmatpush3.bf16.msra.mxu1 %v7138_v61  ;;  %5199 = vmatprep.subr.bf16.mxu0 %v7141_v62 }
 0x85f   :  { %5189 = vmatmul.mubr.bf16.vlgmr.msra.gmra.mrb[16].mxu0 %v7846_v31  ;;  %v7156_v31 = vld [vmem:[#allocation16 + $0x4ac] ss:$28 sps:$4 sm:$0xff]  }
 0x860   :  { %5316 = vmatmul.mubr.bf16.vlgmr.msra.gmra.mrb[36].mxu1 %v7848_v43  ;;  %5200 = vmatpush1.bf16.msra.mxu0 %v7139_v63 }
 0x861   :  { %5231 = vmatprep.mubr.bf16.mxu0 %v7852_v45  ;;  %5201 = vmatprep.subr.bf16.mxu0 %v7144_v1  ;;  %v7157_v45 = vld [vmem:[#allocation16 + $0x4e0] ss:$28 sps:$4 sm:$0xff]  }
 0x864   :  { %5202 = vmatpush1.bf16.msra.mxu0 %v7142_v2 }
 0x865   :  { %5203 = vmatprep.subr.bf16.mxu0 %v7147_v56 }
 0x868   :  { %5204 = vmatpush1.bf16.msra.mxu0 %v7145_v3 }
 0x869   :  { %5205 = vmatprep.subr.bf16.mxu0 %v7150_v4 }
 0x86c   :  { %5206 = vmatpush1.bf16.msra.mxu0 %v7148_v5 }
 0x86d   :  { %5207 = vmatprep.subr.bf16.mxu0 %v7153_v6 }
 0x870   :  { %5208 = vmatpush1.bf16.msra.mxu0 %v7151_v44 }
 0x871   :  { %5209 = vmatprep.subr.bf16.mxu0 %v7156_v31 }
 0x874   :  { %5210 = vmatpush1.bf16.msra.mxu0 %v7154_v7 }
 0x875   :  { %5211 = vmatprep.subr.bf16.mxu0 %v7159_v8 }
 0x878   :  { %5212 = vmatpush1.bf16.msra.mxu0 %v7157_v45 }
 0x879   :  { %5213 = vmatprep.subr.bf16.mxu0 %v7162_v9 }
 0x87c   :  { %5214 = vmatpush1.bf16.msra.mxu0 %v7160_v10 }
 0x87d   :  { %5215 = vmatprep.subr.bf16.mxu0 %v7165_v11  ;;  %v3823_v11 = vsub.s32 6, %v7742_v29 }
 0x880   :  { %5216 = vmatpush1.bf16.msra.mxu0 %v7163_v0  ;;  %v3824_v0 = vrot.slane %v7873_v28, %v3823_v11 }
 0x881   :  { %5217 = vmatprep.subr.bf16.mxu0 %v7168_v12 }
 0x884   :  { %5218 = vmatpush1.bf16.msra.mxu0 %v7166_v13 }
 0x885   :  { %5219 = vmatprep.subr.bf16.mxu0 %v7171_v14 }
 0x888   :  { %5220 = vmatpush1.bf16.msra.mxu0 %v7169_v15 }
 0x889   :  { %5221 = vmatprep.subr.bf16.mxu0 %v7174_v16 }
 0x88c   :  { %5222 = vmatpush1.bf16.msra.mxu0 %v7172_v17 }
 0x88d   :  { %5223 = vmatprep.subr.bf16.mxu0 %v7177_v20 }
 0x890   :  { %5224 = vmatpush1.bf16.msra.mxu0 %v7175_v21 }
 0x891   :  { %5225 = vmatprep.subr.bf16.mxu0 %v7180_v22 }
 0x894   :  { %5226 = vmatpush1.bf16.msra.mxu0 %v7178_v23 }
 0x895   :  { %5227 = vmatprep.subr.bf16.mxu0 %v7183_v24 }
 0x898   :  { %5228 = vmatpush1.bf16.msra.mxu0 %v7181_v25 }
 0x899   :  { %5229 = vmatprep.subr.bf16.mxu0 %v7186_v26 }
 0x89c   :  { %5230 = vmatpush1.bf16.msra.mxu0 %v7184_v27 }
 0x89f   :  { %5232 = vmatmul.mubr.bf16.vlgmr.msra.gmra.mrb[16].mxu0 %v7848_v43 }
 0x8f2   :  { %v5061_v37 = vpop.f32.mrb[12].mxu0  ;;  %v5147_v38 = vpop.f32.mrb[28].mxu1 }
 0x8f3   :  { %v6204_v43 = vadd.f32 %v5061_v37, %v3800_v33  ;;  %v6208_v39 = vadd.f32 %v5147_v38, %v3808_v34  ;;  %v5063_v40 = vpop.f32.mrb[13].mxu0  ;;  %v5149_v41 = vpop.f32.mrb[29].mxu1 }
 0x8f4   :  { %v6205_v42 = vadd.f32 %v5063_v40, %v3804_v35  ;;  %v6209_v46 = vadd.f32 %v5149_v41, %v3812_v36  ;;  %v5065_v47 = vpop.f32.mrb[14].mxu0  ;;  %v5151_v48 = vpop.f32.mrb[30].mxu1 }
 0x8f5   :  { %v5324_v30 = vmul.f32 0.5, %v6204_v43  ;;  %v5326_v49 = vmul.f32 0.5, %v6208_v39  ;;  %v6206_v50 = vadd.f32 %v5065_v47, %v3800_v33  ;;  %v6210_v18 = vadd.f32 %v5151_v48, %v3808_v34  ;;  %v5067_v51 = vpop.f32.mrb[15].mxu0  ;;  %v5153_v52 = vpop.f32.mrb[31].mxu1 }
 0x8f6   :  { %v5325_v32 = vmul.f32 0.5, %v6205_v42  ;;  %v5327_v53 = vmul.f32 0.5, %v6209_v46  ;;  %v6207_v54 = vadd.f32 %v5067_v51, %v3804_v35  ;;  %v6211_v19 = vadd.f32 %v5153_v52, %v3812_v36 }
 0x8f7   :  { %v5338_v55 = vmax.f32 %v6204_v43, %v5324_v30  ;;  %v5340_v57 = vmax.f32 %v6208_v39, %v5326_v49  ;;  %v5331_v58 = vmul.f32 0.5, %v6206_v50  ;;  %v5333_v59 = vmul.f32 0.5, %v6210_v18 }
 0x8f8   :  { %v5339_v60 = vmax.f32 %v6205_v42, %v5325_v32  ;;  %v5341_v61 = vmax.f32 %v6209_v46, %v5327_v53  ;;  %v5332_v62 = vmul.f32 0.5, %v6207_v54  ;;  %v5334_v63 = vmul.f32 0.5, %v6211_v19 }
 0x8f9   :  { %v5345_v1 = vmax.f32 %v6206_v50, %v5331_v58  ;;  %v5347_v2 = vmax.f32 %v6210_v18, %v5333_v59  ;;  %v3815_v35 = vsub.s32 4, %v7742_v29  ;;  %v3819_v36 = vsub.s32 5, %v7742_v29 }
 0x8fa   :  { %v6056_v56 = vpack.c.bf16 %v5339_v60, %v5338_v55  ;;  %v6057_v3 = vpack.c.bf16 %v5341_v61, %v5340_v57  ;;  %v5346_v4 = vmax.f32 %v6207_v54, %v5332_v62  ;;  %v5348_v5 = vmax.f32 %v6211_v19, %v5334_v63 }
 0x8fb   :  { %v3816_v37 = vrot.slane %v7873_v28, %v3815_v35  ;;  %v3820_v38 = vrot.slane %v7873_v28, %v3819_v36 }
 0x8fc   :  { %5396 = vst [vmem:[%s7930_s17] sm:$0xff] %v6056_v56  ;;  %5397 = vst [vmem:[%s7930_s17 + $0x8] sm:$0xff] %v6057_v3  ;;  %v6060_v6 = vpack.c.bf16 %v5346_v4, %v5345_v1  ;;  %v6061_v44 = vpack.c.bf16 %v5348_v5, %v5347_v2 }
 0x8fe   :  { %5400 = vst [vmem:[%s7930_s17 + $0x1c] sm:$0xff] %v6060_v6  ;;  %5401 = vst [vmem:[%s7930_s17 + $0x24] sm:$0xff] %v6061_v44 }
 0x913   :  { %v6120_v31 = vpop.f32.mrb[32].mxu1 }
 0x914   :  { %v6121_v7 = vpop.f32.mrb[33].mxu1 }
 0x915   :  { %v6122_v8 = vadd.f32 %v6121_v7, %v6120_v31  ;;  %v6123_v45 = vpop.f32.mrb[34].mxu1 }
 0x916   :  { %v6124_v9 = vpop.f32.mrb[35].mxu1 }
 0x917   :  { %v6125_v10 = vadd.f32 %v6124_v9, %v6123_v45  ;;  %v5277_v14 = vadd.f32 %v6122_v8, %v3824_v0 }
 0x919   :  { %v5280_v20 = vadd.f32 %v6125_v10, %v3824_v0 }
 0x933   :  { %v6142_v12 = vpop.f32.mrb[36].mxu1 }
 0x934   :  { %v6143_v13 = vpop.f32.mrb[37].mxu1 }
 0x935   :  { %v6144_v15 = vadd.f32 %v6143_v13, %v6142_v12  ;;  %v6145_v16 = vpop.f32.mrb[38].mxu1 }
 0x936   :  { %v6146_v17 = vpop.f32.mrb[39].mxu1 }
 0x937   :  { %v5318_v21 = vadd.f32 %v6144_v15, %v5277_v14  ;;  %v6147_v22 = vadd.f32 %v6146_v17, %v6145_v16 }
 0x939   :  { %v5330_v23 = vmul.f32 0.5, %v5318_v21  ;;  %v5321_v24 = vadd.f32 %v6147_v22, %v5280_v20 }
 0x93b   :  { %v5344_v25 = vmax.f32 %v5318_v21, %v5330_v23  ;;  %v5337_v26 = vmul.f32 0.5, %v5321_v24 }
 0x93d   :  { %v6059_v27 = vpack.c.bf16 %v5344_v25, %v5344_v25  ;;  %v5351_v33 = vmax.f32 %v5321_v24, %v5337_v26 }
 0x93f   :  { %5399 = vst [vmem:[%s7930_s17 + $0x18] sm:$0xf] %v6059_v27  ;;  %v6063_v34 = vpack.c.bf16 %v5351_v33, %v5351_v33 }
 0x941   :  { %5403 = vst [vmem:[%s7930_s17 + $0x34] sm:$0xf] %v6063_v34 }
 0x972   :  { %v5233_v43 = vpop.f32.mrb[16].mxu0 }
 0x973   :  { %v6212_v39 = vadd.f32 %v5233_v43, %v3816_v37  ;;  %v5235_v40 = vpop.f32.mrb[17].mxu0 }
 0x974   :  { %v6213_v41 = vadd.f32 %v5235_v40, %v3820_v38  ;;  %v5237_v42 = vpop.f32.mrb[18].mxu0 }
 0x975   :  { %v5328_v46 = vmul.f32 0.5, %v6212_v39  ;;  %v6214_v47 = vadd.f32 %v5237_v42, %v3816_v37  ;;  %v5239_v48 = vpop.f32.mrb[19].mxu0 }
 0x976   :  { %v5329_v30 = vmul.f32 0.5, %v6213_v41  ;;  %v6215_v49 = vadd.f32 %v5239_v48, %v3820_v38 }
 0x977   :  { %v5342_v50 = vmax.f32 %v6212_v39, %v5328_v46  ;;  %v5335_v18 = vmul.f32 0.5, %v6214_v47 }
 0x978   :  { %v5343_v51 = vmax.f32 %v6213_v41, %v5329_v30  ;;  %v5336_v52 = vmul.f32 0.5, %v6215_v49 }
 0x979   :  { %v5349_v32 = vmax.f32 %v6214_v47, %v5335_v18 }
 0x97a   :  { %v6058_v29 = vpack.c.bf16 %v5343_v51, %v5342_v50  ;;  %v5350_v53 = vmax.f32 %v6215_v49, %v5336_v52 }
 0x97c   :  { %5398 = vst [vmem:[%s7930_s17 + $0x10] sm:$0xff] %v6058_v29  ;;  %v6062_v28 = vpack.c.bf16 %v5350_v53, %v5349_v32 }
 0x97e   :  { %5402 = vst [vmem:[%s7930_s17 + $0x2c] sm:$0xff] %v6062_v28 }
 0x97f   :  { %5408 = vsyncpa [#allocation3], 1 }
 0x980   :  { %5409 = vsyncpa [#allocation5], 1 }
 0x981   :  { %5410 = vsyncpa [#allocation8], 1 }
 0x982   :  { %5411 = vsyncpa [#allocation11], 1 }
 0x983   :  { %5412 = vsyncpa [#allocation14], 1 }
 0x984   :  { %5413 = vsyncpa [#allocation17], 1 }

</bundles_post_ra>
